<compile_context>
chip_gen: v7x
topology: tpu7x:2x2x1
jax: 0.10.0
libtpu: 0.0.40
codegen_flags: <defaults>
</compile_context>

<pallas_src>
import jax
import jax.numpy as jnp
from jax.experimental import pallas as pl
from jax.experimental.pallas import tpu as pltpu


def _round_up(n: int, m: int) -> int:
    return ((n + m - 1) // m) * m


# --------------------------------------------------------------------------
# Kernel A: weights resident in VMEM for the whole grid (small/medium D).
# --------------------------------------------------------------------------
def _mlp_kernel_resident(x_ref, w1_ref, b1_ref, w2_ref, b2_ref, out_ref):
    # Layer 1: (tile, D) @ (D, D) on the MXU, f32 accumulation; bias + ReLU on VPU.
    x = x_ref[...].astype(w1_ref.dtype)
    h = jnp.dot(x, w1_ref[...], preferred_element_type=jnp.float32)
    h = jnp.maximum(h + b1_ref[...], 0.0)            # b1 is f32 by contract
    # Layer 2 (the reference module has NO trailing ReLU).
    o = jnp.dot(h.astype(w2_ref.dtype), w2_ref[...],
                preferred_element_type=jnp.float32)
    out_ref[...] = (o + b2_ref[...]).astype(out_ref.dtype)


# --------------------------------------------------------------------------
# Kernel B: hidden-dimension tiled path for large D (weights streamed, f32
# accumulator in scratch, reduction axis last / "arbitrary").
# --------------------------------------------------------------------------
def _mlp_kernel_htiled(x_ref, w1_ref, b1_ref, w2_ref, b2_ref, out_ref, acc_ref):
    h_idx = pl.program_id(1)

    @pl.when(h_idx == 0)
    def _():
        acc_ref[...] = jnp.zeros_like(acc_ref)

    x = x_ref[...].astype(w1_ref.dtype)
    # Column slice of layer 1: (tile, D) @ (D, th) -> (tile, th)
    h = jnp.dot(x, w1_ref[...], preferred_element_type=jnp.float32)
    h = jnp.maximum(h + b1_ref[...], 0.0)
    # Partial contraction of layer 2: (tile, th) @ (th, D) accumulated in f32.
    acc_ref[...] += jnp.dot(h.astype(w2_ref.dtype), w2_ref[...],
                            preferred_element_type=jnp.float32)

    @pl.when(h_idx == pl.num_programs(1) - 1)
    def _():
        out_ref[...] = (acc_ref[...] + b2_ref[...]).astype(out_ref.dtype)


# --------------------------------------------------------------------------
# pallas_call wrappers
# --------------------------------------------------------------------------
def _forward_resident(x2, w1, b1, w2, b2, *, tile, grid_m, vmem_limit, cost,
                      single_buffer_weights):
    D = x2.shape[1]
    if single_buffer_weights:
        def wspec(shape, imap):
            return pl.BlockSpec(shape, imap, pipeline_mode=pl.Buffered(1))
    else:
        def wspec(shape, imap):
            return pl.BlockSpec(shape, imap)

    return pl.pallas_call(
        _mlp_kernel_resident,
        grid=(grid_m,),
        in_specs=[
            pl.BlockSpec((tile, D), lambda i: (i, 0)),   # x row tile (pipelined)
            wspec((D, D), lambda i: (0, 0)),             # w1 (grid-resident)
            wspec((1, D), lambda i: (0, 0)),             # b1 (grid-resident, f32)
            wspec((D, D), lambda i: (0, 0)),             # w2 (grid-resident)
            wspec((1, D), lambda i: (0, 0)),             # b2 (grid-resident, f32)
        ],
        out_specs=pl.BlockSpec((tile, D), lambda i: (i, 0)),
        out_shape=jax.ShapeDtypeStruct(x2.shape, x2.dtype),
        compiler_params=pltpu.CompilerParams(
            dimension_semantics=("parallel",),           # megacore sharding on v7x
            vmem_limit_bytes=vmem_limit),
        cost_estimate=cost,
    )(x2, w1, b1, w2, b2)


def _forward_hidden_tiled(x2, w1, b1, w2, b2, *, tile, grid_m, th, vmem_limit,
                          cost):
    D = x2.shape[1]
    # TODO(synk): for extremely large D also tile the output (N) dimension so
    # the (tile, D) f32 accumulator itself stays small; not needed at d_model
    # <= ~8192 with tile <= 512.
    return pl.pallas_call(
        _mlp_kernel_htiled,
        grid=(grid_m, D // th),
        in_specs=[
            pl.BlockSpec((tile, D), lambda i, h: (i, 0)),  # x (resident per row tile)
            pl.BlockSpec((D, th), lambda i, h: (0, h)),    # w1 column slice
            pl.BlockSpec((1, th), lambda i, h: (0, h)),    # b1 slice (f32)
            pl.BlockSpec((th, D), lambda i, h: (h, 0)),    # w2 row slice
            pl.BlockSpec((1, D), lambda i, h: (0, 0)),     # b2 (f32)
        ],
        out_specs=pl.BlockSpec((tile, D), lambda i, h: (i, 0)),
        out_shape=jax.ShapeDtypeStruct(x2.shape, x2.dtype),
        scratch_shapes=[pltpu.VMEM((tile, D), jnp.float32)],
        compiler_params=pltpu.CompilerParams(
            dimension_semantics=("parallel", "arbitrary"),
            vmem_limit_bytes=vmem_limit),
        cost_estimate=cost,
    )(x2, w1, b1, w2, b2)


def titans_core_forward(x, w1, b1, w2, b2, *, tm: int = 512,
                        hidden_tile=None,
                        vmem_budget_bytes: int = 56 * 2**20):
    """TitansCore.forward: Linear -> ReLU -> Linear.

    x: (..., D), any float dtype (bf16 recommended for HBM-bound shapes).
    w1, w2: (D, D), pre-transposed (D_in, D_out); bf16 recommended.
    b1, b2: (1, D) float32 by contract (added in f32 inside the kernel).
    Returns an array with the same shape/dtype as x.
    """
    orig_shape = x.shape
    D = orig_shape[-1]
    assert w1.shape == (D, D) and w2.shape == (D, D), (w1.shape, w2.shape)
    assert b1.shape == (1, D) and b2.shape == (1, D), (b1.shape, b2.shape)

    x2 = x.reshape(-1, D)
    rows = x2.shape[0]
    if rows == 0:                                   # empty-input guard
        return x

    xb = x2.dtype.itemsize
    wb = w1.dtype.itemsize

    # ---- row-tile selection ----------------------------------------------
    tile = min(tm, _round_up(rows, 8))
    # Keep >= ~8 grid steps (>= ~4 per TensorCore under v7x megacore sharding)
    # once there is enough work, but never drop below 256 rows (fills the MXU
    # M dimension on v6e/v7x; 128 already fills it on v5e).
    if rows >= 2 * 256 and rows // tile < 8:
        tile = min(tm, max(256, _round_up(pl.cdiv(rows, 8), 8)))
    grid_m = pl.cdiv(rows, tile)                    # ragged last block is masked

    # ---- resident-weight VMEM footprint / path selection -------------------
    resident_bytes = (
        2 * tile * D * xb          # x, double-buffered
        + 2 * tile * D * xb        # out, double-buffered
        + 2 * D * D * wb           # w1 + w2, single-buffered (grid-invariant)
        + 4 * D * 4                # biases (f32)
        + tile * D * 4             # f32 hidden activation inside the kernel
    )
    use_htiled = hidden_tile is not None or resident_bytes > vmem_budget_bytes

    th = hidden_tile
    if use_htiled and th is None:
        for cand in (1024, 512, 256, 128):
            if D % cand == 0:
                th = cand
                break
    if use_htiled and (th is None or D % th != 0 or th % 128 != 0):
        # TODO(synk): ragged hidden tiles (D not a multiple of 128); fall back
        # to the resident-weight path for now.
        use_htiled = False

    cost = pl.CostEstimate(
        flops=4 * rows * D * D,
        transcendentals=0,
        bytes_accessed=rows * D * 2 * xb + 2 * D * D * wb + 2 * D * 4)

    if use_htiled:
        est = (4 * tile * D * xb                    # x + out, double-buffered
               + 2 * D * th * wb + 2 * th * D * wb  # streamed weight tiles
               + 2 * (th + D) * 4                   # bias tiles
               + tile * D * 4)                      # f32 accumulator scratch
        vmem_limit = int(min(max(est * 5 // 4, 32 * 2**20), 128 * 2**20))
        out2 = _forward_hidden_tiled(x2, w1, b1, w2, b2, tile=tile,
                                     grid_m=grid_m, th=th,
                                     vmem_limit=vmem_limit, cost=cost)
    else:
        vmem_limit = int(min(max(resident_bytes * 5 // 4, 32 * 2**20),
                             128 * 2**20))
        try:
            out2 = _forward_resident(x2, w1, b1, w2, b2, tile=tile,
                                     grid_m=grid_m, vmem_limit=vmem_limit,
                                     cost=cost, single_buffer_weights=True)
        except Exception:
            # pipeline_mode=pl.Buffered(1) unsupported on this JAX version:
            # fall back to default double-buffered (still grid-resident) weights.
            out2 = _forward_resident(x2, w1, b1, w2, b2, tile=tile,
                                     grid_m=grid_m, vmem_limit=vmem_limit,
                                     cost=cost, single_buffer_weights=False)

    return out2.reshape(orig_shape)


if __name__ == "__main__":
    # Small deterministic config consistent with the module (d_model = D).
    # rows = 600 is deliberately NOT a multiple of the row tile so the masked
    # ragged last block (no pad / slice) is exercised.
    B, S, D = 2, 300, 256

    key = jax.random.PRNGKey(0)
    kx, kw1, kb1, kw2, kb2 = jax.random.split(key, 5)

    x = jax.random.normal(kx, (B, S, D), dtype=jnp.float32)

    # nn.Linear-style init (uniform +/- 1/sqrt(fan_in)); stored as (D_in, D_out).
    bound = 1.0 / (D ** 0.5)
    w1_f32 = jax.random.uniform(kw1, (D, D), minval=-bound, maxval=bound,
                                dtype=jnp.float32)
    b1 = jax.random.uniform(kb1, (1, D), minval=-bound, maxval=bound,
                            dtype=jnp.float32)
    w2_f32 = jax.random.uniform(kw2, (D, D), minval=-bound, maxval=bound,
                                dtype=jnp.float32)
    b2 = jax.random.uniform(kb2, (1, D), minval=-bound, maxval=bound,
                            dtype=jnp.float32)

    # bf16 weights: half the weight HBM bytes, full-rate MXU; f32 accumulation
    # (intentional precision contract, ~1e-2 relative vs the f32 module).
    w1 = w1_f32.astype(jnp.bfloat16)
    w2 = w2_f32.astype(jnp.bfloat16)

    # Pure-JAX f32 reference.
    x_flat = x.reshape(-1, D)
    ref = (jnp.maximum(x_flat @ w1_f32 + b1, 0.0) @ w2_f32 + b2).reshape(B, S, D)

    # 1) Resident-weight path, f32 activation I/O.
    out = titans_core_forward(x, w1, b1, w2, b2)
    jax.block_until_ready(out)
    assert out.shape == x.shape and out.dtype == x.dtype
    assert jnp.allclose(out, ref, atol=3e-2, rtol=3e-2), \
        float(jnp.max(jnp.abs(out - ref)))

    # 2) bf16 activation I/O (recommended when the surrounding model allows it:
    #    halves the HBM-bound activation traffic; accumulation stays f32).
    out_bf16 = titans_core_forward(x.astype(jnp.bfloat16), w1, b1, w2, b2)
    jax.block_until_ready(out_bf16)
    assert out_bf16.dtype == jnp.bfloat16
    assert jnp.allclose(out_bf16.astype(jnp.float32), ref, atol=8e-2, rtol=8e-2)

    # 3) Hidden-dim-tiled large-D path (forced at small D here to validate the
    #    code path that v7x needs once d_model >= ~4096).
    out_ht = titans_core_forward(x, w1, b1, w2, b2, hidden_tile=128)
    jax.block_until_ready(out_ht)
    assert jnp.allclose(out_ht, ref, atol=3e-2, rtol=3e-2), \
        float(jnp.max(jnp.abs(out_ht - ref)))

    print("KERNEL_OK")
</pallas_src>

<mosaic_0001>
module attributes {stable_mosaic.version = 11 : i64} {
  func.func @_mlp_kernel_resident(%arg0: i32, %arg1: memref<256x256xf32, #tpu.memory_space<vmem>>, %arg2: memref<256x256xbf16, #tpu.memory_space<vmem>>, %arg3: memref<1x256xf32, #tpu.memory_space<vmem>>, %arg4: memref<256x256xbf16, #tpu.memory_space<vmem>>, %arg5: memref<1x256xf32, #tpu.memory_space<vmem>>, %arg6: memref<256x256xf32, #tpu.memory_space<vmem>>) attributes {dimension_semantics = [#tpu.dimension_semantics<parallel>], iteration_bounds = array<i64: 3>, scalar_prefetch = 0 : i64, scratch_operands = 0 : i64, tpu.core_type = #tpu.core_type<tc>, window_params = [{transform_indices = @transform_0, window_bounds = array<i64: 256, 256>}, {pipeline_mode = #tpu.pipeline_mode<synchronous>, transform_indices = @transform_1, window_bounds = array<i64: 256, 256>}, {pipeline_mode = #tpu.pipeline_mode<synchronous>, transform_indices = @transform_2, window_bounds = array<i64: 1, 256>}, {pipeline_mode = #tpu.pipeline_mode<synchronous>, transform_indices = @transform_3, window_bounds = array<i64: 256, 256>}, {pipeline_mode = #tpu.pipeline_mode<synchronous>, transform_indices = @transform_4, window_bounds = array<i64: 1, 256>}, {transform_indices = @transform_5, window_bounds = array<i64: 256, 256>}]} {
    %c0 = arith.constant 0 : index
    %c0_0 = arith.constant 0 : index
    %0 = vector.load %arg1[%c0, %c0_0] : memref<256x256xf32, #tpu.memory_space<vmem>>, vector<256x256xf32>
    %1 = arith.truncf %0 : vector<256x256xf32> to vector<256x256xbf16>
    %c0_1 = arith.constant 0 : index
    %c0_2 = arith.constant 0 : index
    %2 = vector.load %arg2[%c0_1, %c0_2] : memref<256x256xbf16, #tpu.memory_space<vmem>>, vector<256x256xbf16>
    %cst = arith.constant dense<0.000000e+00> : vector<256x256xf32>
    %3 = tpu.matmul %1, %2, %cst {dimension_numbers = #tpu.dot_dimension_numbers<[1], [0], [0], [1], [0, 0, 1, 1], [], []>} : vector<256x256xbf16>, vector<256x256xbf16>, vector<256x256xf32> -> vector<256x256xf32>
    %c0_3 = arith.constant 0 : index
    %c0_4 = arith.constant 0 : index
    %4 = vector.load %arg3[%c0_3, %c0_4] : memref<1x256xf32, #tpu.memory_space<vmem>>, vector<1x256xf32>
    %5 = vector.broadcast %4 : vector<1x256xf32> to vector<256x256xf32>
    %6 = arith.addf %3, %5 : vector<256x256xf32>
    %cst_5 = arith.constant 0.000000e+00 : f32
    %7 = vector.broadcast %cst_5 : f32 to vector<256x256xf32>
    %8 = arith.maximumf %6, %7 : vector<256x256xf32>
    %9 = arith.truncf %8 : vector<256x256xf32> to vector<256x256xbf16>
    %c0_6 = arith.constant 0 : index
    %c0_7 = arith.constant 0 : index
    %10 = vector.load %arg4[%c0_6, %c0_7] : memref<256x256xbf16, #tpu.memory_space<vmem>>, vector<256x256xbf16>
    %cst_8 = arith.constant dense<0.000000e+00> : vector<256x256xf32>
    %11 = tpu.matmul %9, %10, %cst_8 {dimension_numbers = #tpu.dot_dimension_numbers<[1], [0], [0], [1], [0, 0, 1, 1], [], []>} : vector<256x256xbf16>, vector<256x256xbf16>, vector<256x256xf32> -> vector<256x256xf32>
    %c0_9 = arith.constant 0 : index
    %c0_10 = arith.constant 0 : index
    %12 = vector.load %arg5[%c0_9, %c0_10] : memref<1x256xf32, #tpu.memory_space<vmem>>, vector<1x256xf32>
    %13 = vector.broadcast %12 : vector<1x256xf32> to vector<256x256xf32>
    %14 = arith.addf %11, %13 : vector<256x256xf32>
    %c0_11 = arith.constant 0 : index
    %c0_12 = arith.constant 0 : index
    %15 = vector.load %arg6[%c0_11, %c0_12] : memref<256x256xf32, #tpu.memory_space<vmem>>, vector<256x256xf32>
    tpu.vector_store %arg6[%c0_11, %c0_12], %14 {strides = array<i32>} : memref<256x256xf32, #tpu.memory_space<vmem>>, vector<256x256xf32>,
    return
  }
  func.func @transform_0(%arg0: i32) -> (i32, i32) {
    %c0_i32 = arith.constant 0 : i32
    %c0_i32_0 = arith.constant 0 : i32
    return %arg0, %c0_i32 : i32, i32
  }
  func.func @transform_1(%arg0: i32) -> (i32, i32) {
    %c0_i32 = arith.constant 0 : i32
    %c0_i32_0 = arith.constant 0 : i32
    %c0_i32_1 = arith.constant 0 : i32
    return %c0_i32, %c0_i32_0 : i32, i32
  }
  func.func @transform_2(%arg0: i32) -> (i32, i32) {
    %c0_i32 = arith.constant 0 : i32
    %c0_i32_0 = arith.constant 0 : i32
    %c0_i32_1 = arith.constant 0 : i32
    return %c0_i32, %c0_i32_0 : i32, i32
  }
  func.func @transform_3(%arg0: i32) -> (i32, i32) {
    %c0_i32 = arith.constant 0 : i32
    %c0_i32_0 = arith.constant 0 : i32
    %c0_i32_1 = arith.constant 0 : i32
    return %c0_i32, %c0_i32_0 : i32, i32
  }
  func.func @transform_4(%arg0: i32) -> (i32, i32) {
    %c0_i32 = arith.constant 0 : i32
    %c0_i32_0 = arith.constant 0 : i32
    %c0_i32_1 = arith.constant 0 : i32
    return %c0_i32, %c0_i32_0 : i32, i32
  }
  func.func @transform_5(%arg0: i32) -> (i32, i32) {
    %c0_i32 = arith.constant 0 : i32
    %c0_i32_0 = arith.constant 0 : i32
    return %arg0, %c0_i32 : i32, i32
  }
}

module attributes {stable_mosaic.version = 11 : i64} {
  func.func @_mlp_kernel_resident(%arg0: i32, %arg1: memref<256x256xf32, #tpu.memory_space<vmem>>, %arg2: memref<256x256xbf16, #tpu.memory_space<vmem>>, %arg3: memref<1x256xf32, #tpu.memory_space<vmem>>, %arg4: memref<256x256xbf16, #tpu.memory_space<vmem>>, %arg5: memref<1x256xf32, #tpu.memory_space<vmem>>, %arg6: memref<256x256xf32, #tpu.memory_space<vmem>>) attributes {dimension_semantics = [#tpu.dimension_semantics<parallel>], iteration_bounds = array<i64: 3>, scalar_prefetch = 0 : i64, scratch_operands = 0 : i64, tpu.core_type = #tpu.core_type<tc>, window_params = [{transform_indices = @transform_0, window_bounds = array<i64: 256, 256>}, {pipeline_mode = #tpu.pipeline_mode<synchronous>, transform_indices = @transform_1, window_bounds = array<i64: 256, 256>}, {pipeline_mode = #tpu.pipeline_mode<synchronous>, transform_indices = @transform_2, window_bounds = array<i64: 1, 256>}, {pipeline_mode = #tpu.pipeline_mode<synchronous>, transform_indices = @transform_3, window_bounds = array<i64: 256, 256>}, {pipeline_mode = #tpu.pipeline_mode<synchronous>, transform_indices = @transform_4, window_bounds = array<i64: 1, 256>}, {transform_indices = @transform_5, window_bounds = array<i64: 256, 256>}]} {
    %c0 = arith.constant 0 : index
    %c0_0 = arith.constant 0 : index
    %0 = vector.load %arg1[%c0, %c0_0] : memref<256x256xf32, #tpu.memory_space<vmem>>, vector<256x256xf32>
    %1 = arith.truncf %0 : vector<256x256xf32> to vector<256x256xbf16>
    %c0_1 = arith.constant 0 : index
    %c0_2 = arith.constant 0 : index
    %2 = vector.load %arg2[%c0_1, %c0_2] : memref<256x256xbf16, #tpu.memory_space<vmem>>, vector<256x256xbf16>
    %cst = arith.constant dense<0.000000e+00> : vector<256x256xf32>
    %3 = tpu.matmul %1, %2, %cst {dimension_numbers = #tpu.dot_dimension_numbers<[1], [0], [0], [1], [0, 0, 1, 1], [], []>} : vector<256x256xbf16>, vector<256x256xbf16>, vector<256x256xf32> -> vector<256x256xf32>
    %c0_3 = arith.constant 0 : index
    %c0_4 = arith.constant 0 : index
    %4 = vector.load %arg3[%c0_3, %c0_4] : memref<1x256xf32, #tpu.memory_space<vmem>>, vector<1x256xf32>
    %5 = vector.broadcast %4 : vector<1x256xf32> to vector<256x256xf32>
    %6 = arith.addf %3, %5 : vector<256x256xf32>
    %cst_5 = arith.constant 0.000000e+00 : f32
    %7 = vector.broadcast %cst_5 : f32 to vector<256x256xf32>
    %8 = arith.maximumf %6, %7 : vector<256x256xf32>
    %9 = arith.truncf %8 : vector<256x256xf32> to vector<256x256xbf16>
    %c0_6 = arith.constant 0 : index
    %c0_7 = arith.constant 0 : index
    %10 = vector.load %arg4[%c0_6, %c0_7] : memref<256x256xbf16, #tpu.memory_space<vmem>>, vector<256x256xbf16>
    %cst_8 = arith.constant dense<0.000000e+00> : vector<256x256xf32>
    %11 = tpu.matmul %9, %10, %cst_8 {dimension_numbers = #tpu.dot_dimension_numbers<[1], [0], [0], [1], [0, 0, 1, 1], [], []>} : vector<256x256xbf16>, vector<256x256xbf16>, vector<256x256xf32> -> vector<256x256xf32>
    %c0_9 = arith.constant 0 : index
    %c0_10 = arith.constant 0 : index
    %12 = vector.load %arg5[%c0_9, %c0_10] : memref<1x256xf32, #tpu.memory_space<vmem>>, vector<1x256xf32>
    %13 = vector.broadcast %12 : vector<1x256xf32> to vector<256x256xf32>
    %14 = arith.addf %11, %13 : vector<256x256xf32>
    %c0_11 = arith.constant 0 : index
    %c0_12 = arith.constant 0 : index
    %15 = vector.load %arg6[%c0_11, %c0_12] : memref<256x256xf32, #tpu.memory_space<vmem>>, vector<256x256xf32>
    tpu.vector_store %arg6[%c0_11, %c0_12], %14 {strides = array<i32>} : memref<256x256xf32, #tpu.memory_space<vmem>>, vector<256x256xf32>,
    return
  }
  func.func @transform_0(%arg0: i32) -> (i32, i32) {
    %c0_i32 = arith.constant 0 : i32
    %c0_i32_0 = arith.constant 0 : i32
    return %arg0, %c0_i32 : i32, i32
  }
  func.func @transform_1(%arg0: i32) -> (i32, i32) {
    %c0_i32 = arith.constant 0 : i32
    %c0_i32_0 = arith.constant 0 : i32
    %c0_i32_1 = arith.constant 0 : i32
    return %c0_i32, %c0_i32_0 : i32, i32
  }
  func.func @transform_2(%arg0: i32) -> (i32, i32) {
    %c0_i32 = arith.constant 0 : i32
    %c0_i32_0 = arith.constant 0 : i32
    %c0_i32_1 = arith.constant 0 : i32
    return %c0_i32, %c0_i32_0 : i32, i32
  }
  func.func @transform_3(%arg0: i32) -> (i32, i32) {
    %c0_i32 = arith.constant 0 : i32
    %c0_i32_0 = arith.constant 0 : i32
    %c0_i32_1 = arith.constant 0 : i32
    return %c0_i32, %c0_i32_0 : i32, i32
  }
  func.func @transform_4(%arg0: i32) -> (i32, i32) {
    %c0_i32 = arith.constant 0 : i32
    %c0_i32_0 = arith.constant 0 : i32
    %c0_i32_1 = arith.constant 0 : i32
    return %c0_i32, %c0_i32_0 : i32, i32
  }
  func.func @transform_5(%arg0: i32) -> (i32, i32) {
    %c0_i32 = arith.constant 0 : i32
    %c0_i32_0 = arith.constant 0 : i32
    return %arg0, %c0_i32 : i32, i32
  }
}

</mosaic_0001>

<bundles_post_ra>
// kernel: tpu_custom_call.1
= control target key start
LH: loop header
LB: loop body
LE: loop exit
PB: predicated region body
PF: predicated region fallthrough
CT: control target
= control target key end

     0   :  { %10 = vsyncpa [#allocation3], 0  ;;  %s2447_s0 = inlined_call_operand.hbm [shape: f32[600,256], index: 0, kind: input, shape index: {}]   ;;  %s2448_s1 = inlined_call_operand.hbm [shape: bf16[256,256], index: 1, kind: input, shape index: {}]   ;;  %s2449_s2 = inlined_call_operand.vmem [shape: f32[1,256], index: 2, kind: input, shape index: {}]   ;;  %s2450_s3 = inlined_call_operand.hbm [shape: bf16[256,256], index: 3, kind: input, shape index: {}]   ;;  %s2451_s4 = inlined_call_operand.vmem [shape: f32[1,256], index: 4, kind: input, shape index: {}]   ;;  %s2452_s5 = inlined_call_operand.hbm [shape: f32[600,256], index: 5, kind: output, shape index: {}]  }
   0x1   :  { %12 = vsyncpa [#allocation3 + $0x1], 0 }
   0x2   :  { %13 = vsyncpa [#allocation6], 0 }
   0x3   :  { %14 = vsyncpa [#allocation4], 0 }
   0x4   :  { %16 = vsyncpa [#allocation4 + $0x1], 0  ;;  %s1914_s18 = smov 0   ;;  %s1916_s19 = smov 0  }
   0x5   :  { %s1918_s20 = smov 0   ;;  %s1920_s21 = smov 0  }
   0x6 LB: > { %s1935_s22 = sadd.s32 4294967295, %s1872_s21   ;;  %s1456_s23 = sadd.s32 4294967294, %s1872_s21   ;;  %s1872_s21 = sphi %s1920_s21, %s2474_s21   ;;  %s1868_s20 = sphi %s1918_s20, %s2473_s20   ;;  %s1864_s19 = sphi %s1916_s19, %s2472_s19   ;;  %s1860_s18 = sphi %s1914_s18, %s2471_s18  }
   0x7   : > { %s1939_s24 = sadd.s32 1, %s1872_s21   ;;  %s29_s25 = sadd.s32 1, %s1868_s20 }
   0x8   : > { %s26_s26 = ssub.s32 %s1872_s21, %s1939_s24  ;;  %p36_p0 = scmp.ne.s32.totalorder %s1868_s20, %s1864_s19 }
   0x9   : > { %p27_p1 = scmp.eq.s32.totalorder %s26_s26, 0  ;;  %p37_p2 = scmp.eq.s32.totalorder %s1872_s21, 0 }
   0xa   : > { %p42_p3 = scmp.ne.s32.totalorder %s1864_s19, %s1860_s18  ;;  %p2453_p4 = scmp.eq.s32.totalorder %s1935_s22, 0 }
   0xb   : > { %s1951_s27 = scalar_select %p27_p1, %s1868_s20, %s29_s25  }
   0xc   : > { %p1953_p5 = por %p37_p2, %p36_p0  ;;  %p1959_p6 = por %p2453_p4, %p42_p3 }
   0xd   : > { %2456 = sst [smem:[#allocation12_spill]] %s1951_s27  ;;  %p150_p7 = scmp.eq.s32.totalorder %s1935_s22, 2 }
   0xe   : > { %s2457_s28 = scalar_select %p1953_p5, 1, 0 }
   0xf   : > { %s2458_s29 = scalar_select %p1959_p6, 1, 0 }
  0x10   : > { %p156_p8 = scmp.eq.s32.totalorder %s1456_s23, 2  ;;  %p1457_p9 = scmp.ge.s32.totalorder %s1872_s21, 1 }
  0x11   : > { %p163_p10 = scmp.lt.s32.totalorder %s1872_s21, 4  ;;  %p1966_p11 = por %p150_p7, %p36_p0 }
  0x12   : > { %p1970_p12 = por %p156_p8, %p42_p3  ;;  %s1874_s8 = smov [#allocation5]  }
  0x13   : > { %s2459_s30 = scalar_select %p1966_p11, 1, 0 }
  0x14   : > { %s2460_s6 = scalar_select %p1970_p12, 1, 0 }
  0x15   : > { %p1974_p13 = pnand %p1457_p9, %p163_p10  ;;  %s175_s9 = sshll.u32 %s1874_s8, 4  ;;  %s176_s9 = int_to_ptr.vmem [resolvable:$true] %s175_s9 }
  0x16   : > { %s1875_s11 = smov [#allocation7]   ;;  %s1718_s15 = scalar_lea.hbm %s2448_s1, 4096 }
  0x17   : > { %s2461_s7 = scalar_select %p1974_p13, 1, 0 }
  0x18   : > { %p1566_p1 = pneg %p1974_p13  ;;  %s191_s12 = sshll.u32 %s1875_s11, 4  ;;  %s1986_s12 = int_to_ptr.vmem [resolvable:$true] %s191_s12 }
  0x19   : > { %p1719_p0 = scmp.ne.s32.totalorder %s2448_s1, %s1718_s15  ;;  %p1725_p9 = scmp.lt.u32.totalorder %s1718_s15, %s2448_s1 }
  0x1a   : > { %p1982_p2 = pnand %p1566_p1, %p2453_p4 }
  0x1c   : > { %p1720_p3 = pneg %p1982_p2 }
  0x1e   : > { %p1721_p7 = pnand %p1720_p3, %p1719_p0 }
  0x20   : > { %p1722_p8 = pneg %p1721_p7 }
  0x22   : > { %p1727_p10 = pnand %p1725_p9, %p1722_p8 }
  0x24   : > { %1730 = shalt.err (!%p1727_p10)
}
  0x25   : > { %s1731_s26 = scalar_lea.vmem %s176_s9, 4096  ;;  %p1739_p11 = scmp.lt.s32.totalorder %s176_s9, %s176_s9 }
  0x26   : > { %p1732_p1 = scmp.ne.s32.totalorder %s176_s9, %s1731_s26  ;;  %p1740_p6 = scmp.lt.s32.totalorder %s1731_s26, %s1731_s26 }
  0x28   : > { %p1734_p4 = pnand %p1732_p1, %p1720_p3  ;;  %p1741_p13 = por %p1740_p6, %p1739_p11 }
  0x2a   : > { %p1735_p12 = pneg %p1734_p4 }
  0x2c   : > { %p1742_p5 = pnand %p1741_p13, %p1735_p12 }
  0x2e   : > { %1745 = shalt.err (!%p1742_p5)
}
  0x2f   : > { %s1876_s8 = smov 128   ;;  %s1877_s11 = smov 8  }
  0x30   : > { %1569 = dma.hbm_to_vmem [thread:$0]  (!%p1982_p2), %s2448_s1, 4096, %s176_s9, [#allocation6], %s1876_s8, %s1876_s8, %s1877_s11  }
  0x31   : > { %s1746_s17 = scalar_lea.hbm %s2450_s3, 4096 }
  0x32   : > { %p1747_p4 = scmp.ne.s32.totalorder %s2450_s3, %s1746_s17  ;;  %p1753_p11 = scmp.lt.u32.totalorder %s1746_s17, %s2450_s3 }
  0x34   : > { %p1749_p5 = pnand %p1747_p4, %p1720_p3 }
  0x36   : > { %p1750_p6 = pneg %p1749_p5 }
  0x38   : > { %p1755_p12 = pnand %p1753_p11, %p1750_p6 }
  0x3a   : > { %1758 = shalt.err (!%p1755_p12)
}
  0x3b   : > { %s1759_s9 = scalar_lea.vmem %s1986_s12, 4096  ;;  %p1767_p8 = scmp.lt.s32.totalorder %s1986_s12, %s1986_s12 }
  0x3c   : > { %p1760_p13 = scmp.ne.s32.totalorder %s1986_s12, %s1759_s9  ;;  %p1768_p9 = scmp.lt.s32.totalorder %s1759_s9, %s1759_s9 }
  0x3e   : > { %p1762_p0 = pnand %p1760_p13, %p1720_p3  ;;  %p1769_p10 = por %p1768_p9, %p1767_p8 }
  0x40   : > { %p1763_p7 = pneg %p1762_p0 }
  0x42   : > { %p1770_p1 = pnand %p1769_p10, %p1763_p7 }
  0x44   : > { %1773 = shalt.err (!%p1770_p1)
}
  0x45   : > { %1572 = dma.hbm_to_vmem [thread:$0]  (!%p1982_p2), %s2450_s3, 4096, %s1986_s12, [#allocation6], %s1876_s8, %s1876_s8, %s1877_s11  }
  0x46   : > { %p1460_p4 = scmp.ge.s32.totalorder %s1872_s21, 3 }
  0x47   : > { %p2463_p5 = scmp.ne.s32.totalorder (!%p1460_p4), %s2457_s28, 0 }
  0x48   : > { %204 = sbr.rel (%p1460_p4) target bundleno = 114 (0x72), region = 32 }
  0x4f   : > { %207 = sbr.rel (!%p2463_p5) target bundleno = 114 (0x72), region = 36  ;;  %s208_s14 = sand.u32 (%p2463_p5), 1, %s1868_s20  }
  0x50   : > { %s1462_s15 = sshll.u32 (%p2463_p5), %s1872_s21, 5  ;;  %s1461_s16 = sshll.u32 (%p2463_p5), %s208_s14, 9 }
  0x51   : > { %s214_s17 = ssub.s32 (%p2463_p5), 75, %s1462_s15  ;;  %s2043_s25 = scalar_lea.sflag (%p2463_p5), [#allocation3], %s208_s14 }
  0x52   : > { %p215_p3 = scmp.lt.s32.totalorder (%p2463_p5), %s214_s17, 32  ;;  %s212_s12 = scalar_lea.vmem (%p2463_p5), [#allocation2], %s1461_s16 }
  0x56   : > { %s2476_s17 = smov (!%p215_p3, %s214_s17), 32 }
  0x57   : > { %s2040_s10 = sshll.u32 %s2476_s17, 8 }
  0x58   : > { %s220_s23 = ssub.s32 8192, %s2040_s10 }
  0x59   : > { %221 = vsyncadd %s2043_s25, %s220_s23  ;;  %p1465_p2 = scmp.ne.s32.totalorder %s2040_s10, 0  ;;  %s1552_s28 = sshll.u32 %s1872_s21, 13 }
  0x5a   : > { %s2051_s26 = scalar_lea.hbm %s2447_s0, %s1552_s28  ;;  %s227_s9 = sshll.u32 %s212_s12, 4  ;;  %s2053_s9 = int_to_ptr.vmem [resolvable:$true] %s227_s9 }
  0x5b   : > { %s1774_s27 = scalar_lea.hbm %s2051_s26, %s2040_s10  ;;  %s1778_s15 = scalar_lea.hbm %s2447_s0, 19200 }
  0x5c   : > { %p1775_p6 = scmp.ne.s32.totalorder %s2051_s26, %s1774_s27  ;;  %p1779_p13 = scmp.lt.u32.totalorder %s2051_s26, %s2447_s0 }
  0x5d   : > { %p1780_p0 = scmp.lt.u32.totalorder %s1778_s15, %s1774_s27  ;;  %p1782_p8 = scmp.lt.u32.totalorder %s1774_s27, %s2051_s26 }
  0x5e   : > { %p1776_p11 = pnand %p1775_p6, %p1465_p2 }
  0x5f   : > { %p1781_p7 = por %p1780_p0, %p1779_p13 }
  0x60   : > { %p1777_p12 = pneg %p1776_p11 }
  0x61   : > { %p1783_p9 = por %p1782_p8, %p1781_p7 }
  0x63   : > { %p1784_p10 = pnand %p1783_p9, %p1777_p12 }
  0x65   : > { %1787 = shalt.err (!%p1784_p10)
}
  0x66   : > { %s1788_s23 = scalar_lea.vmem %s2053_s9, %s2040_s10  ;;  %s1878_s12 = smov [#allocation2]  }
  0x67   : > { %p1789_p1 = scmp.ne.s32.totalorder %s2053_s9, %s1788_s23  ;;  %s1792_s28 = sshll.u32 %s1878_s12, 4  ;;  %s1793_s28 = int_to_ptr.vmem [resolvable:$false] %s1792_s28 }
  0x68   : > { %s1794_s8 = scalar_lea.vmem %s1793_s28, 16384  ;;  %p1795_p3 = scmp.lt.s32.totalorder %s2053_s9, %s1793_s28 }
  0x69   : > { %p1790_p4 = pnand %p1789_p1, %p1465_p2  ;;  %p1796_p6 = scmp.lt.s32.totalorder %s1794_s8, %s1788_s23 }
  0x6b   : > { %p1791_p5 = pneg %p1790_p4  ;;  %p1797_p11 = por %p1796_p6, %p1795_p3 }
  0x6d   : > { %p1798_p13 = pnand %p1797_p11, %p1791_p5 }
  0x6f   : > { %1801 = shalt.err (!%p1798_p13)
}
  0x70   : > { %s1879_s11 = smov 256   ;;  %s1880_s27 = smov 16  }
  0x71   : > { %233 = dma.hbm_to_vmem [thread:$0]  (%p1465_p2), %s2051_s26, %s2040_s10, %s2053_s9, %s2043_s25, %s1879_s11, %s1879_s11, %s1880_s27  }
  0x72 PF: > { %p2464_p12 = scmp.ne.s32.totalorder %s2461_s7, 0 }
  0x73   : > { %s2083_s13 = sand.u32 (!%p2464_p12), 1, %s1864_s19   ;;  %p2465_p0 = scmp.ne.s32.totalorder (!%p2464_p12), %s2458_s29, 0 }
  0x74   : > { %239 = sbr.rel (%p2464_p12) target bundleno = 780 (0x30c), region = 40  ;;  %s1471_s14 = sshll.u32 (!%p2464_p12), %s2083_s13, 9 }
  0x75   : > { %s242_s15 = scalar_lea.sflag (!%p2464_p12), [#allocation3], %s2083_s13  ;;  %s2089_s16 = scalar_lea.vmem (!%p2464_p12), [#allocation2], %s1471_s14 }
  0x7b   : > { %1847 = dma.done.wait (%p2465_p0), %s242_s15, 8192  }
  0x7c   : > { %1849 = vsyncadd (%p2465_p0), %s242_s15, 4294959104  ;;  %p2466_p2 = scmp.eq.s32.totalorder %s1935_s22, 0 }
  0x7e   : > { %1851 = dma.done.wait (%p2466_p2), [#allocation6], 8192   ;;  %p2467_p7 = pmov %p2466_p2 }
  0x7f   : > { %v1622_v0 = vld [vmem:[#allocation5 + $0x4] ss:$8 sps:$4 sm:$0xff]   ;;  %v1624_v1 = vld [vmem:[#allocation5] ss:$8 sps:$4 sm:$0xff]   ;;  %v1625_v2 = vld [vmem:[#allocation5 + $0x14] ss:$8 sps:$4 sm:$0xff]  }
  0x80   : > { %1853 = vsyncadd (%p2467_p7), [#allocation6], 4294959104  ;;  %592 = vmatprep.subr.bf16.mxu0 %v1622_v0  ;;  %v1627_v3 = vld [vmem:[#allocation5 + $0x10] ss:$8 sps:$4 sm:$0xff]   ;;  %v1628_v4 = vld [vmem:[#allocation5 + $0x24] ss:$8 sps:$4 sm:$0xff]  }
  0x81   : > { %593 = vmatpush1.bf16.msra.mxu0 %v1624_v1  ;;  %v1630_v5 = vld [vmem:[#allocation5 + $0x20] ss:$8 sps:$4 sm:$0xff]   ;;  %v1631_v6 = vld [vmem:[#allocation5 + $0x34] ss:$8 sps:$4 sm:$0xff]   ;;  %v1633_v7 = vld [vmem:[#allocation5 + $0x30] ss:$8 sps:$4 sm:$0xff]  }
  0x82   : > { %594 = vmatprep.subr.bf16.mxu0 %v1625_v2  ;;  %v1634_v8 = vld [vmem:[#allocation5 + $0x44] ss:$8 sps:$4 sm:$0xff]   ;;  %v1636_v9 = vld [vmem:[#allocation5 + $0x40] ss:$8 sps:$4 sm:$0xff]   ;;  %v1637_v10 = vld [vmem:[#allocation5 + $0x54] ss:$8 sps:$4 sm:$0xff]  }
  0x83   : > { %v1639_v11 = vld [vmem:[#allocation5 + $0x50] ss:$8 sps:$4 sm:$0xff]   ;;  %v1640_v12 = vld [vmem:[#allocation5 + $0x64] ss:$8 sps:$4 sm:$0xff]   ;;  %v1642_v16 = vld [vmem:[#allocation5 + $0x60] ss:$8 sps:$4 sm:$0xff]  }
  0x84   : > { %v293_v13 = vld [vmem:[%s2089_s16 + $0x8] sm:$0xff]  ;;  %v295_v14 = vld [vmem:[%s2089_s16 + $0x18] sm:$0xff]  ;;  %v292_v38 = vld [vmem:[%s2089_s16] sm:$0xff]  ;;  %s2257_s26 = scalar_lea.vmem [#allocation8], %s1471_s14  ;;  %s1343_s9 = scalar_lea.sflag [#allocation4], %s2083_s13 }
  0x85   : > { %595 = vmatpush1.bf16.msra.mxu0 %v1627_v3  ;;  %v357_v15 = vpack.c.bf16 %v295_v14, %v293_v13  ;;  %v1643_v17 = vld [vmem:[#allocation5 + $0x74] ss:$8 sps:$4 sm:$0xff]   ;;  %v1645_v18 = vld [vmem:[#allocation5 + $0x70] ss:$8 sps:$4 sm:$0xff]   ;;  %v1646_v19 = vld [vmem:[#allocation5 + $0x84] ss:$8 sps:$4 sm:$0xff]  }
  0x86   : > { %596 = vmatprep.subr.bf16.mxu0 %v1628_v4  ;;  %v1648_v20 = vld [vmem:[#allocation5 + $0x80] ss:$8 sps:$4 sm:$0xff]   ;;  %v1649_v21 = vld [vmem:[#allocation5 + $0x94] ss:$8 sps:$4 sm:$0xff]   ;;  %v1651_v22 = vld [vmem:[#allocation5 + $0x90] ss:$8 sps:$4 sm:$0xff]  }
  0x87   : > { %624 = vmatprep.mubr.bf16.mxu0 %v357_v15  ;;  %v1652_v23 = vld [vmem:[#allocation5 + $0xa4] ss:$8 sps:$4 sm:$0xff]   ;;  %v1654_v24 = vld [vmem:[#allocation5 + $0xa0] ss:$8 sps:$4 sm:$0xff]   ;;  %v1655_v25 = vld [vmem:[#allocation5 + $0xb4] ss:$8 sps:$4 sm:$0xff]  }
  0x88   : > { %v1657_v26 = vld [vmem:[#allocation5 + $0xb0] ss:$8 sps:$4 sm:$0xff]   ;;  %v1658_v27 = vld [vmem:[#allocation5 + $0xc4] ss:$8 sps:$4 sm:$0xff]   ;;  %v1660_v28 = vld [vmem:[#allocation5 + $0xc0] ss:$8 sps:$4 sm:$0xff]  }
  0x89   : > { %597 = vmatpush1.bf16.msra.mxu0 %v1630_v5  ;;  %v1661_v29 = vld [vmem:[#allocation5 + $0xd4] ss:$8 sps:$4 sm:$0xff]   ;;  %v1663_v30 = vld [vmem:[#allocation5 + $0xd0] ss:$8 sps:$4 sm:$0xff]   ;;  %v1664_v31 = vld [vmem:[#allocation5 + $0xe4] ss:$8 sps:$4 sm:$0xff]  }
  0x8a   : > { %598 = vmatprep.subr.bf16.mxu0 %v1631_v6  ;;  %v1666_v32 = vld [vmem:[#allocation5 + $0xe0] ss:$8 sps:$4 sm:$0xff]   ;;  %v1667_v33 = vld [vmem:[#allocation5 + $0xf4] ss:$8 sps:$4 sm:$0xff]   ;;  %v1670_v34 = vld [vmem:[#allocation7 + $0x4] ss:$8 sps:$4 sm:$0xff]  }
  0x8b   : > { %v1672_v35 = vld [vmem:[#allocation7] ss:$8 sps:$4 sm:$0xff]   ;;  %v1673_v36 = vld [vmem:[#allocation7 + $0x14] ss:$8 sps:$4 sm:$0xff]   ;;  %v1669_v37 = vld [vmem:[#allocation5 + $0xf0] ss:$8 sps:$4 sm:$0xff]   ;;  %1085 = vmatprep.subr.bf16.mxu1 %v1670_v34 }
  0x8c   : > { %v294_v39 = vld [vmem:[%s2089_s16 + $0x10] sm:$0xff]  ;;  %v297_v40 = vld [vmem:[%s2089_s16 + $0x28] sm:$0xff]  ;;  %v299_v41 = vld [vmem:[%s2089_s16 + $0x38] sm:$0xff]  ;;  %1086 = vmatpush1.bf16.msra.mxu1 %v1672_v35  ;;  %p2468_p8 = scmp.ne.s32.totalorder %s2459_s30, 0 }
  0x8d   : > { %599 = vmatpush1.bf16.msra.mxu0 %v1633_v7  ;;  %v1675_v42 = vld [vmem:[#allocation7 + $0x10] ss:$8 sps:$4 sm:$0xff]   ;;  %v356_v43 = vpack.c.bf16 %v294_v39, %v292_v38  ;;  %1087 = vmatprep.subr.bf16.mxu1 %v1673_v36  ;;  %v1676_v44 = vld [vmem:[#allocation7 + $0x24] ss:$8 sps:$4 sm:$0xff]   ;;  %v359_v45 = vpack.c.bf16 %v299_v41, %v297_v40  ;;  %v1678_v46 = vld [vmem:[#allocation7 + $0x20] ss:$8 sps:$4 sm:$0xff]  }
  0x8e   : > { %600 = vmatprep.subr.bf16.mxu0 %v1634_v8  ;;  %v1679_v47 = vld [vmem:[#allocation7 + $0x34] ss:$8 sps:$4 sm:$0xff]   ;;  %v296_v48 = vld [vmem:[%s2089_s16 + $0x20] sm:$0xff]  ;;  %v301_v50 = vld [vmem:[%s2089_s16 + $0x48] sm:$0xff]  ;;  %s1540_s17 = sshll.u32 (%p2468_p8), %s1935_s22, 5 }
  0x8f   : > { %v298_v49 = vld [vmem:[%s2089_s16 + $0x30] sm:$0xff]  ;;  %v303_v51 = vld [vmem:[%s2089_s16 + $0x58] sm:$0xff]  ;;  %v1682_v54 = vld [vmem:[#allocation7 + $0x44] ss:$8 sps:$4 sm:$0xff]   ;;  %s1351_s23 = ssub.s32 (%p2468_p8), 75, %s1540_s17 }
  0x90   : > { %1088 = vmatpush1.bf16.msra.mxu1 %v1675_v42  ;;  %v1681_v52 = vld [vmem:[#allocation7 + $0x30] ss:$8 sps:$4 sm:$0xff]   ;;  %v358_v53 = vpack.c.bf16 %v298_v49, %v296_v48  ;;  %v361_v55 = vpack.c.bf16 %v303_v51, %v301_v50  ;;  %v1684_v56 = vld [vmem:[#allocation7 + $0x40] ss:$8 sps:$4 sm:$0xff]   ;;  %v1685_v57 = vld [vmem:[#allocation7 + $0x54] ss:$8 sps:$4 sm:$0xff]  }
  0x91   : > { %601 = vmatpush1.bf16.msra.mxu0 %v1636_v9  ;;  %1089 = vmatprep.subr.bf16.mxu1 %v1676_v44  ;;  %v300_v58 = vld [vmem:[%s2089_s16 + $0x40] sm:$0xff]  ;;  %v302_v59 = vld [vmem:[%s2089_s16 + $0x50] sm:$0xff]  ;;  %v305_v60 = vld [vmem:[%s2089_s16 + $0x68] sm:$0xff]  ;;  %p1352_p9 = scmp.lt.s32.totalorder (%p2468_p8), %s1351_s23, 32 }
  0x92   : > { %602 = vmatprep.subr.bf16.mxu0 %v1637_v10  ;;  %v307_v61 = vld [vmem:[%s2089_s16 + $0x78] sm:$0xff]  ;;  %v360_v63 = vpack.c.bf16 %v302_v59, %v300_v58  ;;  %v1688_v0 = vld [vmem:[#allocation7 + $0x64] ss:$8 sps:$4 sm:$0xff]   ;;  %v1690_v2 = vld [vmem:[#allocation7 + $0x60] ss:$8 sps:$4 sm:$0xff]  }
  0x93   : > { %v1687_v62 = vld [vmem:[#allocation7 + $0x50] ss:$8 sps:$4 sm:$0xff]   ;;  %v363_v1 = vpack.c.bf16 %v307_v61, %v305_v60  ;;  %v1691_v3 = vld [vmem:[#allocation7 + $0x74] ss:$8 sps:$4 sm:$0xff]   ;;  %v304_v4 = vld [vmem:[%s2089_s16 + $0x60] sm:$0xff] }
  0x94   : > { %1090 = vmatpush1.bf16.msra.mxu1 %v1678_v46  ;;  %v306_v5 = vld [vmem:[%s2089_s16 + $0x70] sm:$0xff]  ;;  %v309_v6 = vld [vmem:[%s2089_s16 + $0x88] sm:$0xff]  ;;  %v311_v7 = vld [vmem:[%s2089_s16 + $0x98] sm:$0xff] }
  0x95   : > { %603 = vmatpush1.bf16.msra.mxu0 %v1639_v11  ;;  %1091 = vmatprep.subr.bf16.mxu1 %v1679_v47  ;;  %v1693_v8 = vld [vmem:[#allocation7 + $0x70] ss:$8 sps:$4 sm:$0xff]   ;;  %v362_v9 = vpack.c.bf16 %v306_v5, %v304_v4  ;;  %v1694_v10 = vld [vmem:[#allocation7 + $0x84] ss:$8 sps:$4 sm:$0xff]   ;;  %v365_v11 = vpack.c.bf16 %v311_v7, %v309_v6  ;;  %v1697_v13 = vld [vmem:[#allocation7 + $0x94] ss:$8 sps:$4 sm:$0xff]  }
  0x96   : > { %604 = vmatprep.subr.bf16.mxu0 %v1640_v12  ;;  %v1696_v12 = vld [vmem:[#allocation7 + $0x80] ss:$8 sps:$4 sm:$0xff]   ;;  %v310_v15 = vld [vmem:[%s2089_s16 + $0x90] sm:$0xff]  ;;  %v331_v49 = vld [vmem:[%s2089_s16 + $0x138] sm:$0xff] }
  0x97   : > { %v308_v14 = vld [vmem:[%s2089_s16 + $0x80] sm:$0xff]  ;;  %v318_v35 = vld [vmem:[%s2089_s16 + $0xd0] sm:$0xff]  ;;  %v321_v36 = vld [vmem:[%s2089_s16 + $0xe8] sm:$0xff] }
  0x98   : > { %1092 = vmatpush1.bf16.msra.mxu1 %v1681_v52  ;;  %v316_v34 = vld [vmem:[%s2089_s16 + $0xc0] sm:$0xff]  ;;  %v322_v41 = vld [vmem:[%s2089_s16 + $0xf0] sm:$0xff]  ;;  %v325_v42 = vld [vmem:[%s2089_s16 + $0x108] sm:$0xff] }
  0x99   : > { %605 = vmatpush1.bf16.msra.mxu0 %v1642_v16  ;;  %1093 = vmatprep.subr.bf16.mxu1 %v1682_v54  ;;  %v313_v16 = vld [vmem:[%s2089_s16 + $0xa8] sm:$0xff]  ;;  %v368_v38 = vpack.c.bf16 %v318_v35, %v316_v34  ;;  %v320_v40 = vld [vmem:[%s2089_s16 + $0xe0] sm:$0xff]  ;;  %v326_v47 = vld [vmem:[%s2089_s16 + $0x110] sm:$0xff] }
  0x9a   : > { %606 = vmatprep.subr.bf16.mxu0 %v1643_v17  ;;  %v315_v17 = vld [vmem:[%s2089_s16 + $0xb8] sm:$0xff]  ;;  %v370_v44 = vpack.c.bf16 %v322_v41, %v320_v40  ;;  %v324_v46 = vld [vmem:[%s2089_s16 + $0x100] sm:$0xff]  ;;  %v329_v48 = vld [vmem:[%s2089_s16 + $0x128] sm:$0xff] }
  0x9b   : > { %v372_v50 = vpack.c.bf16 %v326_v47, %v324_v46  ;;  %v375_v51 = vpack.c.bf16 %v331_v49, %v329_v48  ;;  %v328_v52 = vld [vmem:[%s2089_s16 + $0x120] sm:$0xff]  ;;  %v333_v54 = vld [vmem:[%s2089_s16 + $0x148] sm:$0xff]  ;;  %v334_v59 = vld [vmem:[%s2089_s16 + $0x150] sm:$0xff] }
  0x9c   : > { %1094 = vmatpush1.bf16.msra.mxu1 %v1684_v56  ;;  %v332_v58 = vld [vmem:[%s2089_s16 + $0x140] sm:$0xff]  ;;  %v337_v60 = vld [vmem:[%s2089_s16 + $0x168] sm:$0xff]  ;;  %v339_v61 = vld [vmem:[%s2089_s16 + $0x178] sm:$0xff] }
  0x9d   : > { %607 = vmatpush1.bf16.msra.mxu0 %v1645_v18  ;;  %1095 = vmatprep.subr.bf16.mxu1 %v1685_v57  ;;  %v1699_v18 = vld [vmem:[#allocation7 + $0x90] ss:$8 sps:$4 sm:$0xff]   ;;  %v1712_v6 = vld [vmem:[#allocation7 + $0xe4] ss:$8 sps:$4 sm:$0xff]   ;;  %v420_v35 = vld [vmem:[%s2449_s2] sm:$0x3] }
  0x9e   : > { %608 = vmatprep.subr.bf16.mxu0 %v1646_v19  ;;  %v364_v19 = vpack.c.bf16 %v310_v15, %v308_v14  ;;  %v343_v4 = vld [vmem:[%s2089_s16 + $0x198] sm:$0xff] }
  0x9f   : > { %v347_v14 = vld [vmem:[%s2089_s16 + $0x1b8] sm:$0xff] }
  0xa0   : > { %1096 = vmatpush1.bf16.msra.mxu1 %v1687_v62  ;;  %v376_v62 = vpack.c.bf16 %v334_v59, %v332_v58 }
  0xa1   : > { %609 = vmatpush1.bf16.msra.mxu0 %v1648_v20  ;;  %1097 = vmatprep.subr.bf16.mxu1 %v1688_v0  ;;  %v1700_v20 = vld [vmem:[#allocation7 + $0xa4] ss:$8 sps:$4 sm:$0xff]  }
  0xa2   : > { %610 = vmatprep.subr.bf16.mxu0 %v1649_v21  ;;  %v367_v21 = vpack.c.bf16 %v315_v17, %v313_v16  ;;  %v336_v0 = vld [vmem:[%s2089_s16 + $0x160] sm:$0xff] }
  0xa3   : > { %v344_v17 = vld [vmem:[%s2089_s16 + $0x1a0] sm:$0xff] }
  0xa4   : > { %1098 = vmatpush1.bf16.msra.mxu1 %v1690_v2  ;;  %v1711_v2 = vld [vmem:[#allocation7 + $0xd0] ss:$8 sps:$4 sm:$0xff]  }
  0xa5   : > { %611 = vmatpush1.bf16.msra.mxu0 %v1651_v22  ;;  %1099 = vmatprep.subr.bf16.mxu1 %v1691_v3  ;;  %v1702_v22 = vld [vmem:[#allocation7 + $0xa0] ss:$8 sps:$4 sm:$0xff]  }
  0xa6   : > { %612 = vmatprep.subr.bf16.mxu0 %v1652_v23  ;;  %v1703_v23 = vld [vmem:[#allocation7 + $0xb4] ss:$8 sps:$4 sm:$0xff]   ;;  %v341_v3 = vld [vmem:[%s2089_s16 + $0x188] sm:$0xff] }
  0xa7   : > { %v381_v7 = vpack.c.bf16 %v343_v4, %v341_v3 }
  0xa8   : > { %1100 = vmatpush1.bf16.msra.mxu1 %v1693_v8  ;;  %v1714_v8 = vld [vmem:[#allocation7 + $0xe0] ss:$8 sps:$4 sm:$0xff]  }
  0xa9   : > { %613 = vmatpush1.bf16.msra.mxu0 %v1654_v24  ;;  %1101 = vmatprep.subr.bf16.mxu1 %v1694_v10  ;;  %v312_v24 = vld [vmem:[%s2089_s16 + $0xa0] sm:$0xff] }
  0xaa   : > { %614 = vmatprep.subr.bf16.mxu0 %v1655_v25  ;;  %v314_v25 = vld [vmem:[%s2089_s16 + $0xb0] sm:$0xff]  ;;  %v340_v10 = vld [vmem:[%s2089_s16 + $0x180] sm:$0xff] }
  0xac   : > { %1102 = vmatpush1.bf16.msra.mxu1 %v1696_v12  ;;  %v1717_v12 = vld [vmem:[#allocation7 + $0xf0] ss:$8 sps:$4 sm:$0xff]  }
  0xad   : > { %615 = vmatpush1.bf16.msra.mxu0 %v1657_v26  ;;  %1103 = vmatprep.subr.bf16.mxu1 %v1697_v13  ;;  %v317_v26 = vld [vmem:[%s2089_s16 + $0xc8] sm:$0xff] }
  0xae   : > { %616 = vmatprep.subr.bf16.mxu0 %v1658_v27  ;;  %v319_v27 = vld [vmem:[%s2089_s16 + $0xd8] sm:$0xff]  ;;  %v345_v13 = vld [vmem:[%s2089_s16 + $0x1a8] sm:$0xff] }
  0xaf   : > { %v383_v16 = vpack.c.bf16 %v347_v14, %v345_v13 }
  0xb0   : > { %1104 = vmatpush1.bf16.msra.mxu1 %v1699_v18  ;;  %v346_v18 = vld [vmem:[%s2089_s16 + $0x1b0] sm:$0xff] }
  0xb1   : > { %617 = vmatpush1.bf16.msra.mxu0 %v1660_v28  ;;  %1105 = vmatprep.subr.bf16.mxu1 %v1700_v20  ;;  %v1705_v28 = vld [vmem:[#allocation7 + $0xb0] ss:$8 sps:$4 sm:$0xff]  }
  0xb2   : > { %618 = vmatprep.subr.bf16.mxu0 %v1661_v29  ;;  %v366_v29 = vpack.c.bf16 %v314_v25, %v312_v24  ;;  %v351_v20 = vld [vmem:[%s2089_s16 + $0x1d8] sm:$0xff]  ;;  %v350_v24 = vld [vmem:[%s2089_s16 + $0x1d0] sm:$0xff]  ;;  %v353_v25 = vld [vmem:[%s2089_s16 + $0x1e8] sm:$0xff] }
  0xb4   : > { %1106 = vmatpush1.bf16.msra.mxu1 %v1702_v22 }
  0xb5   : > { %619 = vmatpush1.bf16.msra.mxu0 %v1663_v30  ;;  %1107 = vmatprep.subr.bf16.mxu1 %v1703_v23  ;;  %v1706_v30 = vld [vmem:[#allocation7 + $0xc4] ss:$8 sps:$4 sm:$0xff]  }
  0xb6   : > { %620 = vmatprep.subr.bf16.mxu0 %v1664_v31  ;;  %v369_v31 = vpack.c.bf16 %v319_v27, %v317_v26  ;;  %v348_v23 = vld [vmem:[%s2089_s16 + $0x1c0] sm:$0xff]  ;;  %v355_v26 = vld [vmem:[%s2089_s16 + $0x1f8] sm:$0xff] }
  0xb7   : > { %v384_v27 = vpack.c.bf16 %v350_v24, %v348_v23 }
  0xb8   : > { %1108 = vmatpush1.bf16.msra.mxu1 %v1705_v28  ;;  %v387_v28 = vpack.c.bf16 %v355_v26, %v353_v25 }
  0xb9   : > { %621 = vmatpush1.bf16.msra.mxu0 %v1666_v32  ;;  %v1708_v32 = vld [vmem:[#allocation7 + $0xc0] ss:$8 sps:$4 sm:$0xff]   ;;  %1109 = vmatprep.subr.bf16.mxu1 %v1706_v30  ;;  %v354_v30 = vld [vmem:[%s2089_s16 + $0x1f0] sm:$0xff] }
  0xba   : > { %622 = vmatprep.subr.bf16.mxu0 %v1667_v33  ;;  %v1709_v33 = vld [vmem:[#allocation7 + $0xd4] ss:$8 sps:$4 sm:$0xff]  }
  0xbc   : > { %1110 = vmatpush1.bf16.msra.mxu1 %v1708_v32  ;;  %v422_v32 = vlaneseq }
  0xbd   : > { %623 = vmatpush1.bf16.msra.mxu0 %v1669_v37  ;;  %v323_v37 = vld [vmem:[%s2089_s16 + $0xf8] sm:$0xff]  ;;  %1111 = vmatprep.subr.bf16.mxu1 %v1709_v33 }
  0xbe   : > { %v371_v39 = vpack.c.bf16 %v323_v37, %v321_v36  ;;  %v2163_v33 = vshrl.u32 %v422_v32, 7 }
  0xc0   : > { %625 = vmatmul.mubr.bf16.vlgmr.msra.gmra.mrb[0].mxu0 %v356_v43  ;;  %v327_v43 = vld [vmem:[%s2089_s16 + $0x118] sm:$0xff]  ;;  %1112 = vmatpush1.bf16.msra.mxu1 %v1711_v2  ;;  %v424_v34 = vsub.s32 0, %v2163_v33  ;;  %v428_v36 = vsub.s32 1, %v2163_v33 }
  0xc1   : > { %634 = vmatprep.mubr.bf16.mxu0 %v359_v45  ;;  %v373_v45 = vpack.c.bf16 %v327_v43, %v325_v42  ;;  %1113 = vmatprep.subr.bf16.mxu1 %v1712_v6 }
  0xc2   : > { %v2172_v37 = vrot.slane %v420_v35, %v424_v34 }
  0xc4   : > { %1114 = vmatpush1.bf16.msra.mxu1 %v1714_v8 }
  0xc8   : > { %635 = vmatmul.mubr.bf16.gmra.mrb[4].mxu0 %v358_v53  ;;  %v330_v53 = vld [vmem:[%s2089_s16 + $0x130] sm:$0xff] }
  0xc9   : > { %644 = vmatprep.mubr.bf16.mxu0 %v361_v55  ;;  %v335_v55 = vld [vmem:[%s2089_s16 + $0x158] sm:$0xff]  ;;  %v374_v56 = vpack.c.bf16 %v330_v53, %v328_v52 }
  0xca   : > { %v377_v57 = vpack.c.bf16 %v335_v55, %v333_v54 }
  0xd0   : > { %645 = vmatmul.mubr.bf16.gmra.mrb[8].mxu0 %v360_v63  ;;  %v379_v63 = vpack.c.bf16 %v339_v61, %v337_v60 }
  0xd1   : > { %654 = vmatprep.mubr.bf16.mxu0 %v363_v1  ;;  %v338_v1 = vld [vmem:[%s2089_s16 + $0x170] sm:$0xff] }
  0xd2   : > { %v378_v5 = vpack.c.bf16 %v338_v1, %v336_v0 }
  0xd8   : > { %655 = vmatmul.mubr.bf16.gmra.mrb[12].mxu0 %v362_v9  ;;  %v1715_v9 = vld [vmem:[#allocation7 + $0xf4] ss:$8 sps:$4 sm:$0xff]  }
  0xd9   : > { %664 = vmatprep.mubr.bf16.mxu0 %v365_v11  ;;  %v342_v11 = vld [vmem:[%s2089_s16 + $0x190] sm:$0xff]  ;;  %1115 = vmatprep.subr.bf16.mxu1 %v1715_v9 }
  0xda   : > { %1116 = vmatpush1.bf16.msra.mxu1 %v1717_v12  ;;  %v380_v15 = vpack.c.bf16 %v342_v11, %v340_v10 }
  0xe0   : > { %665 = vmatmul.mubr.bf16.gmra.mrb[16].mxu0 %v364_v19  ;;  %v349_v19 = vld [vmem:[%s2089_s16 + $0x1c8] sm:$0xff] }
  0xe1   : > { %674 = vmatprep.mubr.bf16.mxu0 %v367_v21  ;;  %v382_v21 = vpack.c.bf16 %v346_v18, %v344_v17  ;;  %v385_v22 = vpack.c.bf16 %v351_v20, %v349_v19 }
  0xe8   : > { %675 = vmatmul.mubr.bf16.gmra.mrb[20].mxu0 %v366_v29  ;;  %v352_v29 = vld [vmem:[%s2089_s16 + $0x1e0] sm:$0xff] }
  0xe9   : > { %684 = vmatprep.mubr.bf16.mxu0 %v369_v31  ;;  %v386_v31 = vpack.c.bf16 %v354_v30, %v352_v29 }
  0xf0   : > { %685 = vmatmul.mubr.bf16.gmra.mrb[24].mxu0 %v368_v38  ;;  %v2176_v38 = vrot.slane %v420_v35, %v428_v36 }
  0xf1   : > { %694 = vmatprep.mubr.bf16.mxu0 %v371_v39 }
  0xf8   : > { %695 = vmatmul.mubr.bf16.gmra.mrb[28].mxu0 %v370_v44 }
  0xf9   : > { %704 = vmatprep.mubr.bf16.mxu0 %v373_v45 }
 0x100   : > { %705 = vmatmul.mubr.bf16.gmra.mrb[32].mxu0 %v372_v50 }
 0x101   : > { %714 = vmatprep.mubr.bf16.mxu0 %v375_v51 }
 0x108   : > { %715 = vmatmul.mubr.bf16.gmra.mrb[36].mxu0 %v374_v56 }
 0x109   : > { %724 = vmatprep.mubr.bf16.mxu0 %v377_v57 }
 0x110   : > { %725 = vmatmul.mubr.bf16.gmra.mrb[40].mxu0 %v376_v62 }
 0x111   : > { %734 = vmatprep.mubr.bf16.mxu0 %v379_v63 }
 0x118   : > { %735 = vmatmul.mubr.bf16.gmra.mrb[44].mxu0 %v378_v5 }
 0x119   : > { %744 = vmatprep.mubr.bf16.mxu0 %v381_v7 }
 0x120   : > { %745 = vmatmul.mubr.bf16.gmra.mrb[48].mxu0 %v380_v15 }
 0x121   : > { %754 = vmatprep.mubr.bf16.mxu0 %v383_v16 }
 0x128   : > { %755 = vmatmul.mubr.bf16.gmra.mrb[52].mxu0 %v382_v21 }
 0x129   : > { %764 = vmatprep.mubr.bf16.mxu0 %v385_v22 }
 0x130   : > { %765 = vmatmul.mubr.bf16.gmra.mrb[56].mxu0 %v384_v27 }
 0x131   : > { %774 = vmatprep.mubr.bf16.mxu0 %v387_v28 }
 0x138   : > { %775 = vmatmul.mubr.bf16.gmra.mrb[60].mxu0 %v386_v31 }
 0x193   : > { %v626_v39 = vpop.f32.mrb[0].mxu0 }
 0x194   : > { %v627_v40 = vadd.f32 %v626_v39, %v2172_v37  ;;  %v628_v41 = vpop.f32.mrb[1].mxu0 }
 0x195   : > { %v629_v42 = vadd.f32 %v628_v41, %v2176_v38  ;;  %v630_v43 = vpop.f32.mrb[2].mxu0 }
 0x196   : > { %v631_v44 = vadd.f32 %v630_v43, %v2172_v37  ;;  %v632_v45 = vpop.f32.mrb[3].mxu0  ;;  %v785_v47 = vmax.f32 %v627_v40, 0.0 }
 0x197   : > { %v633_v46 = vadd.f32 %v632_v45, %v2176_v38  ;;  %v786_v49 = vmax.f32 %v629_v42, 0.0 }
 0x198   : > { %v787_v48 = vmax.f32 %v631_v44, 0.0 }
 0x199   : > { %v788_v50 = vmax.f32 %v633_v46, 0.0 }
 0x19a   : > { %v849_v51 = vpack.c.bf16 %v787_v48, %v785_v47 }
 0x19b   : > { %v636_v52 = vpop.f32.mrb[4].mxu0  ;;  %v850_v53 = vpack.c.bf16 %v788_v50, %v786_v49 }
 0x19c   : > { %v637_v54 = vadd.f32 %v636_v52, %v2172_v37  ;;  %v638_v55 = vpop.f32.mrb[5].mxu0 }
 0x19d   : > { %v639_v56 = vadd.f32 %v638_v55, %v2176_v38  ;;  %v640_v57 = vpop.f32.mrb[6].mxu0  ;;  %1117 = vmatprep.mubr.bf16.mxu1 %v850_v53 }
 0x19e   : > { %v641_v58 = vadd.f32 %v640_v57, %v2172_v37  ;;  %v642_v59 = vpop.f32.mrb[7].mxu0  ;;  %1118 = vmatmul.mubr.bf16.vlgmr.msra.gmra.mrb[0].mxu1 %v849_v51  ;;  %v789_v61 = vmax.f32 %v637_v54, 0.0 }
 0x19f   : > { %v643_v60 = vadd.f32 %v642_v59, %v2176_v38  ;;  %v790_v63 = vmax.f32 %v639_v56, 0.0 }
 0x1a0   : > { %v791_v62 = vmax.f32 %v641_v58, 0.0 }
 0x1a1   : > { %v792_v0 = vmax.f32 %v643_v60, 0.0 }
 0x1a2   : > { %v851_v1 = vpack.c.bf16 %v791_v62, %v789_v61 }
 0x1a3   : > { %v852_v2 = vpack.c.bf16 %v792_v0, %v790_v63  ;;  %v646_v3 = vpop.f32.mrb[8].mxu0 }
 0x1a4   : > { %v647_v4 = vadd.f32 %v646_v3, %v2172_v37  ;;  %v648_v5 = vpop.f32.mrb[9].mxu0 }
 0x1a5   : > { %v649_v6 = vadd.f32 %v648_v5, %v2176_v38  ;;  %v650_v7 = vpop.f32.mrb[10].mxu0  ;;  %1127 = vmatprep.mubr.bf16.mxu1 %v852_v2 }
 0x1a6   : > { %v651_v8 = vadd.f32 %v650_v7, %v2172_v37  ;;  %v652_v9 = vpop.f32.mrb[11].mxu0  ;;  %1128 = vmatmul.mubr.bf16.gmra.mrb[4].mxu1 %v851_v1  ;;  %v793_v11 = vmax.f32 %v647_v4, 0.0 }
 0x1a7   : > { %v653_v10 = vadd.f32 %v652_v9, %v2176_v38  ;;  %v794_v13 = vmax.f32 %v649_v6, 0.0 }
 0x1a8   : > { %v795_v12 = vmax.f32 %v651_v8, 0.0 }
 0x1a9   : > { %v796_v14 = vmax.f32 %v653_v10, 0.0 }
 0x1aa   : > { %v853_v15 = vpack.c.bf16 %v795_v12, %v793_v11 }
 0x1ab   : > { %v854_v16 = vpack.c.bf16 %v796_v14, %v794_v13  ;;  %v656_v17 = vpop.f32.mrb[12].mxu0 }
 0x1ac   : > { %v657_v18 = vadd.f32 %v656_v17, %v2172_v37  ;;  %v658_v19 = vpop.f32.mrb[13].mxu0 }
 0x1ad   : > { %v659_v20 = vadd.f32 %v658_v19, %v2176_v38  ;;  %v660_v21 = vpop.f32.mrb[14].mxu0  ;;  %1137 = vmatprep.mubr.bf16.mxu1 %v854_v16 }
 0x1ae   : > { %v661_v22 = vadd.f32 %v660_v21, %v2172_v37  ;;  %v662_v23 = vpop.f32.mrb[15].mxu0  ;;  %1138 = vmatmul.mubr.bf16.gmra.mrb[8].mxu1 %v853_v15  ;;  %v797_v25 = vmax.f32 %v657_v18, 0.0 }
 0x1af   : > { %v663_v24 = vadd.f32 %v662_v23, %v2176_v38  ;;  %v798_v27 = vmax.f32 %v659_v20, 0.0 }
 0x1b0   : > { %v799_v26 = vmax.f32 %v661_v22, 0.0 }
 0x1b1   : > { %v800_v28 = vmax.f32 %v663_v24, 0.0 }
 0x1b2   : > { %v855_v29 = vpack.c.bf16 %v799_v26, %v797_v25 }
 0x1b3   : > { %v856_v30 = vpack.c.bf16 %v800_v28, %v798_v27  ;;  %v666_v31 = vpop.f32.mrb[16].mxu0 }
 0x1b4   : > { %v667_v32 = vadd.f32 %v666_v31, %v2172_v37  ;;  %v668_v35 = vpop.f32.mrb[17].mxu0 }
 0x1b5   : > { %v669_v39 = vadd.f32 %v668_v35, %v2176_v38  ;;  %v670_v40 = vpop.f32.mrb[18].mxu0  ;;  %1147 = vmatprep.mubr.bf16.mxu1 %v856_v30 }
 0x1b6   : > { %v671_v41 = vadd.f32 %v670_v40, %v2172_v37  ;;  %v672_v42 = vpop.f32.mrb[19].mxu0  ;;  %1148 = vmatmul.mubr.bf16.gmra.mrb[12].mxu1 %v855_v29  ;;  %v801_v44 = vmax.f32 %v667_v32, 0.0 }
 0x1b7   : > { %v673_v43 = vadd.f32 %v672_v42, %v2176_v38  ;;  %v802_v46 = vmax.f32 %v669_v39, 0.0 }
 0x1b8   : > { %v803_v45 = vmax.f32 %v671_v41, 0.0 }
 0x1b9   : > { %v804_v47 = vmax.f32 %v673_v43, 0.0 }
 0x1ba   : > { %v857_v48 = vpack.c.bf16 %v803_v45, %v801_v44 }
 0x1bb   : > { %v858_v49 = vpack.c.bf16 %v804_v47, %v802_v46  ;;  %v676_v50 = vpop.f32.mrb[20].mxu0 }
 0x1bc   : > { %v677_v51 = vadd.f32 %v676_v50, %v2172_v37  ;;  %v678_v52 = vpop.f32.mrb[21].mxu0 }
 0x1bd   : > { %v679_v53 = vadd.f32 %v678_v52, %v2176_v38  ;;  %v680_v54 = vpop.f32.mrb[22].mxu0  ;;  %1157 = vmatprep.mubr.bf16.mxu1 %v858_v49 }
 0x1be   : > { %v681_v55 = vadd.f32 %v680_v54, %v2172_v37  ;;  %v682_v56 = vpop.f32.mrb[23].mxu0  ;;  %1158 = vmatmul.mubr.bf16.gmra.mrb[16].mxu1 %v857_v48  ;;  %v805_v58 = vmax.f32 %v677_v51, 0.0 }
 0x1bf   : > { %v683_v57 = vadd.f32 %v682_v56, %v2176_v38  ;;  %v806_v60 = vmax.f32 %v679_v53, 0.0 }
 0x1c0   : > { %v807_v59 = vmax.f32 %v681_v55, 0.0 }
 0x1c1   : > { %v808_v61 = vmax.f32 %v683_v57, 0.0 }
 0x1c2   : > { %v859_v62 = vpack.c.bf16 %v807_v59, %v805_v58 }
 0x1c3   : > { %v860_v63 = vpack.c.bf16 %v808_v61, %v806_v60  ;;  %v686_v0 = vpop.f32.mrb[24].mxu0 }
 0x1c4   : > { %v687_v1 = vadd.f32 %v686_v0, %v2172_v37  ;;  %v688_v2 = vpop.f32.mrb[25].mxu0 }
 0x1c5   : > { %v689_v3 = vadd.f32 %v688_v2, %v2176_v38  ;;  %v690_v4 = vpop.f32.mrb[26].mxu0  ;;  %1167 = vmatprep.mubr.bf16.mxu1 %v860_v63 }
 0x1c6   : > { %v691_v5 = vadd.f32 %v690_v4, %v2172_v37  ;;  %v692_v6 = vpop.f32.mrb[27].mxu0  ;;  %1168 = vmatmul.mubr.bf16.gmra.mrb[20].mxu1 %v859_v62  ;;  %v809_v8 = vmax.f32 %v687_v1, 0.0 }
 0x1c7   : > { %v693_v7 = vadd.f32 %v692_v6, %v2176_v38  ;;  %v810_v10 = vmax.f32 %v689_v3, 0.0 }
 0x1c8   : > { %v811_v9 = vmax.f32 %v691_v5, 0.0 }
 0x1c9   : > { %v812_v11 = vmax.f32 %v693_v7, 0.0 }
 0x1ca   : > { %v861_v12 = vpack.c.bf16 %v811_v9, %v809_v8 }
 0x1cb   : > { %v862_v13 = vpack.c.bf16 %v812_v11, %v810_v10  ;;  %v696_v14 = vpop.f32.mrb[28].mxu0 }
 0x1cc   : > { %v697_v15 = vadd.f32 %v696_v14, %v2172_v37  ;;  %v698_v16 = vpop.f32.mrb[29].mxu0 }
 0x1cd   : > { %v699_v17 = vadd.f32 %v698_v16, %v2176_v38  ;;  %v700_v18 = vpop.f32.mrb[30].mxu0  ;;  %1177 = vmatprep.mubr.bf16.mxu1 %v862_v13 }
 0x1ce   : > { %v701_v19 = vadd.f32 %v700_v18, %v2172_v37  ;;  %v702_v20 = vpop.f32.mrb[31].mxu0  ;;  %1178 = vmatmul.mubr.bf16.gmra.mrb[24].mxu1 %v861_v12  ;;  %v813_v22 = vmax.f32 %v697_v15, 0.0 }
 0x1cf   : > { %v703_v21 = vadd.f32 %v702_v20, %v2176_v38  ;;  %v814_v24 = vmax.f32 %v699_v17, 0.0 }
 0x1d0   : > { %v815_v23 = vmax.f32 %v701_v19, 0.0 }
 0x1d1   : > { %v816_v25 = vmax.f32 %v703_v21, 0.0 }
 0x1d2   : > { %v863_v26 = vpack.c.bf16 %v815_v23, %v813_v22 }
 0x1d3   : > { %v864_v27 = vpack.c.bf16 %v816_v25, %v814_v24  ;;  %v706_v28 = vpop.f32.mrb[32].mxu0 }
 0x1d4   : > { %v707_v29 = vadd.f32 %v706_v28, %v2172_v37  ;;  %v708_v30 = vpop.f32.mrb[33].mxu0 }
 0x1d5   : > { %v709_v31 = vadd.f32 %v708_v30, %v2176_v38  ;;  %v710_v32 = vpop.f32.mrb[34].mxu0  ;;  %1187 = vmatprep.mubr.bf16.mxu1 %v864_v27 }
 0x1d6   : > { %v711_v35 = vadd.f32 %v710_v32, %v2172_v37  ;;  %v712_v39 = vpop.f32.mrb[35].mxu0  ;;  %1188 = vmatmul.mubr.bf16.gmra.mrb[28].mxu1 %v863_v26  ;;  %v817_v41 = vmax.f32 %v707_v29, 0.0 }
 0x1d7   : > { %v713_v40 = vadd.f32 %v712_v39, %v2176_v38  ;;  %v818_v43 = vmax.f32 %v709_v31, 0.0 }
 0x1d8   : > { %v819_v42 = vmax.f32 %v711_v35, 0.0 }
 0x1d9   : > { %v820_v44 = vmax.f32 %v713_v40, 0.0 }
 0x1da   : > { %v865_v45 = vpack.c.bf16 %v819_v42, %v817_v41 }
 0x1db   : > { %v866_v46 = vpack.c.bf16 %v820_v44, %v818_v43  ;;  %v716_v47 = vpop.f32.mrb[36].mxu0 }
 0x1dc   : > { %v717_v48 = vadd.f32 %v716_v47, %v2172_v37  ;;  %v718_v49 = vpop.f32.mrb[37].mxu0 }
 0x1dd   : > { %v719_v50 = vadd.f32 %v718_v49, %v2176_v38  ;;  %v720_v51 = vpop.f32.mrb[38].mxu0  ;;  %1197 = vmatprep.mubr.bf16.mxu1 %v866_v46 }
 0x1de   : > { %v721_v52 = vadd.f32 %v720_v51, %v2172_v37  ;;  %v722_v53 = vpop.f32.mrb[39].mxu0  ;;  %1198 = vmatmul.mubr.bf16.gmra.mrb[32].mxu1 %v865_v45  ;;  %v821_v55 = vmax.f32 %v717_v48, 0.0 }
 0x1df   : > { %v723_v54 = vadd.f32 %v722_v53, %v2176_v38  ;;  %v822_v57 = vmax.f32 %v719_v50, 0.0 }
 0x1e0   : > { %v823_v56 = vmax.f32 %v721_v52, 0.0 }
 0x1e1   : > { %v824_v58 = vmax.f32 %v723_v54, 0.0 }
 0x1e2   : > { %v867_v59 = vpack.c.bf16 %v823_v56, %v821_v55 }
 0x1e3   : > { %v868_v60 = vpack.c.bf16 %v824_v58, %v822_v57  ;;  %v726_v61 = vpop.f32.mrb[40].mxu0 }
 0x1e4   : > { %v727_v62 = vadd.f32 %v726_v61, %v2172_v37  ;;  %v728_v63 = vpop.f32.mrb[41].mxu0 }
 0x1e5   : > { %v729_v0 = vadd.f32 %v728_v63, %v2176_v38  ;;  %v730_v1 = vpop.f32.mrb[42].mxu0  ;;  %1207 = vmatprep.mubr.bf16.mxu1 %v868_v60 }
 0x1e6   : > { %v731_v2 = vadd.f32 %v730_v1, %v2172_v37  ;;  %v732_v3 = vpop.f32.mrb[43].mxu0  ;;  %1208 = vmatmul.mubr.bf16.gmra.mrb[36].mxu1 %v867_v59  ;;  %v825_v5 = vmax.f32 %v727_v62, 0.0 }
 0x1e7   : > { %v733_v4 = vadd.f32 %v732_v3, %v2176_v38  ;;  %v826_v7 = vmax.f32 %v729_v0, 0.0 }
 0x1e8   : > { %v827_v6 = vmax.f32 %v731_v2, 0.0 }
 0x1e9   : > { %v828_v8 = vmax.f32 %v733_v4, 0.0 }
 0x1ea   : > { %v869_v9 = vpack.c.bf16 %v827_v6, %v825_v5 }
 0x1eb   : > { %v870_v10 = vpack.c.bf16 %v828_v8, %v826_v7  ;;  %v736_v11 = vpop.f32.mrb[44].mxu0 }
 0x1ec   : > { %v737_v12 = vadd.f32 %v736_v11, %v2172_v37  ;;  %v738_v13 = vpop.f32.mrb[45].mxu0 }
 0x1ed   : > { %v739_v14 = vadd.f32 %v738_v13, %v2176_v38  ;;  %v740_v15 = vpop.f32.mrb[46].mxu0  ;;  %1217 = vmatprep.mubr.bf16.mxu1 %v870_v10 }
 0x1ee   : > { %v741_v16 = vadd.f32 %v740_v15, %v2172_v37  ;;  %v742_v17 = vpop.f32.mrb[47].mxu0  ;;  %1218 = vmatmul.mubr.bf16.gmra.mrb[40].mxu1 %v869_v9  ;;  %v829_v19 = vmax.f32 %v737_v12, 0.0 }
 0x1ef   : > { %v743_v18 = vadd.f32 %v742_v17, %v2176_v38  ;;  %v830_v21 = vmax.f32 %v739_v14, 0.0 }
 0x1f0   : > { %v831_v20 = vmax.f32 %v741_v16, 0.0 }
 0x1f1   : > { %v832_v22 = vmax.f32 %v743_v18, 0.0 }
 0x1f2   : > { %v871_v23 = vpack.c.bf16 %v831_v20, %v829_v19 }
 0x1f3   : > { %v872_v24 = vpack.c.bf16 %v832_v22, %v830_v21  ;;  %v746_v25 = vpop.f32.mrb[48].mxu0  ;;  %v913_v22 = vld [vmem:[%s2451_s4] sm:$0x3] }
 0x1f4   : > { %v747_v26 = vadd.f32 %v746_v25, %v2172_v37  ;;  %v748_v27 = vpop.f32.mrb[49].mxu0 }
 0x1f5   : > { %v749_v28 = vadd.f32 %v748_v27, %v2176_v38  ;;  %v750_v29 = vpop.f32.mrb[50].mxu0  ;;  %1227 = vmatprep.mubr.bf16.mxu1 %v872_v24 }
 0x1f6   : > { %v751_v30 = vadd.f32 %v750_v29, %v2172_v37  ;;  %v752_v31 = vpop.f32.mrb[51].mxu0  ;;  %1228 = vmatmul.mubr.bf16.gmra.mrb[44].mxu1 %v871_v23  ;;  %v833_v35 = vmax.f32 %v747_v26, 0.0 }
 0x1f7   : > { %v753_v32 = vadd.f32 %v752_v31, %v2176_v38  ;;  %v834_v40 = vmax.f32 %v749_v28, 0.0 }
 0x1f8   : > { %v835_v39 = vmax.f32 %v751_v30, 0.0 }
 0x1f9   : > { %v836_v41 = vmax.f32 %v753_v32, 0.0 }
 0x1fa   : > { %v873_v42 = vpack.c.bf16 %v835_v39, %v833_v35 }
 0x1fb   : > { %v874_v43 = vpack.c.bf16 %v836_v41, %v834_v40  ;;  %v756_v44 = vpop.f32.mrb[52].mxu0 }
 0x1fc   : > { %v757_v45 = vadd.f32 %v756_v44, %v2172_v37  ;;  %v758_v46 = vpop.f32.mrb[53].mxu0 }
 0x1fd   : > { %v759_v47 = vadd.f32 %v758_v46, %v2176_v38  ;;  %v760_v48 = vpop.f32.mrb[54].mxu0  ;;  %1237 = vmatprep.mubr.bf16.mxu1 %v874_v43 }
 0x1fe   : > { %v761_v49 = vadd.f32 %v760_v48, %v2172_v37  ;;  %v762_v50 = vpop.f32.mrb[55].mxu0  ;;  %1238 = vmatmul.mubr.bf16.gmra.mrb[48].mxu1 %v873_v42  ;;  %v837_v52 = vmax.f32 %v757_v45, 0.0 }
 0x1ff   : > { %v763_v51 = vadd.f32 %v762_v50, %v2176_v38  ;;  %v838_v54 = vmax.f32 %v759_v47, 0.0 }
 0x200   : > { %v839_v53 = vmax.f32 %v761_v49, 0.0 }
 0x201   : > { %v840_v55 = vmax.f32 %v763_v51, 0.0 }
 0x202   : > { %v875_v56 = vpack.c.bf16 %v839_v53, %v837_v52 }
 0x203   : > { %v876_v57 = vpack.c.bf16 %v840_v55, %v838_v54  ;;  %v766_v58 = vpop.f32.mrb[56].mxu0 }
 0x204   : > { %v767_v59 = vadd.f32 %v766_v58, %v2172_v37  ;;  %v768_v60 = vpop.f32.mrb[57].mxu0 }
 0x205   : > { %v769_v61 = vadd.f32 %v768_v60, %v2176_v38  ;;  %v770_v62 = vpop.f32.mrb[58].mxu0  ;;  %1247 = vmatprep.mubr.bf16.mxu1 %v876_v57 }
 0x206   : > { %v771_v63 = vadd.f32 %v770_v62, %v2172_v37  ;;  %v772_v0 = vpop.f32.mrb[59].mxu0  ;;  %1248 = vmatmul.mubr.bf16.gmra.mrb[52].mxu1 %v875_v56  ;;  %v841_v2 = vmax.f32 %v767_v59, 0.0 }
 0x207   : > { %v773_v1 = vadd.f32 %v772_v0, %v2176_v38  ;;  %v842_v4 = vmax.f32 %v769_v61, 0.0 }
 0x208   : > { %v843_v3 = vmax.f32 %v771_v63, 0.0 }
 0x209   : > { %v844_v5 = vmax.f32 %v773_v1, 0.0 }
 0x20a   : > { %v877_v6 = vpack.c.bf16 %v843_v3, %v841_v2 }
 0x20b   : > { %v878_v7 = vpack.c.bf16 %v844_v5, %v842_v4  ;;  %v776_v8 = vpop.f32.mrb[60].mxu0 }
 0x20c   : > { %v777_v9 = vadd.f32 %v776_v8, %v2172_v37  ;;  %v778_v10 = vpop.f32.mrb[61].mxu0 }
 0x20d   : > { %v779_v11 = vadd.f32 %v778_v10, %v2176_v38  ;;  %v780_v12 = vpop.f32.mrb[62].mxu0  ;;  %1257 = vmatprep.mubr.bf16.mxu1 %v878_v7 }
 0x20e   : > { %v781_v13 = vadd.f32 %v780_v12, %v2172_v37  ;;  %v782_v14 = vpop.f32.mrb[63].mxu0  ;;  %1258 = vmatmul.mubr.bf16.gmra.mrb[56].mxu1 %v877_v6  ;;  %v845_v16 = vmax.f32 %v777_v9, 0.0  ;;  %v2247_v37 = vrot.slane %v913_v22, %v424_v34 }
 0x20f   : > { %v783_v15 = vadd.f32 %v782_v14, %v2176_v38  ;;  %v846_v18 = vmax.f32 %v779_v11, 0.0  ;;  %v2251_v38 = vrot.slane %v913_v22, %v428_v36 }
 0x210   : > { %v847_v17 = vmax.f32 %v781_v13, 0.0 }
 0x211   : > { %v848_v19 = vmax.f32 %v783_v15, 0.0 }
 0x212   : > { %v879_v20 = vpack.c.bf16 %v847_v17, %v845_v16 }
 0x213   : > { %v880_v21 = vpack.c.bf16 %v848_v19, %v846_v18 }
 0x215   : > { %1267 = vmatprep.mubr.bf16.mxu1 %v880_v21 }
 0x216   : > { %1268 = vmatmul.mubr.bf16.gmra.mrb[60].mxu1 %v879_v20 }
 0x271   : > { %v1119_v23 = vpop.f32.mrb[0].mxu1 }
 0x272   : > { %v1120_v24 = vadd.f32 %v1119_v23, %v2247_v37  ;;  %v1121_v25 = vpop.f32.mrb[1].mxu1 }
 0x273   : > { %v1122_v26 = vadd.f32 %v1121_v25, %v2251_v38  ;;  %v1123_v27 = vpop.f32.mrb[2].mxu1 }
 0x274   : > { %1278 = vst [vmem:[%s2257_s26] sm:$0xff] %v1120_v24  ;;  %v1124_v33 = vadd.f32 %v1123_v27, %v2247_v37  ;;  %v1125_v34 = vpop.f32.mrb[3].mxu1 }
 0x275   : > { %1279 = vst [vmem:[%s2257_s26 + $0x8] sm:$0xff] %v1122_v26  ;;  %v1126_v36 = vadd.f32 %v1125_v34, %v2251_v38 }
 0x276   : > { %1280 = vst [vmem:[%s2257_s26 + $0x10] sm:$0xff] %v1124_v33 }
 0x277   : > { %1281 = vst [vmem:[%s2257_s26 + $0x18] sm:$0xff] %v1126_v36 }
 0x279   : > { %v1129_v28 = vpop.f32.mrb[4].mxu1 }
 0x27a   : > { %v1130_v29 = vadd.f32 %v1129_v28, %v2247_v37  ;;  %v1131_v30 = vpop.f32.mrb[5].mxu1 }
 0x27b   : > { %v1132_v31 = vadd.f32 %v1131_v30, %v2251_v38  ;;  %v1133_v32 = vpop.f32.mrb[6].mxu1 }
 0x27c   : > { %1282 = vst [vmem:[%s2257_s26 + $0x20] sm:$0xff] %v1130_v29  ;;  %v1134_v35 = vadd.f32 %v1133_v32, %v2247_v37  ;;  %v1135_v39 = vpop.f32.mrb[7].mxu1 }
 0x27d   : > { %1283 = vst [vmem:[%s2257_s26 + $0x28] sm:$0xff] %v1132_v31  ;;  %v1136_v40 = vadd.f32 %v1135_v39, %v2251_v38 }
 0x27e   : > { %1284 = vst [vmem:[%s2257_s26 + $0x30] sm:$0xff] %v1134_v35 }
 0x27f   : > { %1285 = vst [vmem:[%s2257_s26 + $0x38] sm:$0xff] %v1136_v40 }
 0x281   : > { %v1139_v41 = vpop.f32.mrb[8].mxu1 }
 0x282   : > { %v1140_v42 = vadd.f32 %v1139_v41, %v2247_v37  ;;  %v1141_v43 = vpop.f32.mrb[9].mxu1 }
 0x283   : > { %v1142_v44 = vadd.f32 %v1141_v43, %v2251_v38  ;;  %v1143_v45 = vpop.f32.mrb[10].mxu1 }
 0x284   : > { %1286 = vst [vmem:[%s2257_s26 + $0x40] sm:$0xff] %v1140_v42  ;;  %v1144_v46 = vadd.f32 %v1143_v45, %v2247_v37  ;;  %v1145_v47 = vpop.f32.mrb[11].mxu1 }
 0x285   : > { %1287 = vst [vmem:[%s2257_s26 + $0x48] sm:$0xff] %v1142_v44  ;;  %v1146_v48 = vadd.f32 %v1145_v47, %v2251_v38 }
 0x286   : > { %1288 = vst [vmem:[%s2257_s26 + $0x50] sm:$0xff] %v1144_v46 }
 0x287   : > { %1289 = vst [vmem:[%s2257_s26 + $0x58] sm:$0xff] %v1146_v48 }
 0x289   : > { %v1149_v49 = vpop.f32.mrb[12].mxu1 }
 0x28a   : > { %v1150_v50 = vadd.f32 %v1149_v49, %v2247_v37  ;;  %v1151_v51 = vpop.f32.mrb[13].mxu1 }
 0x28b   : > { %v1152_v52 = vadd.f32 %v1151_v51, %v2251_v38  ;;  %v1153_v53 = vpop.f32.mrb[14].mxu1 }
 0x28c   : > { %1290 = vst [vmem:[%s2257_s26 + $0x60] sm:$0xff] %v1150_v50  ;;  %v1154_v54 = vadd.f32 %v1153_v53, %v2247_v37  ;;  %v1155_v55 = vpop.f32.mrb[15].mxu1 }
 0x28d   : > { %1291 = vst [vmem:[%s2257_s26 + $0x68] sm:$0xff] %v1152_v52  ;;  %v1156_v56 = vadd.f32 %v1155_v55, %v2251_v38 }
 0x28e   : > { %1292 = vst [vmem:[%s2257_s26 + $0x70] sm:$0xff] %v1154_v54 }
 0x28f   : > { %1293 = vst [vmem:[%s2257_s26 + $0x78] sm:$0xff] %v1156_v56 }
 0x291   : > { %v1159_v57 = vpop.f32.mrb[16].mxu1 }
 0x292   : > { %v1160_v58 = vadd.f32 %v1159_v57, %v2247_v37  ;;  %v1161_v59 = vpop.f32.mrb[17].mxu1 }
 0x293   : > { %v1162_v60 = vadd.f32 %v1161_v59, %v2251_v38  ;;  %v1163_v61 = vpop.f32.mrb[18].mxu1 }
 0x294   : > { %1294 = vst [vmem:[%s2257_s26 + $0x80] sm:$0xff] %v1160_v58  ;;  %v1164_v62 = vadd.f32 %v1163_v61, %v2247_v37  ;;  %v1165_v63 = vpop.f32.mrb[19].mxu1 }
 0x295   : > { %1295 = vst [vmem:[%s2257_s26 + $0x88] sm:$0xff] %v1162_v60  ;;  %v1166_v0 = vadd.f32 %v1165_v63, %v2251_v38 }
 0x296   : > { %1296 = vst [vmem:[%s2257_s26 + $0x90] sm:$0xff] %v1164_v62 }
 0x297   : > { %1297 = vst [vmem:[%s2257_s26 + $0x98] sm:$0xff] %v1166_v0 }
 0x299   : > { %v1169_v1 = vpop.f32.mrb[20].mxu1 }
 0x29a   : > { %v1170_v2 = vadd.f32 %v1169_v1, %v2247_v37  ;;  %v1171_v3 = vpop.f32.mrb[21].mxu1 }
 0x29b   : > { %v1172_v4 = vadd.f32 %v1171_v3, %v2251_v38  ;;  %v1173_v5 = vpop.f32.mrb[22].mxu1 }
 0x29c   : > { %1298 = vst [vmem:[%s2257_s26 + $0xa0] sm:$0xff] %v1170_v2  ;;  %v1174_v6 = vadd.f32 %v1173_v5, %v2247_v37  ;;  %v1175_v7 = vpop.f32.mrb[23].mxu1 }
 0x29d   : > { %1299 = vst [vmem:[%s2257_s26 + $0xa8] sm:$0xff] %v1172_v4  ;;  %v1176_v8 = vadd.f32 %v1175_v7, %v2251_v38 }
 0x29e   : > { %1300 = vst [vmem:[%s2257_s26 + $0xb0] sm:$0xff] %v1174_v6 }
 0x29f   : > { %1301 = vst [vmem:[%s2257_s26 + $0xb8] sm:$0xff] %v1176_v8 }
 0x2a1   : > { %v1179_v9 = vpop.f32.mrb[24].mxu1 }
 0x2a2   : > { %v1180_v10 = vadd.f32 %v1179_v9, %v2247_v37  ;;  %v1181_v11 = vpop.f32.mrb[25].mxu1 }
 0x2a3   : > { %v1182_v12 = vadd.f32 %v1181_v11, %v2251_v38  ;;  %v1183_v13 = vpop.f32.mrb[26].mxu1 }
 0x2a4   : > { %1302 = vst [vmem:[%s2257_s26 + $0xc0] sm:$0xff] %v1180_v10  ;;  %v1184_v14 = vadd.f32 %v1183_v13, %v2247_v37  ;;  %v1185_v15 = vpop.f32.mrb[27].mxu1 }
 0x2a5   : > { %1303 = vst [vmem:[%s2257_s26 + $0xc8] sm:$0xff] %v1182_v12  ;;  %v1186_v16 = vadd.f32 %v1185_v15, %v2251_v38 }
 0x2a6   : > { %1304 = vst [vmem:[%s2257_s26 + $0xd0] sm:$0xff] %v1184_v14 }
 0x2a7   : > { %1305 = vst [vmem:[%s2257_s26 + $0xd8] sm:$0xff] %v1186_v16 }
 0x2a9   : > { %v1189_v17 = vpop.f32.mrb[28].mxu1 }
 0x2aa   : > { %v1190_v18 = vadd.f32 %v1189_v17, %v2247_v37  ;;  %v1191_v19 = vpop.f32.mrb[29].mxu1 }
 0x2ab   : > { %v1192_v20 = vadd.f32 %v1191_v19, %v2251_v38  ;;  %v1193_v21 = vpop.f32.mrb[30].mxu1 }
 0x2ac   : > { %1306 = vst [vmem:[%s2257_s26 + $0xe0] sm:$0xff] %v1190_v18  ;;  %v1194_v22 = vadd.f32 %v1193_v21, %v2247_v37  ;;  %v1195_v23 = vpop.f32.mrb[31].mxu1 }
 0x2ad   : > { %1307 = vst [vmem:[%s2257_s26 + $0xe8] sm:$0xff] %v1192_v20  ;;  %v1196_v24 = vadd.f32 %v1195_v23, %v2251_v38 }
 0x2ae   : > { %1308 = vst [vmem:[%s2257_s26 + $0xf0] sm:$0xff] %v1194_v22 }
 0x2af   : > { %1309 = vst [vmem:[%s2257_s26 + $0xf8] sm:$0xff] %v1196_v24 }
 0x2b1   : > { %v1199_v25 = vpop.f32.mrb[32].mxu1 }
 0x2b2   : > { %v1200_v26 = vadd.f32 %v1199_v25, %v2247_v37  ;;  %v1201_v27 = vpop.f32.mrb[33].mxu1 }
 0x2b3   : > { %v1202_v33 = vadd.f32 %v1201_v27, %v2251_v38  ;;  %v1203_v34 = vpop.f32.mrb[34].mxu1 }
 0x2b4   : > { %1310 = vst [vmem:[%s2257_s26 + $0x100] sm:$0xff] %v1200_v26  ;;  %v1204_v36 = vadd.f32 %v1203_v34, %v2247_v37  ;;  %v1205_v28 = vpop.f32.mrb[35].mxu1 }
 0x2b5   : > { %1311 = vst [vmem:[%s2257_s26 + $0x108] sm:$0xff] %v1202_v33  ;;  %v1206_v29 = vadd.f32 %v1205_v28, %v2251_v38 }
 0x2b6   : > { %1312 = vst [vmem:[%s2257_s26 + $0x110] sm:$0xff] %v1204_v36 }
 0x2b7   : > { %1313 = vst [vmem:[%s2257_s26 + $0x118] sm:$0xff] %v1206_v29 }
 0x2b9   : > { %v1209_v30 = vpop.f32.mrb[36].mxu1 }
 0x2ba   : > { %v1210_v31 = vadd.f32 %v1209_v30, %v2247_v37  ;;  %v1211_v32 = vpop.f32.mrb[37].mxu1 }
 0x2bb   : > { %v1212_v35 = vadd.f32 %v1211_v32, %v2251_v38  ;;  %v1213_v39 = vpop.f32.mrb[38].mxu1 }
 0x2bc   : > { %1314 = vst [vmem:[%s2257_s26 + $0x120] sm:$0xff] %v1210_v31  ;;  %v1214_v40 = vadd.f32 %v1213_v39, %v2247_v37  ;;  %v1215_v41 = vpop.f32.mrb[39].mxu1 }
 0x2bd   : > { %1315 = vst [vmem:[%s2257_s26 + $0x128] sm:$0xff] %v1212_v35  ;;  %v1216_v42 = vadd.f32 %v1215_v41, %v2251_v38 }
 0x2be   : > { %1316 = vst [vmem:[%s2257_s26 + $0x130] sm:$0xff] %v1214_v40 }
 0x2bf   : > { %1317 = vst [vmem:[%s2257_s26 + $0x138] sm:$0xff] %v1216_v42 }
 0x2c1   : > { %v1219_v43 = vpop.f32.mrb[40].mxu1 }
 0x2c2   : > { %v1220_v44 = vadd.f32 %v1219_v43, %v2247_v37  ;;  %v1221_v45 = vpop.f32.mrb[41].mxu1 }
 0x2c3   : > { %v1222_v46 = vadd.f32 %v1221_v45, %v2251_v38  ;;  %v1223_v47 = vpop.f32.mrb[42].mxu1 }
 0x2c4   : > { %1318 = vst [vmem:[%s2257_s26 + $0x140] sm:$0xff] %v1220_v44  ;;  %v1224_v48 = vadd.f32 %v1223_v47, %v2247_v37  ;;  %v1225_v49 = vpop.f32.mrb[43].mxu1 }
 0x2c5   : > { %1319 = vst [vmem:[%s2257_s26 + $0x148] sm:$0xff] %v1222_v46  ;;  %v1226_v50 = vadd.f32 %v1225_v49, %v2251_v38 }
 0x2c6   : > { %1320 = vst [vmem:[%s2257_s26 + $0x150] sm:$0xff] %v1224_v48 }
 0x2c7   : > { %1321 = vst [vmem:[%s2257_s26 + $0x158] sm:$0xff] %v1226_v50 }
 0x2c9   : > { %v1229_v51 = vpop.f32.mrb[44].mxu1 }
 0x2ca   : > { %v1230_v52 = vadd.f32 %v1229_v51, %v2247_v37  ;;  %v1231_v53 = vpop.f32.mrb[45].mxu1 }
 0x2cb   : > { %v1232_v54 = vadd.f32 %v1231_v53, %v2251_v38  ;;  %v1233_v55 = vpop.f32.mrb[46].mxu1 }
 0x2cc   : > { %1322 = vst [vmem:[%s2257_s26 + $0x160] sm:$0xff] %v1230_v52  ;;  %v1234_v56 = vadd.f32 %v1233_v55, %v2247_v37  ;;  %v1235_v57 = vpop.f32.mrb[47].mxu1 }
 0x2cd   : > { %1323 = vst [vmem:[%s2257_s26 + $0x168] sm:$0xff] %v1232_v54  ;;  %v1236_v58 = vadd.f32 %v1235_v57, %v2251_v38 }
 0x2ce   : > { %1324 = vst [vmem:[%s2257_s26 + $0x170] sm:$0xff] %v1234_v56 }
 0x2cf   : > { %1325 = vst [vmem:[%s2257_s26 + $0x178] sm:$0xff] %v1236_v58 }
 0x2d1   : > { %v1239_v59 = vpop.f32.mrb[48].mxu1 }
 0x2d2   : > { %v1240_v60 = vadd.f32 %v1239_v59, %v2247_v37  ;;  %v1241_v61 = vpop.f32.mrb[49].mxu1 }
 0x2d3   : > { %v1242_v62 = vadd.f32 %v1241_v61, %v2251_v38  ;;  %v1243_v63 = vpop.f32.mrb[50].mxu1 }
 0x2d4   : > { %1326 = vst [vmem:[%s2257_s26 + $0x180] sm:$0xff] %v1240_v60  ;;  %v1244_v0 = vadd.f32 %v1243_v63, %v2247_v37  ;;  %v1245_v1 = vpop.f32.mrb[51].mxu1 }
 0x2d5   : > { %1327 = vst [vmem:[%s2257_s26 + $0x188] sm:$0xff] %v1242_v62  ;;  %v1246_v2 = vadd.f32 %v1245_v1, %v2251_v38 }
 0x2d6   : > { %1328 = vst [vmem:[%s2257_s26 + $0x190] sm:$0xff] %v1244_v0 }
 0x2d7   : > { %1329 = vst [vmem:[%s2257_s26 + $0x198] sm:$0xff] %v1246_v2 }
 0x2d9   : > { %v1249_v3 = vpop.f32.mrb[52].mxu1 }
 0x2da   : > { %v1250_v4 = vadd.f32 %v1249_v3, %v2247_v37  ;;  %v1251_v5 = vpop.f32.mrb[53].mxu1 }
 0x2db   : > { %v1252_v6 = vadd.f32 %v1251_v5, %v2251_v38  ;;  %v1253_v7 = vpop.f32.mrb[54].mxu1 }
 0x2dc   : > { %1330 = vst [vmem:[%s2257_s26 + $0x1a0] sm:$0xff] %v1250_v4  ;;  %v1254_v8 = vadd.f32 %v1253_v7, %v2247_v37  ;;  %v1255_v9 = vpop.f32.mrb[55].mxu1 }
 0x2dd   : > { %1331 = vst [vmem:[%s2257_s26 + $0x1a8] sm:$0xff] %v1252_v6  ;;  %v1256_v10 = vadd.f32 %v1255_v9, %v2251_v38 }
 0x2de   : > { %1332 = vst [vmem:[%s2257_s26 + $0x1b0] sm:$0xff] %v1254_v8 }
 0x2df   : > { %1333 = vst [vmem:[%s2257_s26 + $0x1b8] sm:$0xff] %v1256_v10 }
 0x2e1   : > { %v1259_v11 = vpop.f32.mrb[56].mxu1 }
 0x2e2   : > { %v1260_v12 = vadd.f32 %v1259_v11, %v2247_v37  ;;  %v1261_v13 = vpop.f32.mrb[57].mxu1 }
 0x2e3   : > { %v1262_v14 = vadd.f32 %v1261_v13, %v2251_v38  ;;  %v1263_v15 = vpop.f32.mrb[58].mxu1 }
 0x2e4   : > { %1334 = vst [vmem:[%s2257_s26 + $0x1c0] sm:$0xff] %v1260_v12  ;;  %v1264_v16 = vadd.f32 %v1263_v15, %v2247_v37  ;;  %v1265_v17 = vpop.f32.mrb[59].mxu1 }
 0x2e5   : > { %1335 = vst [vmem:[%s2257_s26 + $0x1c8] sm:$0xff] %v1262_v14  ;;  %v1266_v18 = vadd.f32 %v1265_v17, %v2251_v38 }
 0x2e6   : > { %1336 = vst [vmem:[%s2257_s26 + $0x1d0] sm:$0xff] %v1264_v16 }
 0x2e7   : > { %1337 = vst [vmem:[%s2257_s26 + $0x1d8] sm:$0xff] %v1266_v18 }
 0x2e9   : > { %v1269_v19 = vpop.f32.mrb[60].mxu1  ;;  %1349 = sbr.rel (!%p2468_p8) target bundleno = 780 (0x30c), region = 56 }
 0x2ea   : > { %v1270_v20 = vadd.f32 %v1269_v19, %v2247_v37  ;;  %v1271_v21 = vpop.f32.mrb[61].mxu1 }
 0x2eb   : > { %v1272_v22 = vadd.f32 %v1271_v21, %v2251_v38  ;;  %v1273_v23 = vpop.f32.mrb[62].mxu1 }
 0x2ec   : > { %1338 = vst [vmem:[%s2257_s26 + $0x1e0] sm:$0xff] %v1270_v20  ;;  %v1274_v24 = vadd.f32 %v1273_v23, %v2247_v37  ;;  %v1275_v25 = vpop.f32.mrb[63].mxu1 }
 0x2ed   : > { %1339 = vst [vmem:[%s2257_s26 + $0x1e8] sm:$0xff] %v1272_v22  ;;  %v1276_v26 = vadd.f32 %v1275_v25, %v2251_v38 }
 0x2ee   : > { %1340 = vst [vmem:[%s2257_s26 + $0x1f0] sm:$0xff] %v1274_v24 }
 0x2ef   : > { %1341 = vst [vmem:[%s2257_s26 + $0x1f8] sm:$0xff] %v1276_v26 }
 0x2f0   : > { %s2478_s23 = smov (!%p1352_p9, %s1351_s23), 32 }
 0x2f1   : > { %s2389_s12 = sshll.u32 %s2478_s23, 8 }
 0x2f2   : > { %s1357_s28 = ssub.s32 8192, %s2389_s12 }
 0x2f3   : > { %1358 = vsyncadd %s1343_s9, %s1357_s28  ;;  %p1543_p10 = scmp.ne.s32.totalorder %s2389_s12, 0  ;;  %s1555_s30 = sshll.u32 %s1935_s22, 13 }
 0x2f4   : > { %s2399_s27 = scalar_lea.hbm %s2452_s5, %s1555_s30  ;;  %s1364_s14 = sshll.u32 %s2257_s26, 4  ;;  %s2402_s14 = int_to_ptr.vmem [resolvable:$true] %s1364_s14 }
 0x2f5   : > { %s1802_s15 = scalar_lea.vmem %s2402_s14, %s2389_s12  ;;  %s1881_s16 = smov [#allocation8]  }
 0x2f6   : > { %p1803_p1 = scmp.ne.s32.totalorder %s2402_s14, %s1802_s15  ;;  %s1806_s29 = sshll.u32 %s1881_s16, 4  ;;  %s1807_s29 = int_to_ptr.vmem [resolvable:$false] %s1806_s29 }
 0x2f7   : > { %s1808_s22 = scalar_lea.vmem %s1807_s29, 16384  ;;  %p1809_p3 = scmp.lt.s32.totalorder %s2402_s14, %s1807_s29 }
 0x2f8   : > { %p1804_p4 = pnand %p1803_p1, %p1543_p10  ;;  %p1810_p6 = scmp.lt.s32.totalorder %s1808_s22, %s1802_s15 }
 0x2fa   : > { %p1805_p5 = pneg %p1804_p4  ;;  %p1811_p11 = por %p1810_p6, %p1809_p3 }
 0x2fc   : > { %p1812_p13 = pnand %p1811_p11, %p1805_p5 }
 0x2fe   : > { %1815 = shalt.err (!%p1812_p13)
}
 0x2ff   : > { %s1816_s7 = scalar_lea.hbm %s2399_s27, %s2389_s12  ;;  %s1820_s26 = scalar_lea.hbm %s2452_s5, 19200 }
 0x300   : > { %p1817_p12 = scmp.ne.s32.totalorder %s2399_s27, %s1816_s7  ;;  %p1821_p7 = scmp.lt.u32.totalorder %s2399_s27, %s2452_s5 }
 0x301   : > { %p1822_p8 = scmp.lt.u32.totalorder %s1820_s26, %s1816_s7  ;;  %p1824_p1 = scmp.lt.u32.totalorder %s1816_s7, %s2399_s27 }
 0x302   : > { %p1818_p0 = pnand %p1817_p12, %p1543_p10 }
 0x303   : > { %p1823_p9 = por %p1822_p8, %p1821_p7 }
 0x304   : > { %p1819_p2 = pneg %p1818_p0 }
 0x305   : > { %p1825_p4 = por %p1824_p1, %p1823_p9 }
 0x307   : > { %p1826_p5 = pnand %p1825_p4, %p1819_p2 }
 0x309   : > { %1829 = shalt.err (!%p1826_p5)
}
 0x30a   : > { %s1882_s28 = smov 256   ;;  %s1883_s30 = smov 16  }
 0x30b   : > { %1370 = dma.vmem_to_hbm [thread:$0]  (%p1543_p10), %s2402_s14, %s2389_s12, %s2399_s27, %s1343_s9, %s1882_s28, %s1882_s28, %s1883_s30  }
 0x30c PF: > { %p1581_p3 = scmp.ge.s32.totalorder %s1872_s21, 2  ;;  %s1379_s8 = sand.u32 1, %s1860_s18  }
 0x30d   : > { %p2469_p6 = scmp.ne.s32.totalorder %s2460_s6, 0  ;;  %s1380_s11 = scalar_lea.sflag [#allocation4], %s1379_s8 }
 0x30f   : > { %p1574_p11 = pnand %p1581_p3, %p2469_p6 }
 0x311   : > { %1855 = dma.done.wait (!%p1574_p11), %s1380_s11, 8192  }
 0x312   : > { %1857 = vsyncadd (!%p1574_p11), %s1380_s11, 4294959104  ;;  %s2470_s15 = sld [smem:[#allocation12_spill]]  ;;  %p19_p13 = scmp.ge.s32.totalorder %s1939_s24, 5  }
 0x313   : > { %s2471_s18 = smov %s1864_s19  ;;  %s2472_s19 = smov %s1868_s20 }
 0x314   : > { %s2474_s21 = smov %s1939_s24  ;;  %21 = sbr.rel (!%p19_p13) target bundleno = 6 (0x6), region = 93 }
 0x318   : > { %s2473_s20 = smov %s2470_s15 }
 0x31b   :  { %1385 = vsyncpa [#allocation3], 1 }
 0x31c   :  { %1387 = vsyncpa [#allocation3 + $0x1], 1 }
 0x31d   :  { %1388 = vsyncpa [#allocation6], 1 }
 0x31e   :  { %1389 = vsyncpa [#allocation4], 1 }
 0x31f   :  { %1391 = vsyncpa [#allocation4 + $0x1], 1 }

// kernel: tpu_custom_call.1
= control target key start
LH: loop header
LB: loop body
LE: loop exit
PB: predicated region body
PF: predicated region fallthrough
CT: control target
= control target key end

     0   :  { %10 = vsyncpa [#allocation3], 0  ;;  %s2447_s0 = inlined_call_operand.hbm [shape: f32[600,256], index: 0, kind: input, shape index: {}]   ;;  %s2448_s1 = inlined_call_operand.hbm [shape: bf16[256,256], index: 1, kind: input, shape index: {}]   ;;  %s2449_s2 = inlined_call_operand.vmem [shape: f32[1,256], index: 2, kind: input, shape index: {}]   ;;  %s2450_s3 = inlined_call_operand.hbm [shape: bf16[256,256], index: 3, kind: input, shape index: {}]   ;;  %s2451_s4 = inlined_call_operand.vmem [shape: f32[1,256], index: 4, kind: input, shape index: {}]   ;;  %s2452_s5 = inlined_call_operand.hbm [shape: f32[600,256], index: 5, kind: output, shape index: {}]  }
   0x1   :  { %12 = vsyncpa [#allocation3 + $0x1], 0 }
   0x2   :  { %13 = vsyncpa [#allocation6], 0 }
   0x3   :  { %14 = vsyncpa [#allocation4], 0 }
   0x4   :  { %16 = vsyncpa [#allocation4 + $0x1], 0  ;;  %s1914_s18 = smov 0   ;;  %s1916_s19 = smov 0  }
   0x5   :  { %s1918_s20 = smov 0   ;;  %s1920_s21 = smov 0  }
   0x6 LB: > { %s1935_s22 = sadd.s32 4294967295, %s1872_s21   ;;  %s1456_s23 = sadd.s32 4294967294, %s1872_s21   ;;  %s1872_s21 = sphi %s1920_s21, %s2474_s21   ;;  %s1868_s20 = sphi %s1918_s20, %s2473_s20   ;;  %s1864_s19 = sphi %s1916_s19, %s2472_s19   ;;  %s1860_s18 = sphi %s1914_s18, %s2471_s18  }
   0x7   : > { %s1939_s24 = sadd.s32 1, %s1872_s21   ;;  %s29_s25 = sadd.s32 1, %s1868_s20 }
   0x8   : > { %s26_s26 = ssub.s32 %s1872_s21, %s1939_s24  ;;  %p36_p0 = scmp.ne.s32.totalorder %s1868_s20, %s1864_s19 }
   0x9   : > { %p27_p1 = scmp.eq.s32.totalorder %s26_s26, 0  ;;  %p37_p2 = scmp.eq.s32.totalorder %s1872_s21, 0 }
   0xa   : > { %p42_p3 = scmp.ne.s32.totalorder %s1864_s19, %s1860_s18  ;;  %p2453_p4 = scmp.eq.s32.totalorder %s1935_s22, 0 }
   0xb   : > { %s1951_s27 = scalar_select %p27_p1, %s1868_s20, %s29_s25  }
   0xc   : > { %p1953_p5 = por %p37_p2, %p36_p0  ;;  %p1959_p6 = por %p2453_p4, %p42_p3 }
   0xd   : > { %2456 = sst [smem:[#allocation12_spill]] %s1951_s27  ;;  %p150_p7 = scmp.eq.s32.totalorder %s1935_s22, 2 }
   0xe   : > { %s2457_s28 = scalar_select %p1953_p5, 1, 0 }
   0xf   : > { %s2458_s29 = scalar_select %p1959_p6, 1, 0 }
  0x10   : > { %p156_p8 = scmp.eq.s32.totalorder %s1456_s23, 2  ;;  %p1457_p9 = scmp.ge.s32.totalorder %s1872_s21, 1 }
  0x11   : > { %p163_p10 = scmp.lt.s32.totalorder %s1872_s21, 4  ;;  %p1966_p11 = por %p150_p7, %p36_p0 }
  0x12   : > { %p1970_p12 = por %p156_p8, %p42_p3  ;;  %s1874_s8 = smov [#allocation5]  }
  0x13   : > { %s2459_s30 = scalar_select %p1966_p11, 1, 0 }
  0x14   : > { %s2460_s6 = scalar_select %p1970_p12, 1, 0 }
  0x15   : > { %p1974_p13 = pnand %p1457_p9, %p163_p10  ;;  %s175_s9 = sshll.u32 %s1874_s8, 4  ;;  %s176_s9 = int_to_ptr.vmem [resolvable:$true] %s175_s9 }
  0x16   : > { %s1875_s11 = smov [#allocation7]   ;;  %s1718_s15 = scalar_lea.hbm %s2448_s1, 4096 }
  0x17   : > { %s2461_s7 = scalar_select %p1974_p13, 1, 0 }
  0x18   : > { %p1566_p1 = pneg %p1974_p13  ;;  %s191_s12 = sshll.u32 %s1875_s11, 4  ;;  %s1986_s12 = int_to_ptr.vmem [resolvable:$true] %s191_s12 }
  0x19   : > { %p1719_p0 = scmp.ne.s32.totalorder %s2448_s1, %s1718_s15  ;;  %p1725_p9 = scmp.lt.u32.totalorder %s1718_s15, %s2448_s1 }
  0x1a   : > { %p1982_p2 = pnand %p1566_p1, %p2453_p4 }
  0x1c   : > { %p1720_p3 = pneg %p1982_p2 }
  0x1e   : > { %p1721_p7 = pnand %p1720_p3, %p1719_p0 }
  0x20   : > { %p1722_p8 = pneg %p1721_p7 }
  0x22   : > { %p1727_p10 = pnand %p1725_p9, %p1722_p8 }
  0x24   : > { %1730 = shalt.err (!%p1727_p10)
}
  0x25   : > { %s1731_s26 = scalar_lea.vmem %s176_s9, 4096  ;;  %p1739_p11 = scmp.lt.s32.totalorder %s176_s9, %s176_s9 }
  0x26   : > { %p1732_p1 = scmp.ne.s32.totalorder %s176_s9, %s1731_s26  ;;  %p1740_p6 = scmp.lt.s32.totalorder %s1731_s26, %s1731_s26 }
  0x28   : > { %p1734_p4 = pnand %p1732_p1, %p1720_p3  ;;  %p1741_p13 = por %p1740_p6, %p1739_p11 }
  0x2a   : > { %p1735_p12 = pneg %p1734_p4 }
  0x2c   : > { %p1742_p5 = pnand %p1741_p13, %p1735_p12 }
  0x2e   : > { %1745 = shalt.err (!%p1742_p5)
}
  0x2f   : > { %s1876_s8 = smov 128   ;;  %s1877_s11 = smov 8  }
  0x30   : > { %1569 = dma.hbm_to_vmem [thread:$0]  (!%p1982_p2), %s2448_s1, 4096, %s176_s9, [#allocation6], %s1876_s8, %s1876_s8, %s1877_s11  }
  0x31   : > { %s1746_s17 = scalar_lea.hbm %s2450_s3, 4096 }
  0x32   : > { %p1747_p4 = scmp.ne.s32.totalorder %s2450_s3, %s1746_s17  ;;  %p1753_p11 = scmp.lt.u32.totalorder %s1746_s17, %s2450_s3 }
  0x34   : > { %p1749_p5 = pnand %p1747_p4, %p1720_p3 }
  0x36   : > { %p1750_p6 = pneg %p1749_p5 }
  0x38   : > { %p1755_p12 = pnand %p1753_p11, %p1750_p6 }
  0x3a   : > { %1758 = shalt.err (!%p1755_p12)
}
  0x3b   : > { %s1759_s9 = scalar_lea.vmem %s1986_s12, 4096  ;;  %p1767_p8 = scmp.lt.s32.totalorder %s1986_s12, %s1986_s12 }
  0x3c   : > { %p1760_p13 = scmp.ne.s32.totalorder %s1986_s12, %s1759_s9  ;;  %p1768_p9 = scmp.lt.s32.totalorder %s1759_s9, %s1759_s9 }
  0x3e   : > { %p1762_p0 = pnand %p1760_p13, %p1720_p3  ;;  %p1769_p10 = por %p1768_p9, %p1767_p8 }
  0x40   : > { %p1763_p7 = pneg %p1762_p0 }
  0x42   : > { %p1770_p1 = pnand %p1769_p10, %p1763_p7 }
  0x44   : > { %1773 = shalt.err (!%p1770_p1)
}
  0x45   : > { %1572 = dma.hbm_to_vmem [thread:$0]  (!%p1982_p2), %s2450_s3, 4096, %s1986_s12, [#allocation6], %s1876_s8, %s1876_s8, %s1877_s11  }
  0x46   : > { %p1460_p4 = scmp.ge.s32.totalorder %s1872_s21, 3 }
  0x47   : > { %p2463_p5 = scmp.ne.s32.totalorder (!%p1460_p4), %s2457_s28, 0 }
  0x48   : > { %204 = sbr.rel (%p1460_p4) target bundleno = 114 (0x72), region = 32 }
  0x4f   : > { %207 = sbr.rel (!%p2463_p5) target bundleno = 114 (0x72), region = 36  ;;  %s208_s14 = sand.u32 (%p2463_p5), 1, %s1868_s20  }
  0x50   : > { %s1462_s15 = sshll.u32 (%p2463_p5), %s1872_s21, 5  ;;  %s1461_s16 = sshll.u32 (%p2463_p5), %s208_s14, 9 }
  0x51   : > { %s214_s17 = ssub.s32 (%p2463_p5), 75, %s1462_s15  ;;  %s2043_s25 = scalar_lea.sflag (%p2463_p5), [#allocation3], %s208_s14 }
  0x52   : > { %p215_p3 = scmp.lt.s32.totalorder (%p2463_p5), %s214_s17, 32  ;;  %s212_s12 = scalar_lea.vmem (%p2463_p5), [#allocation2], %s1461_s16 }
  0x56   : > { %s2476_s17 = smov (!%p215_p3, %s214_s17), 32 }
  0x57   : > { %s2040_s10 = sshll.u32 %s2476_s17, 8 }
  0x58   : > { %s220_s23 = ssub.s32 8192, %s2040_s10 }
  0x59   : > { %221 = vsyncadd %s2043_s25, %s220_s23  ;;  %p1465_p2 = scmp.ne.s32.totalorder %s2040_s10, 0  ;;  %s1552_s28 = sshll.u32 %s1872_s21, 13 }
  0x5a   : > { %s2051_s26 = scalar_lea.hbm %s2447_s0, %s1552_s28  ;;  %s227_s9 = sshll.u32 %s212_s12, 4  ;;  %s2053_s9 = int_to_ptr.vmem [resolvable:$true] %s227_s9 }
  0x5b   : > { %s1774_s27 = scalar_lea.hbm %s2051_s26, %s2040_s10  ;;  %s1778_s15 = scalar_lea.hbm %s2447_s0, 19200 }
  0x5c   : > { %p1775_p6 = scmp.ne.s32.totalorder %s2051_s26, %s1774_s27  ;;  %p1779_p13 = scmp.lt.u32.totalorder %s2051_s26, %s2447_s0 }
  0x5d   : > { %p1780_p0 = scmp.lt.u32.totalorder %s1778_s15, %s1774_s27  ;;  %p1782_p8 = scmp.lt.u32.totalorder %s1774_s27, %s2051_s26 }
  0x5e   : > { %p1776_p11 = pnand %p1775_p6, %p1465_p2 }
  0x5f   : > { %p1781_p7 = por %p1780_p0, %p1779_p13 }
  0x60   : > { %p1777_p12 = pneg %p1776_p11 }
  0x61   : > { %p1783_p9 = por %p1782_p8, %p1781_p7 }
  0x63   : > { %p1784_p10 = pnand %p1783_p9, %p1777_p12 }
  0x65   : > { %1787 = shalt.err (!%p1784_p10)
}
  0x66   : > { %s1788_s23 = scalar_lea.vmem %s2053_s9, %s2040_s10  ;;  %s1878_s12 = smov [#allocation2]  }
  0x67   : > { %p1789_p1 = scmp.ne.s32.totalorder %s2053_s9, %s1788_s23  ;;  %s1792_s28 = sshll.u32 %s1878_s12, 4  ;;  %s1793_s28 = int_to_ptr.vmem [resolvable:$false] %s1792_s28 }
  0x68   : > { %s1794_s8 = scalar_lea.vmem %s1793_s28, 16384  ;;  %p1795_p3 = scmp.lt.s32.totalorder %s2053_s9, %s1793_s28 }
  0x69   : > { %p1790_p4 = pnand %p1789_p1, %p1465_p2  ;;  %p1796_p6 = scmp.lt.s32.totalorder %s1794_s8, %s1788_s23 }
  0x6b   : > { %p1791_p5 = pneg %p1790_p4  ;;  %p1797_p11 = por %p1796_p6, %p1795_p3 }
  0x6d   : > { %p1798_p13 = pnand %p1797_p11, %p1791_p5 }
  0x6f   : > { %1801 = shalt.err (!%p1798_p13)
}
  0x70   : > { %s1879_s11 = smov 256   ;;  %s1880_s27 = smov 16  }
  0x71   : > { %233 = dma.hbm_to_vmem [thread:$0]  (%p1465_p2), %s2051_s26, %s2040_s10, %s2053_s9, %s2043_s25, %s1879_s11, %s1879_s11, %s1880_s27  }
  0x72 PF: > { %p2464_p12 = scmp.ne.s32.totalorder %s2461_s7, 0 }
  0x73   : > { %s2083_s13 = sand.u32 (!%p2464_p12), 1, %s1864_s19   ;;  %p2465_p0 = scmp.ne.s32.totalorder (!%p2464_p12), %s2458_s29, 0 }
  0x74   : > { %239 = sbr.rel (%p2464_p12) target bundleno = 780 (0x30c), region = 40  ;;  %s1471_s14 = sshll.u32 (!%p2464_p12), %s2083_s13, 9 }
  0x75   : > { %s242_s15 = scalar_lea.sflag (!%p2464_p12), [#allocation3], %s2083_s13  ;;  %s2089_s16 = scalar_lea.vmem (!%p2464_p12), [#allocation2], %s1471_s14 }
  0x7b   : > { %1847 = dma.done.wait (%p2465_p0), %s242_s15, 8192  }
  0x7c   : > { %1849 = vsyncadd (%p2465_p0), %s242_s15, 4294959104  ;;  %p2466_p2 = scmp.eq.s32.totalorder %s1935_s22, 0 }
  0x7e   : > { %1851 = dma.done.wait (%p2466_p2), [#allocation6], 8192   ;;  %p2467_p7 = pmov %p2466_p2 }
  0x7f   : > { %v1622_v0 = vld [vmem:[#allocation5 + $0x4] ss:$8 sps:$4 sm:$0xff]   ;;  %v1624_v1 = vld [vmem:[#allocation5] ss:$8 sps:$4 sm:$0xff]   ;;  %v1625_v2 = vld [vmem:[#allocation5 + $0x14] ss:$8 sps:$4 sm:$0xff]  }
  0x80   : > { %1853 = vsyncadd (%p2467_p7), [#allocation6], 4294959104  ;;  %592 = vmatprep.subr.bf16.mxu0 %v1622_v0  ;;  %v1627_v3 = vld [vmem:[#allocation5 + $0x10] ss:$8 sps:$4 sm:$0xff]   ;;  %v1628_v4 = vld [vmem:[#allocation5 + $0x24] ss:$8 sps:$4 sm:$0xff]  }
  0x81   : > { %593 = vmatpush1.bf16.msra.mxu0 %v1624_v1  ;;  %v1630_v5 = vld [vmem:[#allocation5 + $0x20] ss:$8 sps:$4 sm:$0xff]   ;;  %v1631_v6 = vld [vmem:[#allocation5 + $0x34] ss:$8 sps:$4 sm:$0xff]   ;;  %v1633_v7 = vld [vmem:[#allocation5 + $0x30] ss:$8 sps:$4 sm:$0xff]  }
  0x82   : > { %594 = vmatprep.subr.bf16.mxu0 %v1625_v2  ;;  %v1634_v8 = vld [vmem:[#allocation5 + $0x44] ss:$8 sps:$4 sm:$0xff]   ;;  %v1636_v9 = vld [vmem:[#allocation5 + $0x40] ss:$8 sps:$4 sm:$0xff]   ;;  %v1637_v10 = vld [vmem:[#allocation5 + $0x54] ss:$8 sps:$4 sm:$0xff]  }
  0x83   : > { %v1639_v11 = vld [vmem:[#allocation5 + $0x50] ss:$8 sps:$4 sm:$0xff]   ;;  %v1640_v12 = vld [vmem:[#allocation5 + $0x64] ss:$8 sps:$4 sm:$0xff]   ;;  %v1642_v16 = vld [vmem:[#allocation5 + $0x60] ss:$8 sps:$4 sm:$0xff]  }
  0x84   : > { %v293_v13 = vld [vmem:[%s2089_s16 + $0x8] sm:$0xff]  ;;  %v295_v14 = vld [vmem:[%s2089_s16 + $0x18] sm:$0xff]  ;;  %v292_v38 = vld [vmem:[%s2089_s16] sm:$0xff]  ;;  %s2257_s26 = scalar_lea.vmem [#allocation8], %s1471_s14  ;;  %s1343_s9 = scalar_lea.sflag [#allocation4], %s2083_s13 }
  0x85   : > { %595 = vmatpush1.bf16.msra.mxu0 %v1627_v3  ;;  %v357_v15 = vpack.c.bf16 %v295_v14, %v293_v13  ;;  %v1643_v17 = vld [vmem:[#allocation5 + $0x74] ss:$8 sps:$4 sm:$0xff]   ;;  %v1645_v18 = vld [vmem:[#allocation5 + $0x70] ss:$8 sps:$4 sm:$0xff]   ;;  %v1646_v19 = vld [vmem:[#allocation5 + $0x84] ss:$8 sps:$4 sm:$0xff]  }
  0x86   : > { %596 = vmatprep.subr.bf16.mxu0 %v1628_v4  ;;  %v1648_v20 = vld [vmem:[#allocation5 + $0x80] ss:$8 sps:$4 sm:$0xff]   ;;  %v1649_v21 = vld [vmem:[#allocation5 + $0x94] ss:$8 sps:$4 sm:$0xff]   ;;  %v1651_v22 = vld [vmem:[#allocation5 + $0x90] ss:$8 sps:$4 sm:$0xff]  }
  0x87   : > { %624 = vmatprep.mubr.bf16.mxu0 %v357_v15  ;;  %v1652_v23 = vld [vmem:[#allocation5 + $0xa4] ss:$8 sps:$4 sm:$0xff]   ;;  %v1654_v24 = vld [vmem:[#allocation5 + $0xa0] ss:$8 sps:$4 sm:$0xff]   ;;  %v1655_v25 = vld [vmem:[#allocation5 + $0xb4] ss:$8 sps:$4 sm:$0xff]  }
  0x88   : > { %v1657_v26 = vld [vmem:[#allocation5 + $0xb0] ss:$8 sps:$4 sm:$0xff]   ;;  %v1658_v27 = vld [vmem:[#allocation5 + $0xc4] ss:$8 sps:$4 sm:$0xff]   ;;  %v1660_v28 = vld [vmem:[#allocation5 + $0xc0] ss:$8 sps:$4 sm:$0xff]  }
  0x89   : > { %597 = vmatpush1.bf16.msra.mxu0 %v1630_v5  ;;  %v1661_v29 = vld [vmem:[#allocation5 + $0xd4] ss:$8 sps:$4 sm:$0xff]   ;;  %v1663_v30 = vld [vmem:[#allocation5 + $0xd0] ss:$8 sps:$4 sm:$0xff]   ;;  %v1664_v31 = vld [vmem:[#allocation5 + $0xe4] ss:$8 sps:$4 sm:$0xff]  }
  0x8a   : > { %598 = vmatprep.subr.bf16.mxu0 %v1631_v6  ;;  %v1666_v32 = vld [vmem:[#allocation5 + $0xe0] ss:$8 sps:$4 sm:$0xff]   ;;  %v1667_v33 = vld [vmem:[#allocation5 + $0xf4] ss:$8 sps:$4 sm:$0xff]   ;;  %v1670_v34 = vld [vmem:[#allocation7 + $0x4] ss:$8 sps:$4 sm:$0xff]  }
  0x8b   : > { %v1672_v35 = vld [vmem:[#allocation7] ss:$8 sps:$4 sm:$0xff]   ;;  %v1673_v36 = vld [vmem:[#allocation7 + $0x14] ss:$8 sps:$4 sm:$0xff]   ;;  %v1669_v37 = vld [vmem:[#allocation5 + $0xf0] ss:$8 sps:$4 sm:$0xff]   ;;  %1085 = vmatprep.subr.bf16.mxu1 %v1670_v34 }
  0x8c   : > { %v294_v39 = vld [vmem:[%s2089_s16 + $0x10] sm:$0xff]  ;;  %v297_v40 = vld [vmem:[%s2089_s16 + $0x28] sm:$0xff]  ;;  %v299_v41 = vld [vmem:[%s2089_s16 + $0x38] sm:$0xff]  ;;  %1086 = vmatpush1.bf16.msra.mxu1 %v1672_v35  ;;  %p2468_p8 = scmp.ne.s32.totalorder %s2459_s30, 0 }
  0x8d   : > { %599 = vmatpush1.bf16.msra.mxu0 %v1633_v7  ;;  %v1675_v42 = vld [vmem:[#allocation7 + $0x10] ss:$8 sps:$4 sm:$0xff]   ;;  %v356_v43 = vpack.c.bf16 %v294_v39, %v292_v38  ;;  %1087 = vmatprep.subr.bf16.mxu1 %v1673_v36  ;;  %v1676_v44 = vld [vmem:[#allocation7 + $0x24] ss:$8 sps:$4 sm:$0xff]   ;;  %v359_v45 = vpack.c.bf16 %v299_v41, %v297_v40  ;;  %v1678_v46 = vld [vmem:[#allocation7 + $0x20] ss:$8 sps:$4 sm:$0xff]  }
  0x8e   : > { %600 = vmatprep.subr.bf16.mxu0 %v1634_v8  ;;  %v1679_v47 = vld [vmem:[#allocation7 + $0x34] ss:$8 sps:$4 sm:$0xff]   ;;  %v296_v48 = vld [vmem:[%s2089_s16 + $0x20] sm:$0xff]  ;;  %v301_v50 = vld [vmem:[%s2089_s16 + $0x48] sm:$0xff]  ;;  %s1540_s17 = sshll.u32 (%p2468_p8), %s1935_s22, 5 }
  0x8f   : > { %v298_v49 = vld [vmem:[%s2089_s16 + $0x30] sm:$0xff]  ;;  %v303_v51 = vld [vmem:[%s2089_s16 + $0x58] sm:$0xff]  ;;  %v1682_v54 = vld [vmem:[#allocation7 + $0x44] ss:$8 sps:$4 sm:$0xff]   ;;  %s1351_s23 = ssub.s32 (%p2468_p8), 75, %s1540_s17 }
  0x90   : > { %1088 = vmatpush1.bf16.msra.mxu1 %v1675_v42  ;;  %v1681_v52 = vld [vmem:[#allocation7 + $0x30] ss:$8 sps:$4 sm:$0xff]   ;;  %v358_v53 = vpack.c.bf16 %v298_v49, %v296_v48  ;;  %v361_v55 = vpack.c.bf16 %v303_v51, %v301_v50  ;;  %v1684_v56 = vld [vmem:[#allocation7 + $0x40] ss:$8 sps:$4 sm:$0xff]   ;;  %v1685_v57 = vld [vmem:[#allocation7 + $0x54] ss:$8 sps:$4 sm:$0xff]  }
  0x91   : > { %601 = vmatpush1.bf16.msra.mxu0 %v1636_v9  ;;  %1089 = vmatprep.subr.bf16.mxu1 %v1676_v44  ;;  %v300_v58 = vld [vmem:[%s2089_s16 + $0x40] sm:$0xff]  ;;  %v302_v59 = vld [vmem:[%s2089_s16 + $0x50] sm:$0xff]  ;;  %v305_v60 = vld [vmem:[%s2089_s16 + $0x68] sm:$0xff]  ;;  %p1352_p9 = scmp.lt.s32.totalorder (%p2468_p8), %s1351_s23, 32 }
  0x92   : > { %602 = vmatprep.subr.bf16.mxu0 %v1637_v10  ;;  %v307_v61 = vld [vmem:[%s2089_s16 + $0x78] sm:$0xff]  ;;  %v360_v63 = vpack.c.bf16 %v302_v59, %v300_v58  ;;  %v1688_v0 = vld [vmem:[#allocation7 + $0x64] ss:$8 sps:$4 sm:$0xff]   ;;  %v1690_v2 = vld [vmem:[#allocation7 + $0x60] ss:$8 sps:$4 sm:$0xff]  }
  0x93   : > { %v1687_v62 = vld [vmem:[#allocation7 + $0x50] ss:$8 sps:$4 sm:$0xff]   ;;  %v363_v1 = vpack.c.bf16 %v307_v61, %v305_v60  ;;  %v1691_v3 = vld [vmem:[#allocation7 + $0x74] ss:$8 sps:$4 sm:$0xff]   ;;  %v304_v4 = vld [vmem:[%s2089_s16 + $0x60] sm:$0xff] }
  0x94   : > { %1090 = vmatpush1.bf16.msra.mxu1 %v1678_v46  ;;  %v306_v5 = vld [vmem:[%s2089_s16 + $0x70] sm:$0xff]  ;;  %v309_v6 = vld [vmem:[%s2089_s16 + $0x88] sm:$0xff]  ;;  %v311_v7 = vld [vmem:[%s2089_s16 + $0x98] sm:$0xff] }
  0x95   : > { %603 = vmatpush1.bf16.msra.mxu0 %v1639_v11  ;;  %1091 = vmatprep.subr.bf16.mxu1 %v1679_v47  ;;  %v1693_v8 = vld [vmem:[#allocation7 + $0x70] ss:$8 sps:$4 sm:$0xff]   ;;  %v362_v9 = vpack.c.bf16 %v306_v5, %v304_v4  ;;  %v1694_v10 = vld [vmem:[#allocation7 + $0x84] ss:$8 sps:$4 sm:$0xff]   ;;  %v365_v11 = vpack.c.bf16 %v311_v7, %v309_v6  ;;  %v1697_v13 = vld [vmem:[#allocation7 + $0x94] ss:$8 sps:$4 sm:$0xff]  }
  0x96   : > { %604 = vmatprep.subr.bf16.mxu0 %v1640_v12  ;;  %v1696_v12 = vld [vmem:[#allocation7 + $0x80] ss:$8 sps:$4 sm:$0xff]   ;;  %v310_v15 = vld [vmem:[%s2089_s16 + $0x90] sm:$0xff]  ;;  %v331_v49 = vld [vmem:[%s2089_s16 + $0x138] sm:$0xff] }
  0x97   : > { %v308_v14 = vld [vmem:[%s2089_s16 + $0x80] sm:$0xff]  ;;  %v318_v35 = vld [vmem:[%s2089_s16 + $0xd0] sm:$0xff]  ;;  %v321_v36 = vld [vmem:[%s2089_s16 + $0xe8] sm:$0xff] }
  0x98   : > { %1092 = vmatpush1.bf16.msra.mxu1 %v1681_v52  ;;  %v316_v34 = vld [vmem:[%s2089_s16 + $0xc0] sm:$0xff]  ;;  %v322_v41 = vld [vmem:[%s2089_s16 + $0xf0] sm:$0xff]  ;;  %v325_v42 = vld [vmem:[%s2089_s16 + $0x108] sm:$0xff] }
  0x99   : > { %605 = vmatpush1.bf16.msra.mxu0 %v1642_v16  ;;  %1093 = vmatprep.subr.bf16.mxu1 %v1682_v54  ;;  %v313_v16 = vld [vmem:[%s2089_s16 + $0xa8] sm:$0xff]  ;;  %v368_v38 = vpack.c.bf16 %v318_v35, %v316_v34  ;;  %v320_v40 = vld [vmem:[%s2089_s16 + $0xe0] sm:$0xff]  ;;  %v326_v47 = vld [vmem:[%s2089_s16 + $0x110] sm:$0xff] }
  0x9a   : > { %606 = vmatprep.subr.bf16.mxu0 %v1643_v17  ;;  %v315_v17 = vld [vmem:[%s2089_s16 + $0xb8] sm:$0xff]  ;;  %v370_v44 = vpack.c.bf16 %v322_v41, %v320_v40  ;;  %v324_v46 = vld [vmem:[%s2089_s16 + $0x100] sm:$0xff]  ;;  %v329_v48 = vld [vmem:[%s2089_s16 + $0x128] sm:$0xff] }
  0x9b   : > { %v372_v50 = vpack.c.bf16 %v326_v47, %v324_v46  ;;  %v375_v51 = vpack.c.bf16 %v331_v49, %v329_v48  ;;  %v328_v52 = vld [vmem:[%s2089_s16 + $0x120] sm:$0xff]  ;;  %v333_v54 = vld [vmem:[%s2089_s16 + $0x148] sm:$0xff]  ;;  %v334_v59 = vld [vmem:[%s2089_s16 + $0x150] sm:$0xff] }
  0x9c   : > { %1094 = vmatpush1.bf16.msra.mxu1 %v1684_v56  ;;  %v332_v58 = vld [vmem:[%s2089_s16 + $0x140] sm:$0xff]  ;;  %v337_v60 = vld [vmem:[%s2089_s16 + $0x168] sm:$0xff]  ;;  %v339_v61 = vld [vmem:[%s2089_s16 + $0x178] sm:$0xff] }
  0x9d   : > { %607 = vmatpush1.bf16.msra.mxu0 %v1645_v18  ;;  %1095 = vmatprep.subr.bf16.mxu1 %v1685_v57  ;;  %v1699_v18 = vld [vmem:[#allocation7 + $0x90] ss:$8 sps:$4 sm:$0xff]   ;;  %v1712_v6 = vld [vmem:[#allocation7 + $0xe4] ss:$8 sps:$4 sm:$0xff]   ;;  %v420_v35 = vld [vmem:[%s2449_s2] sm:$0x3] }
  0x9e   : > { %608 = vmatprep.subr.bf16.mxu0 %v1646_v19  ;;  %v364_v19 = vpack.c.bf16 %v310_v15, %v308_v14  ;;  %v343_v4 = vld [vmem:[%s2089_s16 + $0x198] sm:$0xff] }
  0x9f   : > { %v347_v14 = vld [vmem:[%s2089_s16 + $0x1b8] sm:$0xff] }
  0xa0   : > { %1096 = vmatpush1.bf16.msra.mxu1 %v1687_v62  ;;  %v376_v62 = vpack.c.bf16 %v334_v59, %v332_v58 }
  0xa1   : > { %609 = vmatpush1.bf16.msra.mxu0 %v1648_v20  ;;  %1097 = vmatprep.subr.bf16.mxu1 %v1688_v0  ;;  %v1700_v20 = vld [vmem:[#allocation7 + $0xa4] ss:$8 sps:$4 sm:$0xff]  }
  0xa2   : > { %610 = vmatprep.subr.bf16.mxu0 %v1649_v21  ;;  %v367_v21 = vpack.c.bf16 %v315_v17, %v313_v16  ;;  %v336_v0 = vld [vmem:[%s2089_s16 + $0x160] sm:$0xff] }
  0xa3   : > { %v344_v17 = vld [vmem:[%s2089_s16 + $0x1a0] sm:$0xff] }
  0xa4   : > { %1098 = vmatpush1.bf16.msra.mxu1 %v1690_v2  ;;  %v1711_v2 = vld [vmem:[#allocation7 + $0xd0] ss:$8 sps:$4 sm:$0xff]  }
  0xa5   : > { %611 = vmatpush1.bf16.msra.mxu0 %v1651_v22  ;;  %1099 = vmatprep.subr.bf16.mxu1 %v1691_v3  ;;  %v1702_v22 = vld [vmem:[#allocation7 + $0xa0] ss:$8 sps:$4 sm:$0xff]  }
  0xa6   : > { %612 = vmatprep.subr.bf16.mxu0 %v1652_v23  ;;  %v1703_v23 = vld [vmem:[#allocation7 + $0xb4] ss:$8 sps:$4 sm:$0xff]   ;;  %v341_v3 = vld [vmem:[%s2089_s16 + $0x188] sm:$0xff] }
  0xa7   : > { %v381_v7 = vpack.c.bf16 %v343_v4, %v341_v3 }
  0xa8   : > { %1100 = vmatpush1.bf16.msra.mxu1 %v1693_v8  ;;  %v1714_v8 = vld [vmem:[#allocation7 + $0xe0] ss:$8 sps:$4 sm:$0xff]  }
  0xa9   : > { %613 = vmatpush1.bf16.msra.mxu0 %v1654_v24  ;;  %1101 = vmatprep.subr.bf16.mxu1 %v1694_v10  ;;  %v312_v24 = vld [vmem:[%s2089_s16 + $0xa0] sm:$0xff] }
  0xaa   : > { %614 = vmatprep.subr.bf16.mxu0 %v1655_v25  ;;  %v314_v25 = vld [vmem:[%s2089_s16 + $0xb0] sm:$0xff]  ;;  %v340_v10 = vld [vmem:[%s2089_s16 + $0x180] sm:$0xff] }
  0xac   : > { %1102 = vmatpush1.bf16.msra.mxu1 %v1696_v12  ;;  %v1717_v12 = vld [vmem:[#allocation7 + $0xf0] ss:$8 sps:$4 sm:$0xff]  }
  0xad   : > { %615 = vmatpush1.bf16.msra.mxu0 %v1657_v26  ;;  %1103 = vmatprep.subr.bf16.mxu1 %v1697_v13  ;;  %v317_v26 = vld [vmem:[%s2089_s16 + $0xc8] sm:$0xff] }
  0xae   : > { %616 = vmatprep.subr.bf16.mxu0 %v1658_v27  ;;  %v319_v27 = vld [vmem:[%s2089_s16 + $0xd8] sm:$0xff]  ;;  %v345_v13 = vld [vmem:[%s2089_s16 + $0x1a8] sm:$0xff] }
  0xaf   : > { %v383_v16 = vpack.c.bf16 %v347_v14, %v345_v13 }
  0xb0   : > { %1104 = vmatpush1.bf16.msra.mxu1 %v1699_v18  ;;  %v346_v18 = vld [vmem:[%s2089_s16 + $0x1b0] sm:$0xff] }
  0xb1   : > { %617 = vmatpush1.bf16.msra.mxu0 %v1660_v28  ;;  %1105 = vmatprep.subr.bf16.mxu1 %v1700_v20  ;;  %v1705_v28 = vld [vmem:[#allocation7 + $0xb0] ss:$8 sps:$4 sm:$0xff]  }
  0xb2   : > { %618 = vmatprep.subr.bf16.mxu0 %v1661_v29  ;;  %v366_v29 = vpack.c.bf16 %v314_v25, %v312_v24  ;;  %v351_v20 = vld [vmem:[%s2089_s16 + $0x1d8] sm:$0xff]  ;;  %v350_v24 = vld [vmem:[%s2089_s16 + $0x1d0] sm:$0xff]  ;;  %v353_v25 = vld [vmem:[%s2089_s16 + $0x1e8] sm:$0xff] }
  0xb4   : > { %1106 = vmatpush1.bf16.msra.mxu1 %v1702_v22 }
  0xb5   : > { %619 = vmatpush1.bf16.msra.mxu0 %v1663_v30  ;;  %1107 = vmatprep.subr.bf16.mxu1 %v1703_v23  ;;  %v1706_v30 = vld [vmem:[#allocation7 + $0xc4] ss:$8 sps:$4 sm:$0xff]  }
  0xb6   : > { %620 = vmatprep.subr.bf16.mxu0 %v1664_v31  ;;  %v369_v31 = vpack.c.bf16 %v319_v27, %v317_v26  ;;  %v348_v23 = vld [vmem:[%s2089_s16 + $0x1c0] sm:$0xff]  ;;  %v355_v26 = vld [vmem:[%s2089_s16 + $0x1f8] sm:$0xff] }
  0xb7   : > { %v384_v27 = vpack.c.bf16 %v350_v24, %v348_v23 }
  0xb8   : > { %1108 = vmatpush1.bf16.msra.mxu1 %v1705_v28  ;;  %v387_v28 = vpack.c.bf16 %v355_v26, %v353_v25 }
  0xb9   : > { %621 = vmatpush1.bf16.msra.mxu0 %v1666_v32  ;;  %v1708_v32 = vld [vmem:[#allocation7 + $0xc0] ss:$8 sps:$4 sm:$0xff]   ;;  %1109 = vmatprep.subr.bf16.mxu1 %v1706_v30  ;;  %v354_v30 = vld [vmem:[%s2089_s16 + $0x1f0] sm:$0xff] }
  0xba   : > { %622 = vmatprep.subr.bf16.mxu0 %v1667_v33  ;;  %v1709_v33 = vld [vmem:[#allocation7 + $0xd4] ss:$8 sps:$4 sm:$0xff]  }
  0xbc   : > { %1110 = vmatpush1.bf16.msra.mxu1 %v1708_v32  ;;  %v422_v32 = vlaneseq }
  0xbd   : > { %623 = vmatpush1.bf16.msra.mxu0 %v1669_v37  ;;  %v323_v37 = vld [vmem:[%s2089_s16 + $0xf8] sm:$0xff]  ;;  %1111 = vmatprep.subr.bf16.mxu1 %v1709_v33 }
  0xbe   : > { %v371_v39 = vpack.c.bf16 %v323_v37, %v321_v36  ;;  %v2163_v33 = vshrl.u32 %v422_v32, 7 }
  0xc0   : > { %625 = vmatmul.mubr.bf16.vlgmr.msra.gmra.mrb[0].mxu0 %v356_v43  ;;  %v327_v43 = vld [vmem:[%s2089_s16 + $0x118] sm:$0xff]  ;;  %1112 = vmatpush1.bf16.msra.mxu1 %v1711_v2  ;;  %v424_v34 = vsub.s32 0, %v2163_v33  ;;  %v428_v36 = vsub.s32 1, %v2163_v33 }
  0xc1   : > { %634 = vmatprep.mubr.bf16.mxu0 %v359_v45  ;;  %v373_v45 = vpack.c.bf16 %v327_v43, %v325_v42  ;;  %1113 = vmatprep.subr.bf16.mxu1 %v1712_v6 }
  0xc2   : > { %v2172_v37 = vrot.slane %v420_v35, %v424_v34 }
  0xc4   : > { %1114 = vmatpush1.bf16.msra.mxu1 %v1714_v8 }
  0xc8   : > { %635 = vmatmul.mubr.bf16.gmra.mrb[4].mxu0 %v358_v53  ;;  %v330_v53 = vld [vmem:[%s2089_s16 + $0x130] sm:$0xff] }
  0xc9   : > { %644 = vmatprep.mubr.bf16.mxu0 %v361_v55  ;;  %v335_v55 = vld [vmem:[%s2089_s16 + $0x158] sm:$0xff]  ;;  %v374_v56 = vpack.c.bf16 %v330_v53, %v328_v52 }
  0xca   : > { %v377_v57 = vpack.c.bf16 %v335_v55, %v333_v54 }
  0xd0   : > { %645 = vmatmul.mubr.bf16.gmra.mrb[8].mxu0 %v360_v63  ;;  %v379_v63 = vpack.c.bf16 %v339_v61, %v337_v60 }
  0xd1   : > { %654 = vmatprep.mubr.bf16.mxu0 %v363_v1  ;;  %v338_v1 = vld [vmem:[%s2089_s16 + $0x170] sm:$0xff] }
  0xd2   : > { %v378_v5 = vpack.c.bf16 %v338_v1, %v336_v0 }
  0xd8   : > { %655 = vmatmul.mubr.bf16.gmra.mrb[12].mxu0 %v362_v9  ;;  %v1715_v9 = vld [vmem:[#allocation7 + $0xf4] ss:$8 sps:$4 sm:$0xff]  }
  0xd9   : > { %664 = vmatprep.mubr.bf16.mxu0 %v365_v11  ;;  %v342_v11 = vld [vmem:[%s2089_s16 + $0x190] sm:$0xff]  ;;  %1115 = vmatprep.subr.bf16.mxu1 %v1715_v9 }
  0xda   : > { %1116 = vmatpush1.bf16.msra.mxu1 %v1717_v12  ;;  %v380_v15 = vpack.c.bf16 %v342_v11, %v340_v10 }
  0xe0   : > { %665 = vmatmul.mubr.bf16.gmra.mrb[16].mxu0 %v364_v19  ;;  %v349_v19 = vld [vmem:[%s2089_s16 + $0x1c8] sm:$0xff] }
  0xe1   : > { %674 = vmatprep.mubr.bf16.mxu0 %v367_v21  ;;  %v382_v21 = vpack.c.bf16 %v346_v18, %v344_v17  ;;  %v385_v22 = vpack.c.bf16 %v351_v20, %v349_v19 }
  0xe8   : > { %675 = vmatmul.mubr.bf16.gmra.mrb[20].mxu0 %v366_v29  ;;  %v352_v29 = vld [vmem:[%s2089_s16 + $0x1e0] sm:$0xff] }
  0xe9   : > { %684 = vmatprep.mubr.bf16.mxu0 %v369_v31  ;;  %v386_v31 = vpack.c.bf16 %v354_v30, %v352_v29 }
  0xf0   : > { %685 = vmatmul.mubr.bf16.gmra.mrb[24].mxu0 %v368_v38  ;;  %v2176_v38 = vrot.slane %v420_v35, %v428_v36 }
  0xf1   : > { %694 = vmatprep.mubr.bf16.mxu0 %v371_v39 }
  0xf8   : > { %695 = vmatmul.mubr.bf16.gmra.mrb[28].mxu0 %v370_v44 }
  0xf9   : > { %704 = vmatprep.mubr.bf16.mxu0 %v373_v45 }
 0x100   : > { %705 = vmatmul.mubr.bf16.gmra.mrb[32].mxu0 %v372_v50 }
 0x101   : > { %714 = vmatprep.mubr.bf16.mxu0 %v375_v51 }
 0x108   : > { %715 = vmatmul.mubr.bf16.gmra.mrb[36].mxu0 %v374_v56 }
 0x109   : > { %724 = vmatprep.mubr.bf16.mxu0 %v377_v57 }
 0x110   : > { %725 = vmatmul.mubr.bf16.gmra.mrb[40].mxu0 %v376_v62 }
 0x111   : > { %734 = vmatprep.mubr.bf16.mxu0 %v379_v63 }
 0x118   : > { %735 = vmatmul.mubr.bf16.gmra.mrb[44].mxu0 %v378_v5 }
 0x119   : > { %744 = vmatprep.mubr.bf16.mxu0 %v381_v7 }
 0x120   : > { %745 = vmatmul.mubr.bf16.gmra.mrb[48].mxu0 %v380_v15 }
 0x121   : > { %754 = vmatprep.mubr.bf16.mxu0 %v383_v16 }
 0x128   : > { %755 = vmatmul.mubr.bf16.gmra.mrb[52].mxu0 %v382_v21 }
 0x129   : > { %764 = vmatprep.mubr.bf16.mxu0 %v385_v22 }
 0x130   : > { %765 = vmatmul.mubr.bf16.gmra.mrb[56].mxu0 %v384_v27 }
 0x131   : > { %774 = vmatprep.mubr.bf16.mxu0 %v387_v28 }
 0x138   : > { %775 = vmatmul.mubr.bf16.gmra.mrb[60].mxu0 %v386_v31 }
 0x193   : > { %v626_v39 = vpop.f32.mrb[0].mxu0 }
 0x194   : > { %v627_v40 = vadd.f32 %v626_v39, %v2172_v37  ;;  %v628_v41 = vpop.f32.mrb[1].mxu0 }
 0x195   : > { %v629_v42 = vadd.f32 %v628_v41, %v2176_v38  ;;  %v630_v43 = vpop.f32.mrb[2].mxu0 }
 0x196   : > { %v631_v44 = vadd.f32 %v630_v43, %v2172_v37  ;;  %v632_v45 = vpop.f32.mrb[3].mxu0  ;;  %v785_v47 = vmax.f32 %v627_v40, 0.0 }
 0x197   : > { %v633_v46 = vadd.f32 %v632_v45, %v2176_v38  ;;  %v786_v49 = vmax.f32 %v629_v42, 0.0 }
 0x198   : > { %v787_v48 = vmax.f32 %v631_v44, 0.0 }
 0x199   : > { %v788_v50 = vmax.f32 %v633_v46, 0.0 }
 0x19a   : > { %v849_v51 = vpack.c.bf16 %v787_v48, %v785_v47 }
 0x19b   : > { %v636_v52 = vpop.f32.mrb[4].mxu0  ;;  %v850_v53 = vpack.c.bf16 %v788_v50, %v786_v49 }
 0x19c   : > { %v637_v54 = vadd.f32 %v636_v52, %v2172_v37  ;;  %v638_v55 = vpop.f32.mrb[5].mxu0 }
 0x19d   : > { %v639_v56 = vadd.f32 %v638_v55, %v2176_v38  ;;  %v640_v57 = vpop.f32.mrb[6].mxu0  ;;  %1117 = vmatprep.mubr.bf16.mxu1 %v850_v53 }
 0x19e   : > { %v641_v58 = vadd.f32 %v640_v57, %v2172_v37  ;;  %v642_v59 = vpop.f32.mrb[7].mxu0  ;;  %1118 = vmatmul.mubr.bf16.vlgmr.msra.gmra.mrb[0].mxu1 %v849_v51  ;;  %v789_v61 = vmax.f32 %v637_v54, 0.0 }
 0x19f   : > { %v643_v60 = vadd.f32 %v642_v59, %v2176_v38  ;;  %v790_v63 = vmax.f32 %v639_v56, 0.0 }
 0x1a0   : > { %v791_v62 = vmax.f32 %v641_v58, 0.0 }
 0x1a1   : > { %v792_v0 = vmax.f32 %v643_v60, 0.0 }
 0x1a2   : > { %v851_v1 = vpack.c.bf16 %v791_v62, %v789_v61 }
 0x1a3   : > { %v852_v2 = vpack.c.bf16 %v792_v0, %v790_v63  ;;  %v646_v3 = vpop.f32.mrb[8].mxu0 }
 0x1a4   : > { %v647_v4 = vadd.f32 %v646_v3, %v2172_v37  ;;  %v648_v5 = vpop.f32.mrb[9].mxu0 }
 0x1a5   : > { %v649_v6 = vadd.f32 %v648_v5, %v2176_v38  ;;  %v650_v7 = vpop.f32.mrb[10].mxu0  ;;  %1127 = vmatprep.mubr.bf16.mxu1 %v852_v2 }
 0x1a6   : > { %v651_v8 = vadd.f32 %v650_v7, %v2172_v37  ;;  %v652_v9 = vpop.f32.mrb[11].mxu0  ;;  %1128 = vmatmul.mubr.bf16.gmra.mrb[4].mxu1 %v851_v1  ;;  %v793_v11 = vmax.f32 %v647_v4, 0.0 }
 0x1a7   : > { %v653_v10 = vadd.f32 %v652_v9, %v2176_v38  ;;  %v794_v13 = vmax.f32 %v649_v6, 0.0 }
 0x1a8   : > { %v795_v12 = vmax.f32 %v651_v8, 0.0 }
 0x1a9   : > { %v796_v14 = vmax.f32 %v653_v10, 0.0 }
 0x1aa   : > { %v853_v15 = vpack.c.bf16 %v795_v12, %v793_v11 }
 0x1ab   : > { %v854_v16 = vpack.c.bf16 %v796_v14, %v794_v13  ;;  %v656_v17 = vpop.f32.mrb[12].mxu0 }
 0x1ac   : > { %v657_v18 = vadd.f32 %v656_v17, %v2172_v37  ;;  %v658_v19 = vpop.f32.mrb[13].mxu0 }
 0x1ad   : > { %v659_v20 = vadd.f32 %v658_v19, %v2176_v38  ;;  %v660_v21 = vpop.f32.mrb[14].mxu0  ;;  %1137 = vmatprep.mubr.bf16.mxu1 %v854_v16 }
 0x1ae   : > { %v661_v22 = vadd.f32 %v660_v21, %v2172_v37  ;;  %v662_v23 = vpop.f32.mrb[15].mxu0  ;;  %1138 = vmatmul.mubr.bf16.gmra.mrb[8].mxu1 %v853_v15  ;;  %v797_v25 = vmax.f32 %v657_v18, 0.0 }
 0x1af   : > { %v663_v24 = vadd.f32 %v662_v23, %v2176_v38  ;;  %v798_v27 = vmax.f32 %v659_v20, 0.0 }
 0x1b0   : > { %v799_v26 = vmax.f32 %v661_v22, 0.0 }
 0x1b1   : > { %v800_v28 = vmax.f32 %v663_v24, 0.0 }
 0x1b2   : > { %v855_v29 = vpack.c.bf16 %v799_v26, %v797_v25 }
 0x1b3   : > { %v856_v30 = vpack.c.bf16 %v800_v28, %v798_v27  ;;  %v666_v31 = vpop.f32.mrb[16].mxu0 }
 0x1b4   : > { %v667_v32 = vadd.f32 %v666_v31, %v2172_v37  ;;  %v668_v35 = vpop.f32.mrb[17].mxu0 }
 0x1b5   : > { %v669_v39 = vadd.f32 %v668_v35, %v2176_v38  ;;  %v670_v40 = vpop.f32.mrb[18].mxu0  ;;  %1147 = vmatprep.mubr.bf16.mxu1 %v856_v30 }
 0x1b6   : > { %v671_v41 = vadd.f32 %v670_v40, %v2172_v37  ;;  %v672_v42 = vpop.f32.mrb[19].mxu0  ;;  %1148 = vmatmul.mubr.bf16.gmra.mrb[12].mxu1 %v855_v29  ;;  %v801_v44 = vmax.f32 %v667_v32, 0.0 }
 0x1b7   : > { %v673_v43 = vadd.f32 %v672_v42, %v2176_v38  ;;  %v802_v46 = vmax.f32 %v669_v39, 0.0 }
 0x1b8   : > { %v803_v45 = vmax.f32 %v671_v41, 0.0 }
 0x1b9   : > { %v804_v47 = vmax.f32 %v673_v43, 0.0 }
 0x1ba   : > { %v857_v48 = vpack.c.bf16 %v803_v45, %v801_v44 }
 0x1bb   : > { %v858_v49 = vpack.c.bf16 %v804_v47, %v802_v46  ;;  %v676_v50 = vpop.f32.mrb[20].mxu0 }
 0x1bc   : > { %v677_v51 = vadd.f32 %v676_v50, %v2172_v37  ;;  %v678_v52 = vpop.f32.mrb[21].mxu0 }
 0x1bd   : > { %v679_v53 = vadd.f32 %v678_v52, %v2176_v38  ;;  %v680_v54 = vpop.f32.mrb[22].mxu0  ;;  %1157 = vmatprep.mubr.bf16.mxu1 %v858_v49 }
 0x1be   : > { %v681_v55 = vadd.f32 %v680_v54, %v2172_v37  ;;  %v682_v56 = vpop.f32.mrb[23].mxu0  ;;  %1158 = vmatmul.mubr.bf16.gmra.mrb[16].mxu1 %v857_v48  ;;  %v805_v58 = vmax.f32 %v677_v51, 0.0 }
 0x1bf   : > { %v683_v57 = vadd.f32 %v682_v56, %v2176_v38  ;;  %v806_v60 = vmax.f32 %v679_v53, 0.0 }
 0x1c0   : > { %v807_v59 = vmax.f32 %v681_v55, 0.0 }
 0x1c1   : > { %v808_v61 = vmax.f32 %v683_v57, 0.0 }
 0x1c2   : > { %v859_v62 = vpack.c.bf16 %v807_v59, %v805_v58 }
 0x1c3   : > { %v860_v63 = vpack.c.bf16 %v808_v61, %v806_v60  ;;  %v686_v0 = vpop.f32.mrb[24].mxu0 }
 0x1c4   : > { %v687_v1 = vadd.f32 %v686_v0, %v2172_v37  ;;  %v688_v2 = vpop.f32.mrb[25].mxu0 }
 0x1c5   : > { %v689_v3 = vadd.f32 %v688_v2, %v2176_v38  ;;  %v690_v4 = vpop.f32.mrb[26].mxu0  ;;  %1167 = vmatprep.mubr.bf16.mxu1 %v860_v63 }
 0x1c6   : > { %v691_v5 = vadd.f32 %v690_v4, %v2172_v37  ;;  %v692_v6 = vpop.f32.mrb[27].mxu0  ;;  %1168 = vmatmul.mubr.bf16.gmra.mrb[20].mxu1 %v859_v62  ;;  %v809_v8 = vmax.f32 %v687_v1, 0.0 }
 0x1c7   : > { %v693_v7 = vadd.f32 %v692_v6, %v2176_v38  ;;  %v810_v10 = vmax.f32 %v689_v3, 0.0 }
 0x1c8   : > { %v811_v9 = vmax.f32 %v691_v5, 0.0 }
 0x1c9   : > { %v812_v11 = vmax.f32 %v693_v7, 0.0 }
 0x1ca   : > { %v861_v12 = vpack.c.bf16 %v811_v9, %v809_v8 }
 0x1cb   : > { %v862_v13 = vpack.c.bf16 %v812_v11, %v810_v10  ;;  %v696_v14 = vpop.f32.mrb[28].mxu0 }
 0x1cc   : > { %v697_v15 = vadd.f32 %v696_v14, %v2172_v37  ;;  %v698_v16 = vpop.f32.mrb[29].mxu0 }
 0x1cd   : > { %v699_v17 = vadd.f32 %v698_v16, %v2176_v38  ;;  %v700_v18 = vpop.f32.mrb[30].mxu0  ;;  %1177 = vmatprep.mubr.bf16.mxu1 %v862_v13 }
 0x1ce   : > { %v701_v19 = vadd.f32 %v700_v18, %v2172_v37  ;;  %v702_v20 = vpop.f32.mrb[31].mxu0  ;;  %1178 = vmatmul.mubr.bf16.gmra.mrb[24].mxu1 %v861_v12  ;;  %v813_v22 = vmax.f32 %v697_v15, 0.0 }
 0x1cf   : > { %v703_v21 = vadd.f32 %v702_v20, %v2176_v38  ;;  %v814_v24 = vmax.f32 %v699_v17, 0.0 }
 0x1d0   : > { %v815_v23 = vmax.f32 %v701_v19, 0.0 }
 0x1d1   : > { %v816_v25 = vmax.f32 %v703_v21, 0.0 }
 0x1d2   : > { %v863_v26 = vpack.c.bf16 %v815_v23, %v813_v22 }
 0x1d3   : > { %v864_v27 = vpack.c.bf16 %v816_v25, %v814_v24  ;;  %v706_v28 = vpop.f32.mrb[32].mxu0 }
 0x1d4   : > { %v707_v29 = vadd.f32 %v706_v28, %v2172_v37  ;;  %v708_v30 = vpop.f32.mrb[33].mxu0 }
 0x1d5   : > { %v709_v31 = vadd.f32 %v708_v30, %v2176_v38  ;;  %v710_v32 = vpop.f32.mrb[34].mxu0  ;;  %1187 = vmatprep.mubr.bf16.mxu1 %v864_v27 }
 0x1d6   : > { %v711_v35 = vadd.f32 %v710_v32, %v2172_v37  ;;  %v712_v39 = vpop.f32.mrb[35].mxu0  ;;  %1188 = vmatmul.mubr.bf16.gmra.mrb[28].mxu1 %v863_v26  ;;  %v817_v41 = vmax.f32 %v707_v29, 0.0 }
 0x1d7   : > { %v713_v40 = vadd.f32 %v712_v39, %v2176_v38  ;;  %v818_v43 = vmax.f32 %v709_v31, 0.0 }
 0x1d8   : > { %v819_v42 = vmax.f32 %v711_v35, 0.0 }
 0x1d9   : > { %v820_v44 = vmax.f32 %v713_v40, 0.0 }
 0x1da   : > { %v865_v45 = vpack.c.bf16 %v819_v42, %v817_v41 }
 0x1db   : > { %v866_v46 = vpack.c.bf16 %v820_v44, %v818_v43  ;;  %v716_v47 = vpop.f32.mrb[36].mxu0 }
 0x1dc   : > { %v717_v48 = vadd.f32 %v716_v47, %v2172_v37  ;;  %v718_v49 = vpop.f32.mrb[37].mxu0 }
 0x1dd   : > { %v719_v50 = vadd.f32 %v718_v49, %v2176_v38  ;;  %v720_v51 = vpop.f32.mrb[38].mxu0  ;;  %1197 = vmatprep.mubr.bf16.mxu1 %v866_v46 }
 0x1de   : > { %v721_v52 = vadd.f32 %v720_v51, %v2172_v37  ;;  %v722_v53 = vpop.f32.mrb[39].mxu0  ;;  %1198 = vmatmul.mubr.bf16.gmra.mrb[32].mxu1 %v865_v45  ;;  %v821_v55 = vmax.f32 %v717_v48, 0.0 }
 0x1df   : > { %v723_v54 = vadd.f32 %v722_v53, %v2176_v38  ;;  %v822_v57 = vmax.f32 %v719_v50, 0.0 }
 0x1e0   : > { %v823_v56 = vmax.f32 %v721_v52, 0.0 }
 0x1e1   : > { %v824_v58 = vmax.f32 %v723_v54, 0.0 }
 0x1e2   : > { %v867_v59 = vpack.c.bf16 %v823_v56, %v821_v55 }
 0x1e3   : > { %v868_v60 = vpack.c.bf16 %v824_v58, %v822_v57  ;;  %v726_v61 = vpop.f32.mrb[40].mxu0 }
 0x1e4   : > { %v727_v62 = vadd.f32 %v726_v61, %v2172_v37  ;;  %v728_v63 = vpop.f32.mrb[41].mxu0 }
 0x1e5   : > { %v729_v0 = vadd.f32 %v728_v63, %v2176_v38  ;;  %v730_v1 = vpop.f32.mrb[42].mxu0  ;;  %1207 = vmatprep.mubr.bf16.mxu1 %v868_v60 }
 0x1e6   : > { %v731_v2 = vadd.f32 %v730_v1, %v2172_v37  ;;  %v732_v3 = vpop.f32.mrb[43].mxu0  ;;  %1208 = vmatmul.mubr.bf16.gmra.mrb[36].mxu1 %v867_v59  ;;  %v825_v5 = vmax.f32 %v727_v62, 0.0 }
 0x1e7   : > { %v733_v4 = vadd.f32 %v732_v3, %v2176_v38  ;;  %v826_v7 = vmax.f32 %v729_v0, 0.0 }
 0x1e8   : > { %v827_v6 = vmax.f32 %v731_v2, 0.0 }
 0x1e9   : > { %v828_v8 = vmax.f32 %v733_v4, 0.0 }
 0x1ea   : > { %v869_v9 = vpack.c.bf16 %v827_v6, %v825_v5 }
 0x1eb   : > { %v870_v10 = vpack.c.bf16 %v828_v8, %v826_v7  ;;  %v736_v11 = vpop.f32.mrb[44].mxu0 }
 0x1ec   : > { %v737_v12 = vadd.f32 %v736_v11, %v2172_v37  ;;  %v738_v13 = vpop.f32.mrb[45].mxu0 }
 0x1ed   : > { %v739_v14 = vadd.f32 %v738_v13, %v2176_v38  ;;  %v740_v15 = vpop.f32.mrb[46].mxu0  ;;  %1217 = vmatprep.mubr.bf16.mxu1 %v870_v10 }
 0x1ee   : > { %v741_v16 = vadd.f32 %v740_v15, %v2172_v37  ;;  %v742_v17 = vpop.f32.mrb[47].mxu0  ;;  %1218 = vmatmul.mubr.bf16.gmra.mrb[40].mxu1 %v869_v9  ;;  %v829_v19 = vmax.f32 %v737_v12, 0.0 }
 0x1ef   : > { %v743_v18 = vadd.f32 %v742_v17, %v2176_v38  ;;  %v830_v21 = vmax.f32 %v739_v14, 0.0 }
 0x1f0   : > { %v831_v20 = vmax.f32 %v741_v16, 0.0 }
 0x1f1   : > { %v832_v22 = vmax.f32 %v743_v18, 0.0 }
 0x1f2   : > { %v871_v23 = vpack.c.bf16 %v831_v20, %v829_v19 }
 0x1f3   : > { %v872_v24 = vpack.c.bf16 %v832_v22, %v830_v21  ;;  %v746_v25 = vpop.f32.mrb[48].mxu0  ;;  %v913_v22 = vld [vmem:[%s2451_s4] sm:$0x3] }
 0x1f4   : > { %v747_v26 = vadd.f32 %v746_v25, %v2172_v37  ;;  %v748_v27 = vpop.f32.mrb[49].mxu0 }
 0x1f5   : > { %v749_v28 = vadd.f32 %v748_v27, %v2176_v38  ;;  %v750_v29 = vpop.f32.mrb[50].mxu0  ;;  %1227 = vmatprep.mubr.bf16.mxu1 %v872_v24 }
 0x1f6   : > { %v751_v30 = vadd.f32 %v750_v29, %v2172_v37  ;;  %v752_v31 = vpop.f32.mrb[51].mxu0  ;;  %1228 = vmatmul.mubr.bf16.gmra.mrb[44].mxu1 %v871_v23  ;;  %v833_v35 = vmax.f32 %v747_v26, 0.0 }
 0x1f7   : > { %v753_v32 = vadd.f32 %v752_v31, %v2176_v38  ;;  %v834_v40 = vmax.f32 %v749_v28, 0.0 }
 0x1f8   : > { %v835_v39 = vmax.f32 %v751_v30, 0.0 }
 0x1f9   : > { %v836_v41 = vmax.f32 %v753_v32, 0.0 }
 0x1fa   : > { %v873_v42 = vpack.c.bf16 %v835_v39, %v833_v35 }
 0x1fb   : > { %v874_v43 = vpack.c.bf16 %v836_v41, %v834_v40  ;;  %v756_v44 = vpop.f32.mrb[52].mxu0 }
 0x1fc   : > { %v757_v45 = vadd.f32 %v756_v44, %v2172_v37  ;;  %v758_v46 = vpop.f32.mrb[53].mxu0 }
 0x1fd   : > { %v759_v47 = vadd.f32 %v758_v46, %v2176_v38  ;;  %v760_v48 = vpop.f32.mrb[54].mxu0  ;;  %1237 = vmatprep.mubr.bf16.mxu1 %v874_v43 }
 0x1fe   : > { %v761_v49 = vadd.f32 %v760_v48, %v2172_v37  ;;  %v762_v50 = vpop.f32.mrb[55].mxu0  ;;  %1238 = vmatmul.mubr.bf16.gmra.mrb[48].mxu1 %v873_v42  ;;  %v837_v52 = vmax.f32 %v757_v45, 0.0 }
 0x1ff   : > { %v763_v51 = vadd.f32 %v762_v50, %v2176_v38  ;;  %v838_v54 = vmax.f32 %v759_v47, 0.0 }
 0x200   : > { %v839_v53 = vmax.f32 %v761_v49, 0.0 }
 0x201   : > { %v840_v55 = vmax.f32 %v763_v51, 0.0 }
 0x202   : > { %v875_v56 = vpack.c.bf16 %v839_v53, %v837_v52 }
 0x203   : > { %v876_v57 = vpack.c.bf16 %v840_v55, %v838_v54  ;;  %v766_v58 = vpop.f32.mrb[56].mxu0 }
 0x204   : > { %v767_v59 = vadd.f32 %v766_v58, %v2172_v37  ;;  %v768_v60 = vpop.f32.mrb[57].mxu0 }
 0x205   : > { %v769_v61 = vadd.f32 %v768_v60, %v2176_v38  ;;  %v770_v62 = vpop.f32.mrb[58].mxu0  ;;  %1247 = vmatprep.mubr.bf16.mxu1 %v876_v57 }
 0x206   : > { %v771_v63 = vadd.f32 %v770_v62, %v2172_v37  ;;  %v772_v0 = vpop.f32.mrb[59].mxu0  ;;  %1248 = vmatmul.mubr.bf16.gmra.mrb[52].mxu1 %v875_v56  ;;  %v841_v2 = vmax.f32 %v767_v59, 0.0 }
 0x207   : > { %v773_v1 = vadd.f32 %v772_v0, %v2176_v38  ;;  %v842_v4 = vmax.f32 %v769_v61, 0.0 }
 0x208   : > { %v843_v3 = vmax.f32 %v771_v63, 0.0 }
 0x209   : > { %v844_v5 = vmax.f32 %v773_v1, 0.0 }
 0x20a   : > { %v877_v6 = vpack.c.bf16 %v843_v3, %v841_v2 }
 0x20b   : > { %v878_v7 = vpack.c.bf16 %v844_v5, %v842_v4  ;;  %v776_v8 = vpop.f32.mrb[60].mxu0 }
 0x20c   : > { %v777_v9 = vadd.f32 %v776_v8, %v2172_v37  ;;  %v778_v10 = vpop.f32.mrb[61].mxu0 }
 0x20d   : > { %v779_v11 = vadd.f32 %v778_v10, %v2176_v38  ;;  %v780_v12 = vpop.f32.mrb[62].mxu0  ;;  %1257 = vmatprep.mubr.bf16.mxu1 %v878_v7 }
 0x20e   : > { %v781_v13 = vadd.f32 %v780_v12, %v2172_v37  ;;  %v782_v14 = vpop.f32.mrb[63].mxu0  ;;  %1258 = vmatmul.mubr.bf16.gmra.mrb[56].mxu1 %v877_v6  ;;  %v845_v16 = vmax.f32 %v777_v9, 0.0  ;;  %v2247_v37 = vrot.slane %v913_v22, %v424_v34 }
 0x20f   : > { %v783_v15 = vadd.f32 %v782_v14, %v2176_v38  ;;  %v846_v18 = vmax.f32 %v779_v11, 0.0  ;;  %v2251_v38 = vrot.slane %v913_v22, %v428_v36 }
 0x210   : > { %v847_v17 = vmax.f32 %v781_v13, 0.0 }
 0x211   : > { %v848_v19 = vmax.f32 %v783_v15, 0.0 }
 0x212   : > { %v879_v20 = vpack.c.bf16 %v847_v17, %v845_v16 }
 0x213   : > { %v880_v21 = vpack.c.bf16 %v848_v19, %v846_v18 }
 0x215   : > { %1267 = vmatprep.mubr.bf16.mxu1 %v880_v21 }
 0x216   : > { %1268 = vmatmul.mubr.bf16.gmra.mrb[60].mxu1 %v879_v20 }
 0x271   : > { %v1119_v23 = vpop.f32.mrb[0].mxu1 }
 0x272   : > { %v1120_v24 = vadd.f32 %v1119_v23, %v2247_v37  ;;  %v1121_v25 = vpop.f32.mrb[1].mxu1 }
 0x273   : > { %v1122_v26 = vadd.f32 %v1121_v25, %v2251_v38  ;;  %v1123_v27 = vpop.f32.mrb[2].mxu1 }
 0x274   : > { %1278 = vst [vmem:[%s2257_s26] sm:$0xff] %v1120_v24  ;;  %v1124_v33 = vadd.f32 %v1123_v27, %v2247_v37  ;;  %v1125_v34 = vpop.f32.mrb[3].mxu1 }
 0x275   : > { %1279 = vst [vmem:[%s2257_s26 + $0x8] sm:$0xff] %v1122_v26  ;;  %v1126_v36 = vadd.f32 %v1125_v34, %v2251_v38 }
 0x276   : > { %1280 = vst [vmem:[%s2257_s26 + $0x10] sm:$0xff] %v1124_v33 }
 0x277   : > { %1281 = vst [vmem:[%s2257_s26 + $0x18] sm:$0xff] %v1126_v36 }
 0x279   : > { %v1129_v28 = vpop.f32.mrb[4].mxu1 }
 0x27a   : > { %v1130_v29 = vadd.f32 %v1129_v28, %v2247_v37  ;;  %v1131_v30 = vpop.f32.mrb[5].mxu1 }
 0x27b   : > { %v1132_v31 = vadd.f32 %v1131_v30, %v2251_v38  ;;  %v1133_v32 = vpop.f32.mrb[6].mxu1 }
 0x27c   : > { %1282 = vst [vmem:[%s2257_s26 + $0x20] sm:$0xff] %v1130_v29  ;;  %v1134_v35 = vadd.f32 %v1133_v32, %v2247_v37  ;;  %v1135_v39 = vpop.f32.mrb[7].mxu1 }
 0x27d   : > { %1283 = vst [vmem:[%s2257_s26 + $0x28] sm:$0xff] %v1132_v31  ;;  %v1136_v40 = vadd.f32 %v1135_v39, %v2251_v38 }
 0x27e   : > { %1284 = vst [vmem:[%s2257_s26 + $0x30] sm:$0xff] %v1134_v35 }
 0x27f   : > { %1285 = vst [vmem:[%s2257_s26 + $0x38] sm:$0xff] %v1136_v40 }
 0x281   : > { %v1139_v41 = vpop.f32.mrb[8].mxu1 }
 0x282   : > { %v1140_v42 = vadd.f32 %v1139_v41, %v2247_v37  ;;  %v1141_v43 = vpop.f32.mrb[9].mxu1 }
 0x283   : > { %v1142_v44 = vadd.f32 %v1141_v43, %v2251_v38  ;;  %v1143_v45 = vpop.f32.mrb[10].mxu1 }
 0x284   : > { %1286 = vst [vmem:[%s2257_s26 + $0x40] sm:$0xff] %v1140_v42  ;;  %v1144_v46 = vadd.f32 %v1143_v45, %v2247_v37  ;;  %v1145_v47 = vpop.f32.mrb[11].mxu1 }
 0x285   : > { %1287 = vst [vmem:[%s2257_s26 + $0x48] sm:$0xff] %v1142_v44  ;;  %v1146_v48 = vadd.f32 %v1145_v47, %v2251_v38 }
 0x286   : > { %1288 = vst [vmem:[%s2257_s26 + $0x50] sm:$0xff] %v1144_v46 }
 0x287   : > { %1289 = vst [vmem:[%s2257_s26 + $0x58] sm:$0xff] %v1146_v48 }
 0x289   : > { %v1149_v49 = vpop.f32.mrb[12].mxu1 }
 0x28a   : > { %v1150_v50 = vadd.f32 %v1149_v49, %v2247_v37  ;;  %v1151_v51 = vpop.f32.mrb[13].mxu1 }
 0x28b   : > { %v1152_v52 = vadd.f32 %v1151_v51, %v2251_v38  ;;  %v1153_v53 = vpop.f32.mrb[14].mxu1 }
 0x28c   : > { %1290 = vst [vmem:[%s2257_s26 + $0x60] sm:$0xff] %v1150_v50  ;;  %v1154_v54 = vadd.f32 %v1153_v53, %v2247_v37  ;;  %v1155_v55 = vpop.f32.mrb[15].mxu1 }
 0x28d   : > { %1291 = vst [vmem:[%s2257_s26 + $0x68] sm:$0xff] %v1152_v52  ;;  %v1156_v56 = vadd.f32 %v1155_v55, %v2251_v38 }
 0x28e   : > { %1292 = vst [vmem:[%s2257_s26 + $0x70] sm:$0xff] %v1154_v54 }
 0x28f   : > { %1293 = vst [vmem:[%s2257_s26 + $0x78] sm:$0xff] %v1156_v56 }
 0x291   : > { %v1159_v57 = vpop.f32.mrb[16].mxu1 }
 0x292   : > { %v1160_v58 = vadd.f32 %v1159_v57, %v2247_v37  ;;  %v1161_v59 = vpop.f32.mrb[17].mxu1 }
 0x293   : > { %v1162_v60 = vadd.f32 %v1161_v59, %v2251_v38  ;;  %v1163_v61 = vpop.f32.mrb[18].mxu1 }
 0x294   : > { %1294 = vst [vmem:[%s2257_s26 + $0x80] sm:$0xff] %v1160_v58  ;;  %v1164_v62 = vadd.f32 %v1163_v61, %v2247_v37  ;;  %v1165_v63 = vpop.f32.mrb[19].mxu1 }
 0x295   : > { %1295 = vst [vmem:[%s2257_s26 + $0x88] sm:$0xff] %v1162_v60  ;;  %v1166_v0 = vadd.f32 %v1165_v63, %v2251_v38 }
 0x296   : > { %1296 = vst [vmem:[%s2257_s26 + $0x90] sm:$0xff] %v1164_v62 }
 0x297   : > { %1297 = vst [vmem:[%s2257_s26 + $0x98] sm:$0xff] %v1166_v0 }
 0x299   : > { %v1169_v1 = vpop.f32.mrb[20].mxu1 }
 0x29a   : > { %v1170_v2 = vadd.f32 %v1169_v1, %v2247_v37  ;;  %v1171_v3 = vpop.f32.mrb[21].mxu1 }
 0x29b   : > { %v1172_v4 = vadd.f32 %v1171_v3, %v2251_v38  ;;  %v1173_v5 = vpop.f32.mrb[22].mxu1 }
 0x29c   : > { %1298 = vst [vmem:[%s2257_s26 + $0xa0] sm:$0xff] %v1170_v2  ;;  %v1174_v6 = vadd.f32 %v1173_v5, %v2247_v37  ;;  %v1175_v7 = vpop.f32.mrb[23].mxu1 }
 0x29d   : > { %1299 = vst [vmem:[%s2257_s26 + $0xa8] sm:$0xff] %v1172_v4  ;;  %v1176_v8 = vadd.f32 %v1175_v7, %v2251_v38 }
 0x29e   : > { %1300 = vst [vmem:[%s2257_s26 + $0xb0] sm:$0xff] %v1174_v6 }
 0x29f   : > { %1301 = vst [vmem:[%s2257_s26 + $0xb8] sm:$0xff] %v1176_v8 }
 0x2a1   : > { %v1179_v9 = vpop.f32.mrb[24].mxu1 }
 0x2a2   : > { %v1180_v10 = vadd.f32 %v1179_v9, %v2247_v37  ;;  %v1181_v11 = vpop.f32.mrb[25].mxu1 }
 0x2a3   : > { %v1182_v12 = vadd.f32 %v1181_v11, %v2251_v38  ;;  %v1183_v13 = vpop.f32.mrb[26].mxu1 }
 0x2a4   : > { %1302 = vst [vmem:[%s2257_s26 + $0xc0] sm:$0xff] %v1180_v10  ;;  %v1184_v14 = vadd.f32 %v1183_v13, %v2247_v37  ;;  %v1185_v15 = vpop.f32.mrb[27].mxu1 }
 0x2a5   : > { %1303 = vst [vmem:[%s2257_s26 + $0xc8] sm:$0xff] %v1182_v12  ;;  %v1186_v16 = vadd.f32 %v1185_v15, %v2251_v38 }
 0x2a6   : > { %1304 = vst [vmem:[%s2257_s26 + $0xd0] sm:$0xff] %v1184_v14 }
 0x2a7   : > { %1305 = vst [vmem:[%s2257_s26 + $0xd8] sm:$0xff] %v1186_v16 }
 0x2a9   : > { %v1189_v17 = vpop.f32.mrb[28].mxu1 }
 0x2aa   : > { %v1190_v18 = vadd.f32 %v1189_v17, %v2247_v37  ;;  %v1191_v19 = vpop.f32.mrb[29].mxu1 }
 0x2ab   : > { %v1192_v20 = vadd.f32 %v1191_v19, %v2251_v38  ;;  %v1193_v21 = vpop.f32.mrb[30].mxu1 }
 0x2ac   : > { %1306 = vst [vmem:[%s2257_s26 + $0xe0] sm:$0xff] %v1190_v18  ;;  %v1194_v22 = vadd.f32 %v1193_v21, %v2247_v37  ;;  %v1195_v23 = vpop.f32.mrb[31].mxu1 }
 0x2ad   : > { %1307 = vst [vmem:[%s2257_s26 + $0xe8] sm:$0xff] %v1192_v20  ;;  %v1196_v24 = vadd.f32 %v1195_v23, %v2251_v38 }
 0x2ae   : > { %1308 = vst [vmem:[%s2257_s26 + $0xf0] sm:$0xff] %v1194_v22 }
 0x2af   : > { %1309 = vst [vmem:[%s2257_s26 + $0xf8] sm:$0xff] %v1196_v24 }
 0x2b1   : > { %v1199_v25 = vpop.f32.mrb[32].mxu1 }
 0x2b2   : > { %v1200_v26 = vadd.f32 %v1199_v25, %v2247_v37  ;;  %v1201_v27 = vpop.f32.mrb[33].mxu1 }
 0x2b3   : > { %v1202_v33 = vadd.f32 %v1201_v27, %v2251_v38  ;;  %v1203_v34 = vpop.f32.mrb[34].mxu1 }
 0x2b4   : > { %1310 = vst [vmem:[%s2257_s26 + $0x100] sm:$0xff] %v1200_v26  ;;  %v1204_v36 = vadd.f32 %v1203_v34, %v2247_v37  ;;  %v1205_v28 = vpop.f32.mrb[35].mxu1 }
 0x2b5   : > { %1311 = vst [vmem:[%s2257_s26 + $0x108] sm:$0xff] %v1202_v33  ;;  %v1206_v29 = vadd.f32 %v1205_v28, %v2251_v38 }
 0x2b6   : > { %1312 = vst [vmem:[%s2257_s26 + $0x110] sm:$0xff] %v1204_v36 }
 0x2b7   : > { %1313 = vst [vmem:[%s2257_s26 + $0x118] sm:$0xff] %v1206_v29 }
 0x2b9   : > { %v1209_v30 = vpop.f32.mrb[36].mxu1 }
 0x2ba   : > { %v1210_v31 = vadd.f32 %v1209_v30, %v2247_v37  ;;  %v1211_v32 = vpop.f32.mrb[37].mxu1 }
 0x2bb   : > { %v1212_v35 = vadd.f32 %v1211_v32, %v2251_v38  ;;  %v1213_v39 = vpop.f32.mrb[38].mxu1 }
 0x2bc   : > { %1314 = vst [vmem:[%s2257_s26 + $0x120] sm:$0xff] %v1210_v31  ;;  %v1214_v40 = vadd.f32 %v1213_v39, %v2247_v37  ;;  %v1215_v41 = vpop.f32.mrb[39].mxu1 }
 0x2bd   : > { %1315 = vst [vmem:[%s2257_s26 + $0x128] sm:$0xff] %v1212_v35  ;;  %v1216_v42 = vadd.f32 %v1215_v41, %v2251_v38 }
 0x2be   : > { %1316 = vst [vmem:[%s2257_s26 + $0x130] sm:$0xff] %v1214_v40 }
 0x2bf   : > { %1317 = vst [vmem:[%s2257_s26 + $0x138] sm:$0xff] %v1216_v42 }
 0x2c1   : > { %v1219_v43 = vpop.f32.mrb[40].mxu1 }
 0x2c2   : > { %v1220_v44 = vadd.f32 %v1219_v43, %v2247_v37  ;;  %v1221_v45 = vpop.f32.mrb[41].mxu1 }
 0x2c3   : > { %v1222_v46 = vadd.f32 %v1221_v45, %v2251_v38  ;;  %v1223_v47 = vpop.f32.mrb[42].mxu1 }
 0x2c4   : > { %1318 = vst [vmem:[%s2257_s26 + $0x140] sm:$0xff] %v1220_v44  ;;  %v1224_v48 = vadd.f32 %v1223_v47, %v2247_v37  ;;  %v1225_v49 = vpop.f32.mrb[43].mxu1 }
 0x2c5   : > { %1319 = vst [vmem:[%s2257_s26 + $0x148] sm:$0xff] %v1222_v46  ;;  %v1226_v50 = vadd.f32 %v1225_v49, %v2251_v38 }
 0x2c6   : > { %1320 = vst [vmem:[%s2257_s26 + $0x150] sm:$0xff] %v1224_v48 }
 0x2c7   : > { %1321 = vst [vmem:[%s2257_s26 + $0x158] sm:$0xff] %v1226_v50 }
 0x2c9   : > { %v1229_v51 = vpop.f32.mrb[44].mxu1 }
 0x2ca   : > { %v1230_v52 = vadd.f32 %v1229_v51, %v2247_v37  ;;  %v1231_v53 = vpop.f32.mrb[45].mxu1 }
 0x2cb   : > { %v1232_v54 = vadd.f32 %v1231_v53, %v2251_v38  ;;  %v1233_v55 = vpop.f32.mrb[46].mxu1 }
 0x2cc   : > { %1322 = vst [vmem:[%s2257_s26 + $0x160] sm:$0xff] %v1230_v52  ;;  %v1234_v56 = vadd.f32 %v1233_v55, %v2247_v37  ;;  %v1235_v57 = vpop.f32.mrb[47].mxu1 }
 0x2cd   : > { %1323 = vst [vmem:[%s2257_s26 + $0x168] sm:$0xff] %v1232_v54  ;;  %v1236_v58 = vadd.f32 %v1235_v57, %v2251_v38 }
 0x2ce   : > { %1324 = vst [vmem:[%s2257_s26 + $0x170] sm:$0xff] %v1234_v56 }
 0x2cf   : > { %1325 = vst [vmem:[%s2257_s26 + $0x178] sm:$0xff] %v1236_v58 }
 0x2d1   : > { %v1239_v59 = vpop.f32.mrb[48].mxu1 }
 0x2d2   : > { %v1240_v60 = vadd.f32 %v1239_v59, %v2247_v37  ;;  %v1241_v61 = vpop.f32.mrb[49].mxu1 }
 0x2d3   : > { %v1242_v62 = vadd.f32 %v1241_v61, %v2251_v38  ;;  %v1243_v63 = vpop.f32.mrb[50].mxu1 }
 0x2d4   : > { %1326 = vst [vmem:[%s2257_s26 + $0x180] sm:$0xff] %v1240_v60  ;;  %v1244_v0 = vadd.f32 %v1243_v63, %v2247_v37  ;;  %v1245_v1 = vpop.f32.mrb[51].mxu1 }
 0x2d5   : > { %1327 = vst [vmem:[%s2257_s26 + $0x188] sm:$0xff] %v1242_v62  ;;  %v1246_v2 = vadd.f32 %v1245_v1, %v2251_v38 }
 0x2d6   : > { %1328 = vst [vmem:[%s2257_s26 + $0x190] sm:$0xff] %v1244_v0 }
 0x2d7   : > { %1329 = vst [vmem:[%s2257_s26 + $0x198] sm:$0xff] %v1246_v2 }
 0x2d9   : > { %v1249_v3 = vpop.f32.mrb[52].mxu1 }
 0x2da   : > { %v1250_v4 = vadd.f32 %v1249_v3, %v2247_v37  ;;  %v1251_v5 = vpop.f32.mrb[53].mxu1 }
 0x2db   : > { %v1252_v6 = vadd.f32 %v1251_v5, %v2251_v38  ;;  %v1253_v7 = vpop.f32.mrb[54].mxu1 }
 0x2dc   : > { %1330 = vst [vmem:[%s2257_s26 + $0x1a0] sm:$0xff] %v1250_v4  ;;  %v1254_v8 = vadd.f32 %v1253_v7, %v2247_v37  ;;  %v1255_v9 = vpop.f32.mrb[55].mxu1 }
 0x2dd   : > { %1331 = vst [vmem:[%s2257_s26 + $0x1a8] sm:$0xff] %v1252_v6  ;;  %v1256_v10 = vadd.f32 %v1255_v9, %v2251_v38 }
 0x2de   : > { %1332 = vst [vmem:[%s2257_s26 + $0x1b0] sm:$0xff] %v1254_v8 }
 0x2df   : > { %1333 = vst [vmem:[%s2257_s26 + $0x1b8] sm:$0xff] %v1256_v10 }
 0x2e1   : > { %v1259_v11 = vpop.f32.mrb[56].mxu1 }
 0x2e2   : > { %v1260_v12 = vadd.f32 %v1259_v11, %v2247_v37  ;;  %v1261_v13 = vpop.f32.mrb[57].mxu1 }
 0x2e3   : > { %v1262_v14 = vadd.f32 %v1261_v13, %v2251_v38  ;;  %v1263_v15 = vpop.f32.mrb[58].mxu1 }
 0x2e4   : > { %1334 = vst [vmem:[%s2257_s26 + $0x1c0] sm:$0xff] %v1260_v12  ;;  %v1264_v16 = vadd.f32 %v1263_v15, %v2247_v37  ;;  %v1265_v17 = vpop.f32.mrb[59].mxu1 }
 0x2e5   : > { %1335 = vst [vmem:[%s2257_s26 + $0x1c8] sm:$0xff] %v1262_v14  ;;  %v1266_v18 = vadd.f32 %v1265_v17, %v2251_v38 }
 0x2e6   : > { %1336 = vst [vmem:[%s2257_s26 + $0x1d0] sm:$0xff] %v1264_v16 }
 0x2e7   : > { %1337 = vst [vmem:[%s2257_s26 + $0x1d8] sm:$0xff] %v1266_v18 }
 0x2e9   : > { %v1269_v19 = vpop.f32.mrb[60].mxu1  ;;  %1349 = sbr.rel (!%p2468_p8) target bundleno = 780 (0x30c), region = 56 }
 0x2ea   : > { %v1270_v20 = vadd.f32 %v1269_v19, %v2247_v37  ;;  %v1271_v21 = vpop.f32.mrb[61].mxu1 }
 0x2eb   : > { %v1272_v22 = vadd.f32 %v1271_v21, %v2251_v38  ;;  %v1273_v23 = vpop.f32.mrb[62].mxu1 }
 0x2ec   : > { %1338 = vst [vmem:[%s2257_s26 + $0x1e0] sm:$0xff] %v1270_v20  ;;  %v1274_v24 = vadd.f32 %v1273_v23, %v2247_v37  ;;  %v1275_v25 = vpop.f32.mrb[63].mxu1 }
 0x2ed   : > { %1339 = vst [vmem:[%s2257_s26 + $0x1e8] sm:$0xff] %v1272_v22  ;;  %v1276_v26 = vadd.f32 %v1275_v25, %v2251_v38 }
 0x2ee   : > { %1340 = vst [vmem:[%s2257_s26 + $0x1f0] sm:$0xff] %v1274_v24 }
 0x2ef   : > { %1341 = vst [vmem:[%s2257_s26 + $0x1f8] sm:$0xff] %v1276_v26 }
 0x2f0   : > { %s2478_s23 = smov (!%p1352_p9, %s1351_s23), 32 }
 0x2f1   : > { %s2389_s12 = sshll.u32 %s2478_s23, 8 }
 0x2f2   : > { %s1357_s28 = ssub.s32 8192, %s2389_s12 }
 0x2f3   : > { %1358 = vsyncadd %s1343_s9, %s1357_s28  ;;  %p1543_p10 = scmp.ne.s32.totalorder %s2389_s12, 0  ;;  %s1555_s30 = sshll.u32 %s1935_s22, 13 }
 0x2f4   : > { %s2399_s27 = scalar_lea.hbm %s2452_s5, %s1555_s30  ;;  %s1364_s14 = sshll.u32 %s2257_s26, 4  ;;  %s2402_s14 = int_to_ptr.vmem [resolvable:$true] %s1364_s14 }
 0x2f5   : > { %s1802_s15 = scalar_lea.vmem %s2402_s14, %s2389_s12  ;;  %s1881_s16 = smov [#allocation8]  }
 0x2f6   : > { %p1803_p1 = scmp.ne.s32.totalorder %s2402_s14, %s1802_s15  ;;  %s1806_s29 = sshll.u32 %s1881_s16, 4  ;;  %s1807_s29 = int_to_ptr.vmem [resolvable:$false] %s1806_s29 }
 0x2f7   : > { %s1808_s22 = scalar_lea.vmem %s1807_s29, 16384  ;;  %p1809_p3 = scmp.lt.s32.totalorder %s2402_s14, %s1807_s29 }
 0x2f8   : > { %p1804_p4 = pnand %p1803_p1, %p1543_p10  ;;  %p1810_p6 = scmp.lt.s32.totalorder %s1808_s22, %s1802_s15 }
 0x2fa   : > { %p1805_p5 = pneg %p1804_p4  ;;  %p1811_p11 = por %p1810_p6, %p1809_p3 }
 0x2fc   : > { %p1812_p13 = pnand %p1811_p11, %p1805_p5 }
 0x2fe   : > { %1815 = shalt.err (!%p1812_p13)
}
 0x2ff   : > { %s1816_s7 = scalar_lea.hbm %s2399_s27, %s2389_s12  ;;  %s1820_s26 = scalar_lea.hbm %s2452_s5, 19200 }
 0x300   : > { %p1817_p12 = scmp.ne.s32.totalorder %s2399_s27, %s1816_s7  ;;  %p1821_p7 = scmp.lt.u32.totalorder %s2399_s27, %s2452_s5 }
 0x301   : > { %p1822_p8 = scmp.lt.u32.totalorder %s1820_s26, %s1816_s7  ;;  %p1824_p1 = scmp.lt.u32.totalorder %s1816_s7, %s2399_s27 }
 0x302   : > { %p1818_p0 = pnand %p1817_p12, %p1543_p10 }
 0x303   : > { %p1823_p9 = por %p1822_p8, %p1821_p7 }
 0x304   : > { %p1819_p2 = pneg %p1818_p0 }
 0x305   : > { %p1825_p4 = por %p1824_p1, %p1823_p9 }
 0x307   : > { %p1826_p5 = pnand %p1825_p4, %p1819_p2 }
 0x309   : > { %1829 = shalt.err (!%p1826_p5)
}
 0x30a   : > { %s1882_s28 = smov 256   ;;  %s1883_s30 = smov 16  }
 0x30b   : > { %1370 = dma.vmem_to_hbm [thread:$0]  (%p1543_p10), %s2402_s14, %s2389_s12, %s2399_s27, %s1343_s9, %s1882_s28, %s1882_s28, %s1883_s30  }
 0x30c PF: > { %p1581_p3 = scmp.ge.s32.totalorder %s1872_s21, 2  ;;  %s1379_s8 = sand.u32 1, %s1860_s18  }
 0x30d   : > { %p2469_p6 = scmp.ne.s32.totalorder %s2460_s6, 0  ;;  %s1380_s11 = scalar_lea.sflag [#allocation4], %s1379_s8 }
 0x30f   : > { %p1574_p11 = pnand %p1581_p3, %p2469_p6 }
 0x311   : > { %1855 = dma.done.wait (!%p1574_p11), %s1380_s11, 8192  }
 0x312   : > { %1857 = vsyncadd (!%p1574_p11), %s1380_s11, 4294959104  ;;  %s2470_s15 = sld [smem:[#allocation12_spill]]  ;;  %p19_p13 = scmp.ge.s32.totalorder %s1939_s24, 5  }
 0x313   : > { %s2471_s18 = smov %s1864_s19  ;;  %s2472_s19 = smov %s1868_s20 }
 0x314   : > { %s2474_s21 = smov %s1939_s24  ;;  %21 = sbr.rel (!%p19_p13) target bundleno = 6 (0x6), region = 93 }
 0x318   : > { %s2473_s20 = smov %s2470_s15 }
 0x31b   :  { %1385 = vsyncpa [#allocation3], 1 }
 0x31c   :  { %1387 = vsyncpa [#allocation3 + $0x1], 1 }
 0x31d   :  { %1388 = vsyncpa [#allocation6], 1 }
 0x31e   :  { %1389 = vsyncpa [#allocation4], 1 }
 0x31f   :  { %1391 = vsyncpa [#allocation4 + $0x1], 1 }

</bundles_post_ra>
